<compile_context>
chip_gen: v7x
topology: tpu7x:2x2x1
jax: 0.10.0
libtpu: 0.0.40
codegen_flags: <defaults>
</compile_context>

<pallas_src>
import math
from functools import partial

import jax
import jax.numpy as jnp
from jax.experimental import pallas as pl
from jax.experimental.pallas import tpu as pltpu


def _round_up(x, m):
    return ((x + m - 1) // m) * m


# ----------------------------------------------------------------------------
# Kernel
# ----------------------------------------------------------------------------
def _cem_recurrent_kernel(H,
                          x_ref, h_ref,
                          w1_ref, b1_ref,
                          wih_ref, bih_ref,
                          whh_ref, bhh_ref,
                          w2_ref, b2_ref,
                          out_ref):
    """One batch tile of the fused fc1 + GRUCell + fc2 forward.

    Shapes (HP = hidden padded to a multiple of 128, TB = batch tile):
      x_ref   : (TB, NI)        concatenated [obs, actions]
      h_ref   : (TB, HP)        previous hidden (packed layout)
      w1_ref  : (NI, HP)        fc1 weight, pre-transposed, zero-padded cols
      b1_ref  : (1, HP)
      wih_ref : (HP, 3*HP)      GRU input weights, gate blocks [r | z | n]
      bih_ref : (1, 3*HP)
      whh_ref : (HP, 3*HP)      GRU hidden weights, gate blocks [r | z | n]
      bhh_ref : (1, 3*HP)
      w2_ref  : (1, HP)         fc2 weight as a row
      b2_ref  : (1, 1)
      out_ref : (TB, HP)        packed output: h_new in lanes [0:H], q at lane H
    """
    TB, HP = h_ref.shape
    wdt = w1_ref.dtype                         # f32 (default) or bf16 weights

    lane = jax.lax.broadcasted_iota(jnp.int32, (TB, HP), 1)

    # Zero padded lanes of the incoming hidden state so a packed hidden state
    # (with q stored at lane H on the previous step) can be fed back verbatim.
    h = jnp.where(lane < H, h_ref[...], 0.0)   # (TB, HP) f32

    # --- fc1 + ReLU  (padded lanes stay exactly 0) --------------------------
    a = jnp.dot(x_ref[...].astype(wdt), w1_ref[...],
                preferred_element_type=jnp.float32) + b1_ref[...]
    a = jnp.maximum(a, 0.0)                    # (TB, HP)

    # --- GRUCell: two fused gate matmuls, lane-aligned static slices --------
    gi = jnp.dot(a.astype(wdt), wih_ref[...],
                 preferred_element_type=jnp.float32) + bih_ref[...]   # (TB, 3HP)
    gh = jnp.dot(h.astype(wdt), whh_ref[...],
                 preferred_element_type=jnp.float32) + bhh_ref[...]   # (TB, 3HP)

    i_r, i_z, i_n = gi[:, 0:HP], gi[:, HP:2 * HP], gi[:, 2 * HP:3 * HP]
    h_r, h_z, h_n = gh[:, 0:HP], gh[:, HP:2 * HP], gh[:, 2 * HP:3 * HP]

    r = jax.nn.sigmoid(i_r + h_r)
    z = jax.nn.sigmoid(i_z + h_z)
    n = jnp.tanh(i_n + r * h_n)
    h_new = (1.0 - z) * n + z * h              # (TB, HP); lanes >= H stay exactly 0

    # --- fc2: VPU multiply + lane reduction (skip a 1-wide MXU push) --------
    q = jnp.sum(h_new * w2_ref[...], axis=-1, keepdims=True) + b2_ref[...]  # (TB, 1)

    # --- pack q into lane H of the lane-dense h slab -> one unmasked store --
    out_ref[...] = jnp.where(lane == H, q, h_new)


# ----------------------------------------------------------------------------
# Wrapper
# ----------------------------------------------------------------------------
def cem_recurrent_forward(inputs, hidden_state, actions, prepared_params, hidden_size):
    """Glue (concat / reshape / optional padding) in plain JAX; hot path in the kernel.

    `hidden_state` may be either the standard (B, H)-shaped state (as the
    PyTorch module uses) or the packed (B_pad, HP) state returned as
    "hidden_state_packed" by a previous call (no pad/slice copies on that path).
    """
    # TODO(synk): torch.save([inputs, actions], 'data.pth') side effect omitted.
    if actions is not None:
        inputs = jnp.concatenate(
            [inputs, actions.reshape(-1, actions.shape[-1])], axis=-1)

    p = prepared_params
    H = hidden_size
    HP = p["b1"].shape[1]                      # padded hidden width (static)
    B, NI = inputs.shape

    # Batch tiling: at most a handful of big grid steps (step-overhead bound).
    TB = min(1024, _round_up(B, 8))
    B_pad = _round_up(B, TB)
    nb = B_pad // TB

    # Inputs: skip the pad copy entirely when no padding is needed.
    x = inputs.astype(jnp.float32)
    x_p = x if B == B_pad else jnp.zeros((B_pad, NI), jnp.float32).at[:B].set(x)

    # Hidden state: accept packed layout directly (per-timestep carry fast path).
    if hidden_state.shape == (B_pad, HP):
        h_p = hidden_state.astype(jnp.float32)
    else:
        h_in = hidden_state.reshape(-1, H).astype(jnp.float32)
        h_p = jnp.zeros((B_pad, HP), jnp.float32).at[:B, :H].set(h_in)

    # Advisory cost estimate for XLA's scheduler.
    weight_keys = ("w1", "b1", "w_ih", "b_ih", "w_hh", "b_hh", "w2", "b2")
    weight_bytes = sum(math.prod(p[k].shape) * p[k].dtype.itemsize for k in weight_keys)
    cost = pl.CostEstimate(
        flops=int(2 * B_pad * HP * (NI + 6 * HP)),
        transcendentals=int(3 * B_pad * HP),
        bytes_accessed=int(weight_bytes + 4 * B_pad * (NI + 2 * HP)),
    )

    grid_spec = pltpu.PrefetchScalarGridSpec(
        num_scalar_prefetch=0,
        grid=(nb,),
        in_specs=[
            # batch-tiled activations
            pl.BlockSpec((TB, NI), lambda i: (i, 0)),
            pl.BlockSpec((TB, HP), lambda i: (i, 0)),
            # weights: constant index maps -> VMEM-resident across the grid
            pl.BlockSpec((NI, HP), lambda i: (0, 0)),
            pl.BlockSpec((1, HP), lambda i: (0, 0)),
            pl.BlockSpec((HP, 3 * HP), lambda i: (0, 0)),
            pl.BlockSpec((1, 3 * HP), lambda i: (0, 0)),
            pl.BlockSpec((HP, 3 * HP), lambda i: (0, 0)),
            pl.BlockSpec((1, 3 * HP), lambda i: (0, 0)),
            pl.BlockSpec((1, HP), lambda i: (0, 0)),
            pl.BlockSpec((1, 1), lambda i: (0, 0)),
        ],
        out_specs=pl.BlockSpec((TB, HP), lambda i: (i, 0)),
    )

    packed = pl.pallas_call(
        partial(_cem_recurrent_kernel, H),
        out_shape=jax.ShapeDtypeStruct((B_pad, HP), jnp.float32),
        grid_spec=grid_spec,
        # Reuse the padded-h buffer for the packed output (in-place h update
        # when XLA can prove the input buffer dead).
        input_output_aliases={1: 0},
        compiler_params=pltpu.CompilerParams(
            dimension_semantics=("parallel",)),
        cost_estimate=cost,
    )(x_p, h_p,
      p["w1"], p["b1"],
      p["w_ih"], p["b_ih"],
      p["w_hh"], p["b_hh"],
      p["w2"], p["b2"])

    return {
        "Q": packed[:B, H:H + 1],
        "hidden_state": packed[:B, :H],
        "hidden_state_packed": packed,   # feed back next step: no pad/slice copies
    }


# ----------------------------------------------------------------------------
# Parameters: PyTorch-layout init + one-time repack/pad for the kernel
# ----------------------------------------------------------------------------
def init_params(key, num_inputs, hidden_size):
    """Deterministic synthetic params in PyTorch state_dict layout."""
    H = hidden_size
    ks = jax.random.split(key, 8)
    s = 0.1
    return {
        "fc1.weight": s * jax.random.normal(ks[0], (H, num_inputs), jnp.float32),
        "fc1.bias":   s * jax.random.normal(ks[1], (H,), jnp.float32),
        # GRUCell: rows ordered [r | z | n]
        "rnn.weight_ih": s * jax.random.normal(ks[2], (3 * H, H), jnp.float32),
        "rnn.weight_hh": s * jax.random.normal(ks[3], (3 * H, H), jnp.float32),
        "rnn.bias_ih":   s * jax.random.normal(ks[4], (3 * H,), jnp.float32),
        "rnn.bias_hh":   s * jax.random.normal(ks[5], (3 * H,), jnp.float32),
        "fc2.weight": s * jax.random.normal(ks[6], (1, H), jnp.float32),
        "fc2.bias":   s * jax.random.normal(ks[7], (1,), jnp.float32),
    }


def prepare_params(torch_params, num_inputs, hidden_size, matmul_dtype=jnp.float32):
    """Repack to kernel layout.

    Pre-transposed, zero-padded to HP lanes; GRU gate weights are concatenated
    along the lane axis into (HP, 3*HP) so the kernel needs only two gate dots
    with 128-lane-aligned slices.  `matmul_dtype=jnp.bfloat16` stores the MXU
    weight operands in bf16 (optional v6e/v7x speedup; re-validate numerics).
    """
    H = hidden_size
    HP = _round_up(max(H + 1, 128), 128)   # +1 leaves room for q at lane H

    def pad_mat(w_io, rows, cols):         # w_io is already [in, out]
        return jnp.zeros((rows, cols), jnp.float32).at[
            :w_io.shape[0], :w_io.shape[1]].set(w_io)

    w1 = pad_mat(torch_params["fc1.weight"].T, num_inputs, HP)
    b1 = jnp.zeros((1, HP), jnp.float32).at[0, :H].set(torch_params["fc1.bias"])

    def cat_gru(w, b):                     # w: (3H, H) PyTorch layout, [r|z|n]
        w_cat = jnp.concatenate(
            [pad_mat(w[g * H:(g + 1) * H, :].T, HP, HP) for g in range(3)], axis=1)
        b_cat = jnp.concatenate(
            [jnp.zeros((1, HP), jnp.float32).at[0, :H].set(b[g * H:(g + 1) * H])
             for g in range(3)], axis=1)
        return w_cat, b_cat                # (HP, 3*HP), (1, 3*HP)

    w_ih, b_ih = cat_gru(torch_params["rnn.weight_ih"], torch_params["rnn.bias_ih"])
    w_hh, b_hh = cat_gru(torch_params["rnn.weight_hh"], torch_params["rnn.bias_hh"])

    w2 = jnp.zeros((1, HP), jnp.float32).at[0, :H].set(torch_params["fc2.weight"][0])
    b2 = torch_params["fc2.bias"].reshape(1, 1).astype(jnp.float32)

    return {"w1": w1.astype(matmul_dtype), "b1": b1,
            "w_ih": w_ih.astype(matmul_dtype), "b_ih": b_ih,
            "w_hh": w_hh.astype(matmul_dtype), "b_hh": b_hh,
            "w2": w2, "b2": b2}


# ----------------------------------------------------------------------------
# Pure-JAX reference (mirrors the PyTorch module) for correctness checking
# ----------------------------------------------------------------------------
def reference_forward(inputs, hidden_state, actions, torch_params, hidden_size):
    hi = jax.lax.Precision.HIGHEST
    if actions is not None:
        inputs = jnp.concatenate(
            [inputs, actions.reshape(-1, actions.shape[-1])], axis=-1)
    H = hidden_size
    h_in = hidden_state.reshape(-1, H)
    x = jnp.maximum(
        jnp.dot(inputs, torch_params["fc1.weight"].T, precision=hi)
        + torch_params["fc1.bias"], 0.0)
    gi = jnp.dot(x, torch_params["rnn.weight_ih"].T, precision=hi) + torch_params["rnn.bias_ih"]
    gh = jnp.dot(h_in, torch_params["rnn.weight_hh"].T, precision=hi) + torch_params["rnn.bias_hh"]
    i_r, i_z, i_n = gi[:, :H], gi[:, H:2 * H], gi[:, 2 * H:]
    h_r, h_z, h_n = gh[:, :H], gh[:, H:2 * H], gh[:, 2 * H:]
    r = jax.nn.sigmoid(i_r + h_r)
    z = jax.nn.sigmoid(i_z + h_z)
    n = jnp.tanh(i_n + r * h_n)
    h = (1.0 - z) * n + z * h_in
    q = jnp.dot(h, torch_params["fc2.weight"].T, precision=hi) + torch_params["fc2.bias"]
    return q, h


# ----------------------------------------------------------------------------
if __name__ == "__main__":
    # Shapes consistent with the module; batch = CEM population so the MXU M
    # dim is filled and no padding rows are needed (B == B_pad fast path).
    batch = 256
    obs_dim = 24          # input_shape
    n_actions = 8         # args.n_actions
    hidden_size = 32      # args.rnn_hidden_dim
    num_inputs = obs_dim + n_actions

    key = jax.random.PRNGKey(0)
    k_obs, k_act, k_h, k_par, k_obs2, k_act2 = jax.random.split(key, 6)

    inputs = jax.random.normal(k_obs, (batch, obs_dim), jnp.float32)
    actions = jax.random.normal(k_act, (batch, 1, n_actions), jnp.float32)
    hidden_state = jax.random.normal(k_h, (batch, hidden_size), jnp.float32)

    torch_params = init_params(k_par, num_inputs, hidden_size)
    params = prepare_params(torch_params, num_inputs, hidden_size)   # one-time repack

    forward = jax.jit(partial(cem_recurrent_forward, hidden_size=hidden_size))

    # --- step 1: standard (B, H) hidden state ------------------------------
    out = forward(inputs, hidden_state, actions, params)
    jax.block_until_ready(out)

    assert out["Q"].shape == (batch, 1)
    assert out["hidden_state"].shape == (batch, hidden_size)

    q_ref1, h_ref1 = reference_forward(inputs, hidden_state, actions,
                                       torch_params, hidden_size)
    assert jnp.allclose(out["Q"], q_ref1, atol=1e-3, rtol=1e-3)
    assert jnp.allclose(out["hidden_state"], h_ref1, atol=1e-3, rtol=1e-3)

    # --- step 2: carry the hidden state in packed kernel layout ------------
    inputs2 = jax.random.normal(k_obs2, (batch, obs_dim), jnp.float32)
    actions2 = jax.random.normal(k_act2, (batch, 1, n_actions), jnp.float32)
    out2 = forward(inputs2, out["hidden_state_packed"], actions2, params)
    jax.block_until_ready(out2)

    q_ref2, h_ref2 = reference_forward(inputs2, h_ref1, actions2,
                                       torch_params, hidden_size)
    assert jnp.allclose(out2["Q"], q_ref2, atol=1e-3, rtol=1e-3)
    assert jnp.allclose(out2["hidden_state"], h_ref2, atol=1e-3, rtol=1e-3)

    print("KERNEL_OK")
</pallas_src>

<mosaic_0001>
module attributes {stable_mosaic.version = 11 : i64} {
  func.func @_cem_recurrent_kernel(%arg0: i32, %arg1: memref<256x32xf32, #tpu.memory_space<vmem>>, %arg2: memref<256x128xf32, #tpu.memory_space<vmem>>, %arg3: memref<32x128xf32, #tpu.memory_space<vmem>>, %arg4: memref<1x128xf32, #tpu.memory_space<vmem>>, %arg5: memref<128x384xf32, #tpu.memory_space<vmem>>, %arg6: memref<1x384xf32, #tpu.memory_space<vmem>>, %arg7: memref<128x384xf32, #tpu.memory_space<vmem>>, %arg8: memref<1x384xf32, #tpu.memory_space<vmem>>, %arg9: memref<1x128xf32, #tpu.memory_space<vmem>>, %arg10: memref<1x1xf32, #tpu.memory_space<vmem>>, %arg11: memref<256x128xf32, #tpu.memory_space<vmem>>) attributes {dimension_semantics = [#tpu.dimension_semantics<parallel>], iteration_bounds = array<i64: 1>, scalar_prefetch = 0 : i64, scratch_operands = 0 : i64, tpu.core_type = #tpu.core_type<tc>, window_params = [{transform_indices = @transform_0, window_bounds = array<i64: 256, 32>}, {transform_indices = @transform_1, window_bounds = array<i64: 256, 128>}, {pipeline_mode = #tpu.pipeline_mode<synchronous>, transform_indices = @transform_2, window_bounds = array<i64: 32, 128>}, {pipeline_mode = #tpu.pipeline_mode<synchronous>, transform_indices = @transform_3, window_bounds = array<i64: 1, 128>}, {pipeline_mode = #tpu.pipeline_mode<synchronous>, transform_indices = @transform_4, window_bounds = array<i64: 128, 384>}, {pipeline_mode = #tpu.pipeline_mode<synchronous>, transform_indices = @transform_5, window_bounds = array<i64: 1, 384>}, {pipeline_mode = #tpu.pipeline_mode<synchronous>, transform_indices = @transform_6, window_bounds = array<i64: 128, 384>}, {pipeline_mode = #tpu.pipeline_mode<synchronous>, transform_indices = @transform_7, window_bounds = array<i64: 1, 384>}, {pipeline_mode = #tpu.pipeline_mode<synchronous>, transform_indices = @transform_8, window_bounds = array<i64: 1, 128>}, {pipeline_mode = #tpu.pipeline_mode<synchronous>, transform_indices = @transform_9, window_bounds = array<i64: 1, 1>}, {transform_indices = @transform_10, window_bounds = array<i64: 256, 128>}]} {
    %0 = tpu.iota {dimensions = array<i32: 1>} : vector<256x128xi32>
    %c32_i32 = arith.constant 32 : i32
    %1 = vector.broadcast %c32_i32 : i32 to vector<256x128xi32>
    %2 = arith.cmpi slt, %0, %1 : vector<256x128xi32>
    %c0 = arith.constant 0 : index
    %c0_0 = arith.constant 0 : index
    %3 = vector.load %arg2[%c0, %c0_0] : memref<256x128xf32, #tpu.memory_space<vmem>>, vector<256x128xf32>
    %cst = arith.constant 0.000000e+00 : f32
    %4 = vector.broadcast %cst : f32 to vector<256x128xf32>
    %5 = arith.select %2, %3, %4 : vector<256x128xi1>, vector<256x128xf32>
    %c0_1 = arith.constant 0 : index
    %c0_2 = arith.constant 0 : index
    %6 = vector.load %arg1[%c0_1, %c0_2] : memref<256x32xf32, #tpu.memory_space<vmem>>, vector<256x32xf32>
    %c0_3 = arith.constant 0 : index
    %c0_4 = arith.constant 0 : index
    %7 = vector.load %arg3[%c0_3, %c0_4] : memref<32x128xf32, #tpu.memory_space<vmem>>, vector<32x128xf32>
    %cst_5 = arith.constant dense<0.000000e+00> : vector<256x128xf32>
    %8 = tpu.matmul %6, %7, %cst_5 {dimension_numbers = #tpu.dot_dimension_numbers<[1], [0], [0], [1], [0, 0, 1, 1], [], []>} : vector<256x32xf32>, vector<32x128xf32>, vector<256x128xf32> -> vector<256x128xf32>
    %c0_6 = arith.constant 0 : index
    %c0_7 = arith.constant 0 : index
    %9 = vector.load %arg4[%c0_6, %c0_7] : memref<1x128xf32, #tpu.memory_space<vmem>>, vector<1x128xf32>
    %10 = vector.broadcast %9 : vector<1x128xf32> to vector<256x128xf32>
    %11 = arith.addf %8, %10 : vector<256x128xf32>
    %cst_8 = arith.constant 0.000000e+00 : f32
    %12 = vector.broadcast %cst_8 : f32 to vector<256x128xf32>
    %13 = arith.maximumf %11, %12 : vector<256x128xf32>
    %c0_9 = arith.constant 0 : index
    %c0_10 = arith.constant 0 : index
    %14 = vector.load %arg5[%c0_9, %c0_10] : memref<128x384xf32, #tpu.memory_space<vmem>>, vector<128x384xf32>
    %cst_11 = arith.constant dense<0.000000e+00> : vector<256x384xf32>
    %15 = tpu.matmul %13, %14, %cst_11 {dimension_numbers = #tpu.dot_dimension_numbers<[1], [0], [0], [1], [0, 0, 1, 1], [], []>} : vector<256x128xf32>, vector<128x384xf32>, vector<256x384xf32> -> vector<256x384xf32>
    %c0_12 = arith.constant 0 : index
    %c0_13 = arith.constant 0 : index
    %16 = vector.load %arg6[%c0_12, %c0_13] : memref<1x384xf32, #tpu.memory_space<vmem>>, vector<1x384xf32>
    %17 = vector.broadcast %16 : vector<1x384xf32> to vector<256x384xf32>
    %18 = arith.addf %15, %17 : vector<256x384xf32>
    %c0_14 = arith.constant 0 : index
    %c0_15 = arith.constant 0 : index
    %19 = vector.load %arg7[%c0_14, %c0_15] : memref<128x384xf32, #tpu.memory_space<vmem>>, vector<128x384xf32>
    %cst_16 = arith.constant dense<0.000000e+00> : vector<256x384xf32>
    %20 = tpu.matmul %5, %19, %cst_16 {dimension_numbers = #tpu.dot_dimension_numbers<[1], [0], [0], [1], [0, 0, 1, 1], [], []>} : vector<256x128xf32>, vector<128x384xf32>, vector<256x384xf32> -> vector<256x384xf32>
    %c0_17 = arith.constant 0 : index
    %c0_18 = arith.constant 0 : index
    %21 = vector.load %arg8[%c0_17, %c0_18] : memref<1x384xf32, #tpu.memory_space<vmem>>, vector<1x384xf32>
    %22 = vector.broadcast %21 : vector<1x384xf32> to vector<256x384xf32>
    %23 = arith.addf %20, %22 : vector<256x384xf32>
    %24 = vector.extract_strided_slice %18 {offsets = [0, 0], sizes = [256, 128], strides = [1, 1]} : vector<256x384xf32> to vector<256x128xf32>
    %25 = vector.extract_strided_slice %18 {offsets = [0, 128], sizes = [256, 128], strides = [1, 1]} : vector<256x384xf32> to vector<256x128xf32>
    %26 = vector.extract_strided_slice %18 {offsets = [0, 256], sizes = [256, 128], strides = [1, 1]} : vector<256x384xf32> to vector<256x128xf32>
    %27 = vector.extract_strided_slice %23 {offsets = [0, 0], sizes = [256, 128], strides = [1, 1]} : vector<256x384xf32> to vector<256x128xf32>
    %28 = vector.extract_strided_slice %23 {offsets = [0, 128], sizes = [256, 128], strides = [1, 1]} : vector<256x384xf32> to vector<256x128xf32>
    %29 = vector.extract_strided_slice %23 {offsets = [0, 256], sizes = [256, 128], strides = [1, 1]} : vector<256x384xf32> to vector<256x128xf32>
    %30 = arith.addf %24, %27 : vector<256x128xf32>
    %31 = arith.negf %30 : vector<256x128xf32>
    %32 = math.exp %31 : vector<256x128xf32>
    %cst_19 = arith.constant 1.000000e+00 : f32
    %33 = vector.broadcast %cst_19 : f32 to vector<256x128xf32>
    %34 = arith.addf %33, %32 : vector<256x128xf32>
    %35 = arith.divf %33, %34 : vector<256x128xf32>
    %36 = arith.addf %25, %28 : vector<256x128xf32>
    %37 = arith.negf %36 : vector<256x128xf32>
    %38 = math.exp %37 : vector<256x128xf32>
    %cst_20 = arith.constant 1.000000e+00 : f32
    %39 = vector.broadcast %cst_20 : f32 to vector<256x128xf32>
    %40 = arith.addf %39, %38 : vector<256x128xf32>
    %41 = arith.divf %39, %40 : vector<256x128xf32>
    %42 = arith.mulf %35, %29 : vector<256x128xf32>
    %43 = arith.addf %26, %42 : vector<256x128xf32>
    %44 = math.tanh %43 : vector<256x128xf32>
    %cst_21 = arith.constant 1.000000e+00 : f32
    %45 = vector.broadcast %cst_21 : f32 to vector<256x128xf32>
    %46 = arith.subf %45, %41 : vector<256x128xf32>
    %47 = arith.mulf %46, %44 : vector<256x128xf32>
    %48 = arith.mulf %41, %5 : vector<256x128xf32>
    %49 = arith.addf %47, %48 : vector<256x128xf32>
    %c0_22 = arith.constant 0 : index
    %c0_23 = arith.constant 0 : index
    %50 = vector.load %arg9[%c0_22, %c0_23] : memref<1x128xf32, #tpu.memory_space<vmem>>, vector<1x128xf32>
    %51 = vector.broadcast %50 : vector<1x128xf32> to vector<256x128xf32>
    %52 = arith.mulf %49, %51 : vector<256x128xf32>
    %cst_24 = arith.constant dense<0.000000e+00> : vector<256xf32>
    %53 = vector.multi_reduction <add>, %52, %cst_24 [1] : vector<256x128xf32> to vector<256xf32>
    %54 = vector.shape_cast %53 : vector<256xf32> to vector<256x1xf32>
    %c0_25 = arith.constant 0 : index
    %c0_26 = arith.constant 0 : index
    %55 = vector.load %arg10[%c0_25, %c0_26] : memref<1x1xf32, #tpu.memory_space<vmem>>, vector<1x1xf32>
    %56 = vector.broadcast %55 : vector<1x1xf32> to vector<256x1xf32>
    %57 = arith.addf %54, %56 : vector<256x1xf32>
    %c32_i32_27 = arith.constant 32 : i32
    %58 = vector.broadcast %c32_i32_27 : i32 to vector<256x128xi32>
    %59 = arith.cmpi eq, %0, %58 : vector<256x128xi32>
    %60 = vector.shape_cast %57 : vector<256x1xf32> to vector<256x1xf32>
    %61 = vector.broadcast %60 : vector<256x1xf32> to vector<256x128xf32>
    %62 = arith.select %59, %61, %49 : vector<256x128xi1>, vector<256x128xf32>
    %c0_28 = arith.constant 0 : index
    %c0_29 = arith.constant 0 : index
    %63 = vector.load %arg11[%c0_28, %c0_29] : memref<256x128xf32, #tpu.memory_space<vmem>>, vector<256x128xf32>
    tpu.vector_store %arg11[%c0_28, %c0_29], %62 {strides = array<i32>} : memref<256x128xf32, #tpu.memory_space<vmem>>, vector<256x128xf32>,
    return
  }
  func.func @transform_0(%arg0: i32) -> (i32, i32) {
    %c0_i32 = arith.constant 0 : i32
    %c0_i32_0 = arith.constant 0 : i32
    return %arg0, %c0_i32 : i32, i32
  }
  func.func @transform_1(%arg0: i32) -> (i32, i32) {
    %c0_i32 = arith.constant 0 : i32
    %c0_i32_0 = arith.constant 0 : i32
    return %arg0, %c0_i32 : i32, i32
  }
  func.func @transform_2(%arg0: i32) -> (i32, i32) {
    %c0_i32 = arith.constant 0 : i32
    %c0_i32_0 = arith.constant 0 : i32
    %c0_i32_1 = arith.constant 0 : i32
    return %c0_i32, %c0_i32_0 : i32, i32
  }
  func.func @transform_3(%arg0: i32) -> (i32, i32) {
    %c0_i32 = arith.constant 0 : i32
    %c0_i32_0 = arith.constant 0 : i32
    %c0_i32_1 = arith.constant 0 : i32
    return %c0_i32, %c0_i32_0 : i32, i32
  }
  func.func @transform_4(%arg0: i32) -> (i32, i32) {
    %c0_i32 = arith.constant 0 : i32
    %c0_i32_0 = arith.constant 0 : i32
    %c0_i32_1 = arith.constant 0 : i32
    return %c0_i32, %c0_i32_0 : i32, i32
  }
  func.func @transform_5(%arg0: i32) -> (i32, i32) {
    %c0_i32 = arith.constant 0 : i32
    %c0_i32_0 = arith.constant 0 : i32
    %c0_i32_1 = arith.constant 0 : i32
    return %c0_i32, %c0_i32_0 : i32, i32
  }
  func.func @transform_6(%arg0: i32) -> (i32, i32) {
    %c0_i32 = arith.constant 0 : i32
    %c0_i32_0 = arith.constant 0 : i32
    %c0_i32_1 = arith.constant 0 : i32
    return %c0_i32, %c0_i32_0 : i32, i32
  }
  func.func @transform_7(%arg0: i32) -> (i32, i32) {
    %c0_i32 = arith.constant 0 : i32
    %c0_i32_0 = arith.constant 0 : i32
    %c0_i32_1 = arith.constant 0 : i32
    return %c0_i32, %c0_i32_0 : i32, i32
  }
  func.func @transform_8(%arg0: i32) -> (i32, i32) {
    %c0_i32 = arith.constant 0 : i32
    %c0_i32_0 = arith.constant 0 : i32
    %c0_i32_1 = arith.constant 0 : i32
    return %c0_i32, %c0_i32_0 : i32, i32
  }
  func.func @transform_9(%arg0: i32) -> (i32, i32) {
    %c0_i32 = arith.constant 0 : i32
    %c0_i32_0 = arith.constant 0 : i32
    %c0_i32_1 = arith.constant 0 : i32
    return %c0_i32, %c0_i32_0 : i32, i32
  }
  func.func @transform_10(%arg0: i32) -> (i32, i32) {
    %c0_i32 = arith.constant 0 : i32
    %c0_i32_0 = arith.constant 0 : i32
    return %arg0, %c0_i32 : i32, i32
  }
}

</mosaic_0001>

<bundles_post_ra>
// kernel: cem_recurrent_forward.1
= control target key start
LH: loop header
LB: loop body
LE: loop exit
PB: predicated region body
PF: predicated region fallthrough
CT: control target
= control target key end

     0   :  { %vm147_vm0 = vcmask 261120   ;;  %s6071_s2 = inlined_call_operand.vmem [shape: f32[32,128], index: 2, kind: input, shape index: {}]   ;;  %s6072_s0 = inlined_call_operand.vmem [shape: f32[256,32], index: 0, kind: input, shape index: {}]   ;;  %s6073_s4 = inlined_call_operand.vmem [shape: f32[128,384], index: 4, kind: input, shape index: {}]   ;;  %s6074_s6 = inlined_call_operand.vmem [shape: f32[128,384], index: 6, kind: input, shape index: {}]   ;;  %s6075_s3 = inlined_call_operand.vmem [shape: f32[1,128], index: 3, kind: input, shape index: {}]   ;;  %s6076_s1 = inlined_call_operand.vmem [shape: f32[256,128], index: 1, kind: input, shape index: {}, may-alias: {1,10}]   ;;  %s6077_s5 = inlined_call_operand.vmem [shape: f32[1,384], index: 5, kind: input, shape index: {}]   ;;  %s6078_s7 = inlined_call_operand.vmem [shape: f32[1,384], index: 7, kind: input, shape index: {}]   ;;  %s6079_s8 = inlined_call_operand.vmem [shape: f32[1,128], index: 8, kind: input, shape index: {}]   ;;  %s6080_s9 = inlined_call_operand.<no memory space> [shape: f32[1,1], index: 9, kind: input, shape index: {}]   ;;  %s6081_s10 = inlined_call_operand.vmem [shape: f32[256,128], index: 10, kind: output, shape index: {}, may-alias: {1,10}]  }
   0x1   :  { %v136_v0 = vld [vmem:[%s6071_s2] sm:$0xff]  ;;  %v137_v1 = vld [vmem:[%s6071_s2 + $0x8] sm:$0xff]  ;;  %v138_v2 = vld [vmem:[%s6071_s2 + $0x10] sm:$0xff] }
   0x2   :  { %v3149_v3 = vpack.c.bf16 %v137_v1, %v136_v0  ;;  %v139_v4 = vld [vmem:[%s6071_s2 + $0x18] sm:$0xff]  ;;  %v104_v5 = vld [vmem:[%s6072_s0] sm:$0xff]  ;;  %v105_v7 = vld [vmem:[%s6072_s0 + $0x8] sm:$0xff] }
   0x3   :  { %v3153_v6 = vpack.c.bf16 %v139_v4, %v138_v2  ;;  %2941 = vmatprep.mubr.msk.f32.mxu0 %vm147_vm0, %v104_v5  ;;  %v106_v8 = vld [vmem:[%s6072_s0 + $0x10] sm:$0xff]  ;;  %v107_v9 = vld [vmem:[%s6072_s0 + $0x18] sm:$0xff]  ;;  %v108_v10 = vld [vmem:[%s6072_s0 + $0x20] sm:$0xff] }
   0x4   :  { %3150 = vmatprep.subr.bf16.mxu0 %v3149_v3  ;;  %v502_v11 = vld [vmem:[%s6073_s4 + $0x8] sm:$0xff]  ;;  %v505_v12 = vld [vmem:[%s6073_s4 + $0x20] sm:$0xff]  ;;  %v504_v15 = vld [vmem:[%s6073_s4 + $0x18] sm:$0xff] }
   0x5   :  { %3152 = vmatpush3.bf16.msra.mxu0 %v3149_v3  ;;  %v501_v13 = vld [vmem:[%s6073_s4] sm:$0xff]  ;;  %v3157_v14 = vpack.c.bf16 %v505_v12, %v502_v11  ;;  %v508_v16 = vld [vmem:[%s6073_s4 + $0x38] sm:$0xff]  ;;  %v511_v17 = vld [vmem:[%s6073_s4 + $0x50] sm:$0xff] }
   0x6   :  { %3154 = vmatprep.subr.bf16.mxu0 %v3153_v6  ;;  %v3159_v18 = vpack.c.bf16 %v504_v15, %v501_v13  ;;  %v3161_v19 = vpack.c.bf16 %v511_v17, %v508_v16  ;;  %v507_v20 = vld [vmem:[%s6073_s4 + $0x30] sm:$0xff]  ;;  %v510_v21 = vld [vmem:[%s6073_s4 + $0x48] sm:$0xff]  ;;  %v517_v23 = vld [vmem:[%s6073_s4 + $0x80] sm:$0xff] }
   0x7   :  { %v514_v22 = vld [vmem:[%s6073_s4 + $0x68] sm:$0xff]  ;;  %v3163_v25 = vpack.c.bf16 %v510_v21, %v507_v20  ;;  %v110_v26 = vld [vmem:[%s6072_s0 + $0x30] sm:$0xff]  ;;  %v513_v28 = vld [vmem:[%s6073_s4 + $0x60] sm:$0xff]  ;;  %3285 = vmatprep.subr.bf16.mxu1 %v3157_v14 }
   0x8   :  { %v109_v24 = vld [vmem:[%s6072_s0 + $0x28] sm:$0xff]  ;;  %v3165_v27 = vpack.c.bf16 %v517_v23, %v514_v22  ;;  %v516_v29 = vld [vmem:[%s6073_s4 + $0x78] sm:$0xff]  ;;  %v523_v31 = vld [vmem:[%s6073_s4 + $0xb0] sm:$0xff]  ;;  %3293 = vmatpush1.bf16.msra.mxu1 %v3159_v18  ;;  %v3840_v22 = vmov 0.0  }
   0x9   :  { %3156 = vmatpush3.bf16.msra.mxu0 %v3153_v6  ;;  %v520_v30 = vld [vmem:[%s6073_s4 + $0x98] sm:$0xff]  ;;  %3286 = vmatprep.subr.bf16.mxu1 %v3161_v19  ;;  %v3167_v33 = vpack.c.bf16 %v516_v29, %v513_v28  ;;  %v112_v34 = vld [vmem:[%s6072_s0 + $0x40] sm:$0xff]  ;;  %v519_v36 = vld [vmem:[%s6073_s4 + $0x90] sm:$0xff] }
   0xa   :  { %3158 = vmatprep.subr.bf16.mxu0 %v3157_v14  ;;  %v111_v32 = vld [vmem:[%s6072_s0 + $0x38] sm:$0xff]  ;;  %v3169_v35 = vpack.c.bf16 %v523_v31, %v520_v30  ;;  %v522_v37 = vld [vmem:[%s6073_s4 + $0xa8] sm:$0xff]  ;;  %v529_v39 = vld [vmem:[%s6073_s4 + $0xe0] sm:$0xff]  ;;  %696 = vmatprep.mubr.f32.mxu1 %v3840_v22 }
   0xb   :  { %v526_v38 = vld [vmem:[%s6073_s4 + $0xc8] sm:$0xff]  ;;  %v3171_v41 = vpack.c.bf16 %v522_v37, %v519_v36  ;;  %v114_v42 = vld [vmem:[%s6072_s0 + $0x50] sm:$0xff]  ;;  %v525_v44 = vld [vmem:[%s6073_s4 + $0xc0] sm:$0xff] }
   0xc   :  { %2942 = vmatmul.mubr.msk.f32.vlgmr.msra.gmra.mrb[0].mxu0 %vm147_vm0, %v105_v7  ;;  %3294 = vmatpush1.bf16.msra.mxu1 %v3163_v25  ;;  %v113_v40 = vld [vmem:[%s6072_s0 + $0x48] sm:$0xff]  ;;  %v3173_v43 = vpack.c.bf16 %v529_v39, %v526_v38  ;;  %v528_v45 = vld [vmem:[%s6073_s4 + $0xd8] sm:$0xff]  ;;  %v535_v47 = vld [vmem:[%s6073_s4 + $0x110] sm:$0xff] }
   0xd   :  { %2944 = vmatprep.mubr.msk.f32.mxu0 %vm147_vm0, %v106_v8  ;;  %3160 = vmatpush1.bf16.msra.mxu0 %v3159_v18  ;;  %v532_v46 = vld [vmem:[%s6073_s4 + $0xf8] sm:$0xff]  ;;  %v3175_v49 = vpack.c.bf16 %v528_v45, %v525_v44  ;;  %v116_v50 = vld [vmem:[%s6072_s0 + $0x60] sm:$0xff]  ;;  %v531_v52 = vld [vmem:[%s6073_s4 + $0xf0] sm:$0xff] }
   0xe   :  { %3162 = vmatprep.subr.bf16.mxu0 %v3161_v19  ;;  %3287 = vmatprep.subr.bf16.mxu1 %v3165_v27  ;;  %v115_v48 = vld [vmem:[%s6072_s0 + $0x58] sm:$0xff]  ;;  %v3177_v51 = vpack.c.bf16 %v535_v47, %v532_v46  ;;  %v534_v53 = vld [vmem:[%s6073_s4 + $0x108] sm:$0xff]  ;;  %v541_v55 = vld [vmem:[%s6073_s4 + $0x140] sm:$0xff] }
   0xf   :  { %v538_v54 = vld [vmem:[%s6073_s4 + $0x128] sm:$0xff]  ;;  %v3179_v57 = vpack.c.bf16 %v534_v53, %v531_v52  ;;  %v118_v58 = vld [vmem:[%s6072_s0 + $0x70] sm:$0xff]  ;;  %v537_v60 = vld [vmem:[%s6073_s4 + $0x120] sm:$0xff] }
  0x10   :  { %2945 = vmatmul.mubr.msk.f32.gmra.mrb[2].mxu0 %vm147_vm0, %v107_v9  ;;  %3295 = vmatpush1.bf16.msra.mxu1 %v3167_v33  ;;  %v117_v56 = vld [vmem:[%s6072_s0 + $0x68] sm:$0xff]  ;;  %v3181_v59 = vpack.c.bf16 %v541_v55, %v538_v54  ;;  %v540_v61 = vld [vmem:[%s6073_s4 + $0x138] sm:$0xff]  ;;  %v120_v0 = vld [vmem:[%s6072_s0 + $0x80] sm:$0xff] }
  0x11   :  { %2947 = vmatprep.mubr.msk.f32.mxu0 %vm147_vm0, %v108_v10  ;;  %3164 = vmatpush1.bf16.msra.mxu0 %v3163_v25  ;;  %v119_v62 = vld [vmem:[%s6072_s0 + $0x78] sm:$0xff]  ;;  %v3183_v63 = vpack.c.bf16 %v540_v61, %v537_v60  ;;  %v121_v1 = vld [vmem:[%s6072_s0 + $0x88] sm:$0xff]  ;;  %v122_v2 = vld [vmem:[%s6072_s0 + $0x90] sm:$0xff] }
  0x12   :  { %3166 = vmatprep.subr.bf16.mxu0 %v3165_v27  ;;  %3288 = vmatprep.subr.bf16.mxu1 %v3169_v35  ;;  %v123_v3 = vld [vmem:[%s6072_s0 + $0x98] sm:$0xff]  ;;  %v124_v4 = vld [vmem:[%s6072_s0 + $0xa0] sm:$0xff]  ;;  %v125_v5 = vld [vmem:[%s6072_s0 + $0xa8] sm:$0xff] }
  0x13   :  { %v126_v6 = vld [vmem:[%s6072_s0 + $0xb0] sm:$0xff]  ;;  %v127_v7 = vld [vmem:[%s6072_s0 + $0xb8] sm:$0xff]  ;;  %v128_v8 = vld [vmem:[%s6072_s0 + $0xc0] sm:$0xff] }
  0x14   :  { %2948 = vmatmul.mubr.msk.f32.gmra.mrb[4].mxu0 %vm147_vm0, %v109_v24  ;;  %3296 = vmatpush1.bf16.msra.mxu1 %v3171_v41  ;;  %v129_v9 = vld [vmem:[%s6072_s0 + $0xc8] sm:$0xff]  ;;  %v130_v10 = vld [vmem:[%s6072_s0 + $0xd0] sm:$0xff]  ;;  %v131_v11 = vld [vmem:[%s6072_s0 + $0xd8] sm:$0xff] }
  0x15   :  { %2950 = vmatprep.mubr.msk.f32.mxu0 %vm147_vm0, %v110_v26  ;;  %3168 = vmatpush1.bf16.msra.mxu0 %v3167_v33  ;;  %v132_v12 = vld [vmem:[%s6072_s0 + $0xe0] sm:$0xff]  ;;  %v133_v13 = vld [vmem:[%s6072_s0 + $0xe8] sm:$0xff]  ;;  %v134_v14 = vld [vmem:[%s6072_s0 + $0xf0] sm:$0xff] }
  0x16   :  { %3170 = vmatprep.subr.bf16.mxu0 %v3169_v35  ;;  %3289 = vmatprep.subr.bf16.mxu1 %v3173_v43  ;;  %v135_v15 = vld [vmem:[%s6072_s0 + $0xf8] sm:$0xff]  ;;  %v547_v17 = vld [vmem:[%s6073_s4 + $0x170] sm:$0xff]  ;;  %v546_v20 = vld [vmem:[%s6073_s4 + $0x168] sm:$0xff] }
  0x17   :  { %v544_v16 = vld [vmem:[%s6073_s4 + $0x158] sm:$0xff]  ;;  %v543_v19 = vld [vmem:[%s6073_s4 + $0x150] sm:$0xff]  ;;  %v506_v24 = vld [vmem:[%s6073_s4 + $0x28] sm:$0xff] }
  0x18   :  { %2951 = vmatmul.mubr.msk.f32.gmra.mrb[6].mxu0 %vm147_vm0, %v111_v32  ;;  %3297 = vmatpush1.bf16.msra.mxu1 %v3175_v49  ;;  %v3185_v18 = vpack.c.bf16 %v547_v17, %v544_v16  ;;  %v3187_v21 = vpack.c.bf16 %v546_v20, %v543_v19  ;;  %v503_v23 = vld [vmem:[%s6073_s4 + $0x10] sm:$0xff]  ;;  %v1049_v26 = vld [vmem:[%s6074_s6 + $0x8] sm:$0xff]  ;;  %v1052_v27 = vld [vmem:[%s6074_s6 + $0x20] sm:$0xff] }
  0x19   :  { %2953 = vmatprep.mubr.msk.f32.mxu0 %vm147_vm0, %v112_v34  ;;  %3172 = vmatpush1.bf16.msra.mxu0 %v3171_v41  ;;  %v3189_v25 = vpack.c.bf16 %v506_v24, %v503_v23  ;;  %v3221_v28 = vpack.c.bf16 %v1052_v27, %v1049_v26  ;;  %v4150_v29 = vld [vmem:[%s6075_s3] ss:$0 sm:$0xff]  ;;  %v512_v33 = vld [vmem:[%s6073_s4 + $0x58] sm:$0xff]  ;;  %v518_v41 = vld [vmem:[%s6073_s4 + $0x88] sm:$0xff] }
  0x1a   :  { %3174 = vmatprep.subr.bf16.mxu0 %v3173_v43  ;;  %3290 = vmatprep.subr.bf16.mxu1 %v3177_v51  ;;  %v509_v32 = vld [vmem:[%s6073_s4 + $0x40] sm:$0xff]  ;;  %v527_v54 = vld [vmem:[%s6073_s4 + $0xd0] sm:$0xff]  ;;  %v530_v55 = vld [vmem:[%s6073_s4 + $0xe8] sm:$0xff] }
  0x1b   :  { %v3193_v38 = vpack.c.bf16 %v512_v33, %v509_v32  ;;  %v521_v47 = vld [vmem:[%s6073_s4 + $0xa0] sm:$0xff]  ;;  %v1054_v17 = vld [vmem:[%s6074_s6 + $0x30] sm:$0xff]  ;;  %v548_v24 = vld [vmem:[%s6073_s4 + $0x178] sm:$0xff] }
  0x1c   :  { %2954 = vmatmul.mubr.msk.f32.gmra.mrb[8].mxu0 %vm147_vm0, %v113_v40  ;;  %3298 = vmatpush1.bf16.msra.mxu1 %v3179_v57  ;;  %v515_v40 = vld [vmem:[%s6073_s4 + $0x70] sm:$0xff]  ;;  %v533_v61 = vld [vmem:[%s6073_s4 + $0x100] sm:$0xff] }
  0x1d   :  { %2956 = vmatprep.mubr.msk.f32.mxu0 %vm147_vm0, %v114_v42  ;;  %3176 = vmatpush1.bf16.msra.mxu0 %v3175_v49  ;;  %v3197_v45 = vpack.c.bf16 %v518_v41, %v515_v40  ;;  %v1064_v26 = vld [vmem:[%s6074_s6 + $0x80] sm:$0xff]  ;;  %v1063_v41 = vld [vmem:[%s6074_s6 + $0x78] sm:$0xff] }
  0x1e   :  { %3178 = vmatprep.subr.bf16.mxu0 %v3177_v51  ;;  %3291 = vmatprep.subr.bf16.mxu1 %v3181_v59  ;;  %v1060_v40 = vld [vmem:[%s6074_s6 + $0x60] sm:$0xff] }
  0x20   :  { %2957 = vmatmul.mubr.msk.f32.gmra.mrb[10].mxu0 %vm147_vm0, %v115_v48  ;;  %3299 = vmatpush1.bf16.msra.mxu1 %v3183_v63  ;;  %v524_v48 = vld [vmem:[%s6073_s4 + $0xb8] sm:$0xff] }
  0x21   :  { %2959 = vmatprep.mubr.msk.f32.mxu0 %vm147_vm0, %v116_v50  ;;  %3180 = vmatpush1.bf16.msra.mxu0 %v3179_v57  ;;  %v3201_v52 = vpack.c.bf16 %v524_v48, %v521_v47  ;;  %v1050_v47 = vld [vmem:[%s6074_s6 + $0x10] sm:$0xff]  ;;  %v1053_v48 = vld [vmem:[%s6074_s6 + $0x28] sm:$0xff] }
  0x22   :  { %3182 = vmatprep.subr.bf16.mxu0 %v3181_v59  ;;  %3292 = vmatprep.subr.bf16.mxu1 %v3185_v18  ;;  %v3205_v59 = vpack.c.bf16 %v530_v55, %v527_v54  ;;  %v3231_v55 = vpack.c.bf16 %v1063_v41, %v1060_v40  ;;  %v1085_v40 = vld [vmem:[%s6074_s6 + $0x128] sm:$0xff]  ;;  %v1088_v41 = vld [vmem:[%s6074_s6 + $0x140] sm:$0xff] }
  0x24   :  { %2960 = vmatmul.mubr.msk.f32.gmra.mrb[12].mxu0 %vm147_vm0, %v117_v56  ;;  %3300 = vmatpush1.bf16.msra.mxu1 %v3187_v21 }
  0x25   :  { %2962 = vmatprep.mubr.msk.f32.mxu0 %vm147_vm0, %v118_v58  ;;  %3184 = vmatpush1.bf16.msra.mxu0 %v3183_v63  ;;  %v1048_v63 = vld [vmem:[%s6074_s6] sm:$0xff] }
  0x26   :  { %3186 = vmatprep.subr.bf16.mxu0 %v3185_v18  ;;  %3222 = vmatprep.subr.bf16.mxu1 %v3221_v28  ;;  %v1057_v18 = vld [vmem:[%s6074_s6 + $0x48] sm:$0xff] }
  0x27   :  { %v3227_v27 = vpack.c.bf16 %v1057_v18, %v1054_v17  ;;  %v1072_v17 = vld [vmem:[%s6074_s6 + $0xc0] sm:$0xff] }
  0x28   :  { %2963 = vmatmul.mubr.msk.f32.gmra.mrb[14].mxu0 %vm147_vm0, %v119_v62  ;;  %v536_v62 = vld [vmem:[%s6073_s4 + $0x118] sm:$0xff] }
  0x29   :  { %2965 = vmatprep.mubr.msk.f32.mxu0 %vm147_vm0, %v120_v0  ;;  %3188 = vmatpush1.bf16.msra.mxu0 %v3187_v21  ;;  %v1051_v0 = vld [vmem:[%s6074_s6 + $0x18] sm:$0xff]  ;;  %v545_v21 = vld [vmem:[%s6073_s4 + $0x160] sm:$0xff] }
  0x2a   :  { %3190 = vmatprep.subr.bf16.mxu0 %v3189_v25 }
  0x2c   :  { %2966 = vmatmul.mubr.msk.f32.gmra.mrb[16].mxu0 %vm147_vm0, %v121_v1 }
  0x2d   :  { %2968 = vmatprep.mubr.msk.f32.mxu0 %vm147_vm0, %v122_v2 }
  0x30   :  { %2969 = vmatmul.mubr.msk.f32.gmra.mrb[18].mxu0 %vm147_vm0, %v123_v3 }
  0x31   :  { %2971 = vmatprep.mubr.msk.f32.mxu0 %vm147_vm0, %v124_v4  ;;  %v3209_v4 = vpack.c.bf16 %v536_v62, %v533_v61  ;;  %v1066_v62 = vld [vmem:[%s6074_s6 + $0x90] sm:$0xff] }
  0x34   :  { %2972 = vmatmul.mubr.msk.f32.gmra.mrb[20].mxu0 %vm147_vm0, %v125_v5 }
  0x35   :  { %2974 = vmatprep.mubr.msk.f32.mxu0 %vm147_vm0, %v126_v6 }
  0x38   :  { %2975 = vmatmul.mubr.msk.f32.gmra.mrb[22].mxu0 %vm147_vm0, %v127_v7  ;;  %v1055_v7 = vld [vmem:[%s6074_s6 + $0x38] sm:$0xff] }
  0x39   :  { %2977 = vmatprep.mubr.msk.f32.mxu0 %vm147_vm0, %v128_v8  ;;  %v1058_v8 = vld [vmem:[%s6074_s6 + $0x50] sm:$0xff] }
  0x3a   :  { %v3225_v16 = vpack.c.bf16 %v1058_v8, %v1055_v7 }
  0x3c   :  { %2978 = vmatmul.mubr.msk.f32.gmra.mrb[24].mxu0 %vm147_vm0, %v129_v9  ;;  %v3223_v9 = vpack.c.bf16 %v1051_v0, %v1048_v63  ;;  %v1069_v63 = vld [vmem:[%s6074_s6 + $0xa8] sm:$0xff] }
  0x3d   :  { %2980 = vmatprep.mubr.msk.f32.mxu0 %vm147_vm0, %v130_v10  ;;  %v539_v10 = vld [vmem:[%s6073_s4 + $0x130] sm:$0xff] }
  0x40   :  { %2981 = vmatmul.mubr.msk.f32.gmra.mrb[26].mxu0 %vm147_vm0, %v131_v11  ;;  %v542_v11 = vld [vmem:[%s6073_s4 + $0x148] sm:$0xff] }
  0x41   :  { %2983 = vmatprep.mubr.msk.f32.mxu0 %vm147_vm0, %v132_v12  ;;  %v3213_v20 = vpack.c.bf16 %v542_v11, %v539_v10  ;;  %v3235_v11 = vpack.c.bf16 %v1069_v63, %v1066_v62  ;;  %v1084_v62 = vld [vmem:[%s6074_s6 + $0x120] sm:$0xff]  ;;  %v1087_v63 = vld [vmem:[%s6074_s6 + $0x138] sm:$0xff] }
  0x44   :  { %2984 = vmatmul.mubr.msk.f32.gmra.mrb[28].mxu0 %vm147_vm0, %v133_v13 }
  0x45   :  { %2986 = vmatprep.mubr.msk.f32.mxu0 %vm147_vm0, %v134_v14 }
  0x48   :  { %2987 = vmatmul.mubr.msk.f32.gmra.mrb[30].mxu0 %vm147_vm0, %v135_v15 }
  0x49   :  { %630 = vmatprep.mubr.f32.mxu0 %v3840_v22 }
  0xdf   :  { %v2943_v30 = vpop.f32.mrb[0].mxu0 }
  0xe0   :  { %v310_v31 = vpop.f32.mrb[1].mxu0  ;;  %v4162_v35 = vadd.f32 %v2943_v30, %v4150_v29 }
  0xe1   :  { %v4159_v34 = vadd.f32 %v4150_v29, %v310_v31 }
  0xe2   :  { %v470_v42 = vmax.f32 %v4162_v35, 0.0 }
  0xe3   :  { %v469_v36 = vmax.f32 %v4159_v34, 0.0  ;;  %v2946_v37 = vpop.f32.mrb[2].mxu0  ;;  %v1093_v34 = vld [vmem:[%s6074_s6 + $0x168] sm:$0xff] }
  0xe4   :  { %v320_v39 = vpop.f32.mrb[3].mxu0  ;;  %v4188_v49 = vadd.f32 %v2946_v37, %v4150_v29 }
  0xe5   :  { %631 = vmatmul.mubr.f32.vlgmr.msra.gmra.mrb[32].mxu0 %v469_v36  ;;  %v4176_v43 = vadd.f32 %v4150_v29, %v320_v39 }
  0xe6   :  { %636 = vmatprep.mubr.f32.mxu0 %v3840_v22  ;;  %3192 = vmatpush3.bf16.msra.mxu0 %v3189_v25  ;;  %v472_v56 = vmax.f32 %v4188_v49, 0.0  ;;  %v1061_v25 = vld [vmem:[%s6074_s6 + $0x68] sm:$0xff] }
  0xe7   :  { %v2949_v44 = vpop.f32.mrb[4].mxu0  ;;  %3194 = vmatprep.subr.bf16.mxu0 %v3193_v38  ;;  %v471_v50 = vmax.f32 %v4176_v43, 0.0  ;;  %v3229_v39 = vpack.c.bf16 %v1064_v26, %v1061_v25 }
  0xe8   :  { %v330_v46 = vpop.f32.mrb[5].mxu0  ;;  %v4224_v1 = vadd.f32 %v2949_v44, %v4150_v29  ;;  %v1067_v44 = vld [vmem:[%s6074_s6 + $0x98] sm:$0xff] }
  0xe9   :  { %637 = vmatmul.mubr.f32.gmra.mrb[34].mxu0 %v470_v42  ;;  %v4202_v57 = vadd.f32 %v4150_v29, %v330_v46  ;;  %v1070_v46 = vld [vmem:[%s6074_s6 + $0xb0] sm:$0xff] }
  0xea   :  { %642 = vmatprep.mubr.f32.mxu0 %v3840_v22  ;;  %3196 = vmatpush3.bf16.msra.mxu0 %v3193_v38  ;;  %v474_v13 = vmax.f32 %v4224_v1, 0.0  ;;  %v3217_v38 = vpack.c.bf16 %v548_v24, %v545_v21  ;;  %v3233_v61 = vpack.c.bf16 %v1070_v46, %v1067_v44 }
  0xeb   :  { %v2952_v51 = vpop.f32.mrb[6].mxu0  ;;  %3198 = vmatprep.subr.bf16.mxu0 %v3197_v45  ;;  %v473_v2 = vmax.f32 %v4202_v57, 0.0 }
  0xec   :  { %v340_v53 = vpop.f32.mrb[7].mxu0  ;;  %v4280_v28 = vadd.f32 %v2952_v51, %v4150_v29 }
  0xed   :  { %643 = vmatmul.mubr.f32.gmra.mrb[36].mxu0 %v471_v50  ;;  %v4250_v14 = vadd.f32 %v4150_v29, %v340_v53 }
  0xee   :  { %648 = vmatprep.mubr.f32.mxu0 %v3840_v22  ;;  %3200 = vmatpush3.bf16.msra.mxu0 %v3197_v45  ;;  %v476_v51 = vmax.f32 %v4280_v28, 0.0 }
  0xef   :  { %v4204_v58 = vpop.f32.mrb[8].mxu0  ;;  %3202 = vmatprep.subr.bf16.mxu0 %v3201_v52  ;;  %v475_v30 = vmax.f32 %v4250_v14, 0.0 }
  0xf0   :  { %v4206_v60 = vpop.f32.mrb[9].mxu0  ;;  %v4343_v7 = vadd.f32 %v4204_v58, %v4150_v29  ;;  %v1075_v58 = vld [vmem:[%s6074_s6 + $0xd8] sm:$0xff] }
  0xf1   :  { %649 = vmatmul.mubr.f32.gmra.mrb[38].mxu0 %v472_v56 }
  0xf2   :  { %654 = vmatprep.mubr.f32.mxu0 %v3840_v22  ;;  %3204 = vmatpush3.bf16.msra.mxu0 %v3201_v52  ;;  %v4317_v52 = vadd.f32 %v4150_v29, %v4206_v60  ;;  %v4326_v60 = vpack.c.bf16 %v1053_v48, %v1050_v47  ;;  %v478_v21 = vmax.f32 %v4343_v7, 0.0  ;;  %v1092_v7 = vld [vmem:[%s6074_s6 + $0x160] sm:$0xff] }
  0xf3   :  { %v2958_v3 = vpop.f32.mrb[10].mxu0  ;;  %3206 = vmatprep.subr.bf16.mxu0 %v3205_v59 }
  0xf4   :  { %v4228_v5 = vadd.f32 %v2958_v3, %v4150_v29  ;;  %v4230_v6 = vpop.f32.mrb[11].mxu0  ;;  %v1073_v3 = vld [vmem:[%s6074_s6 + $0xc8] sm:$0xff]  ;;  %v477_v8 = vmax.f32 %v4317_v52, 0.0 }
  0xf5   :  { %655 = vmatmul.mubr.f32.gmra.mrb[40].mxu0 %v473_v2  ;;  %v4376_v24 = vadd.f32 %v4150_v29, %v4230_v6  ;;  %v1089_v52 = vld [vmem:[%s6074_s6 + $0x148] sm:$0xff] }
  0xf6   :  { %v480_v12 = vmax.f32 %v4228_v5, 0.0  ;;  %660 = vmatprep.mubr.f32.mxu0 %v3840_v22  ;;  %3208 = vmatpush3.bf16.msra.mxu0 %v3205_v59 }
  0xf7   :  { %v2961_v15 = vpop.f32.mrb[12].mxu0  ;;  %3210 = vmatprep.subr.bf16.mxu0 %v3209_v4  ;;  %v479_v44 = vmax.f32 %v4376_v24, 0.0 }
  0xf8   :  { %v370_v19 = vpop.f32.mrb[13].mxu0  ;;  %697 = vmatmul.mubr.f32.vlgmr.msra.gmra.mrb[0].mxu1 %v480_v12  ;;  %v4284_v31 = vadd.f32 %v2961_v15, %v4150_v29 }
  0xf9   :  { %v4264_v23 = vadd.f32 %v4150_v29, %v370_v19  ;;  %661 = vmatmul.mubr.f32.gmra.mrb[42].mxu0 %v474_v13  ;;  %3224 = vmatpush1.bf16.msra.mxu1 %v3223_v9  ;;  %v1079_v19 = vld [vmem:[%s6074_s6 + $0xf8] sm:$0xff] }
  0xfa   :  { %666 = vmatprep.mubr.f32.mxu0 %v3840_v22  ;;  %702 = vmatprep.mubr.f32.mxu1 %v3840_v22  ;;  %v482_v53 = vmax.f32 %v4284_v31, 0.0 }
  0xfb   :  { %v481_v32 = vmax.f32 %v4264_v23, 0.0  ;;  %v2964_v33 = vpop.f32.mrb[14].mxu0  ;;  %3226 = vmatprep.subr.bf16.mxu1 %v3225_v16  ;;  %3212 = vmatpush3.bf16.msra.mxu0 %v3209_v4  ;;  %v1076_v4 = vld [vmem:[%s6074_s6 + $0xe0] sm:$0xff] }
  0xfc   :  { %v380_v37 = vpop.f32.mrb[15].mxu0  ;;  %3214 = vmatprep.subr.bf16.mxu0 %v3213_v20  ;;  %v4347_v9 = vadd.f32 %v2964_v33, %v4150_v29  ;;  %v3237_v16 = vpack.c.bf16 %v1076_v4, %v1073_v3 }
  0xfd   :  { %667 = vmatmul.mubr.f32.gmra.mrb[44].mxu0 %v475_v30  ;;  %703 = vmatmul.mubr.f32.gmra.mrb[2].mxu1 %v481_v32  ;;  %v4301_v45 = vadd.f32 %v4150_v29, %v380_v37 }
  0xfe   :  { %672 = vmatprep.mubr.f32.mxu0 %v3840_v22  ;;  %708 = vmatprep.mubr.f32.mxu1 %v3840_v22  ;;  %v484_v25 = vmax.f32 %v4347_v9, 0.0 }
  0xff   :  { %3228 = vmatpush1.bf16.msra.mxu1 %v3227_v27  ;;  %v2967_v54 = vpop.f32.mrb[16].mxu0  ;;  %3216 = vmatpush3.bf16.msra.mxu0 %v3213_v20  ;;  %v483_v0 = vmax.f32 %v4301_v45, 0.0  ;;  %v1082_v20 = vld [vmem:[%s6074_s6 + $0x110] sm:$0xff]  ;;  %v3239_v27 = vpack.c.bf16 %v1075_v58, %v1072_v17  ;;  %v1059_v17 = vld [vmem:[%s6074_s6 + $0x58] sm:$0xff] }
 0x100   :  { %v390_v59 = vpop.f32.mrb[17].mxu0  ;;  %3218 = vmatprep.subr.bf16.mxu0 %v3217_v38  ;;  %3230 = vmatprep.subr.bf16.mxu1 %v3229_v39  ;;  %v3241_v37 = vpack.c.bf16 %v1082_v20, %v1079_v19  ;;  %v1081_v39 = vld [vmem:[%s6074_s6 + $0x108] sm:$0xff]  ;;  %v4404_v46 = vadd.f32 %v2967_v54, %v4150_v29  ;;  %v1091_v54 = vld [vmem:[%s6074_s6 + $0x158] sm:$0xff]  ;;  %v3247_v19 = vpack.c.bf16 %v1087_v63, %v1084_v62 }
 0x101   :  { %673 = vmatmul.mubr.f32.gmra.mrb[46].mxu0 %v476_v51  ;;  %709 = vmatmul.mubr.f32.gmra.mrb[4].mxu1 %v482_v53  ;;  %v4363_v18 = vadd.f32 %v4150_v29, %v390_v59 }
 0x102   :  { %678 = vmatprep.mubr.f32.mxu0 %v3840_v22  ;;  %714 = vmatprep.mubr.f32.mxu1 %v3840_v22 }
 0x103   :  { %v4349_v10 = vpop.f32.mrb[18].mxu0  ;;  %3220 = vmatpush3.bf16.msra.mxu0 %v3217_v38  ;;  %3232 = vmatpush1.bf16.msra.mxu1 %v3231_v55  ;;  %v1078_v38 = vld [vmem:[%s6074_s6 + $0xf0] sm:$0xff]  ;;  %v485_v6 = vmax.f32 %v4363_v18, 0.0 }
 0x104   :  { %v400_v15 = vpop.f32.mrb[19].mxu0  ;;  %3234 = vmatprep.subr.bf16.mxu1 %v3233_v61  ;;  %3254 = vmatprep.subr.bf16.mxu0 %v4326_v60  ;;  %v3243_v48 = vpack.c.bf16 %v1081_v39, %v1078_v38  ;;  %v3245_v61 = vpack.c.bf16 %v1088_v41, %v1085_v40  ;;  %v1090_v38 = vld [vmem:[%s6074_s6 + $0x150] sm:$0xff]  ;;  %v4469_v35 = vadd.f32 %v4349_v10, %v4150_v29  ;;  %v1071_v10 = vld [vmem:[%s6074_s6 + $0xb8] sm:$0xff] }
 0x105   :  { %679 = vmatmul.mubr.f32.gmra.mrb[48].mxu0 %v477_v8  ;;  %715 = vmatmul.mubr.f32.gmra.mrb[6].mxu1 %v483_v0  ;;  %v4423_v3 = vadd.f32 %v4150_v29, %v400_v15  ;;  %v486_v15 = vmax.f32 %v4404_v46, 0.0  ;;  %v1062_v41 = vld [vmem:[%s6074_s6 + $0x70] sm:$0xff] }
 0x106   :  { %684 = vmatprep.mubr.f32.mxu0 %v3840_v22  ;;  %720 = vmatprep.mubr.f32.mxu1 %v3840_v22  ;;  %v488_v49 = vmax.f32 %v4469_v35, 0.0  ;;  %v4624_v46 = vld [vmem:[%s6076_s1 + $0x10] sm:$0xff]  ;;  %v56_v35 = vld [vmem:[%s6076_s1 + $0x80] sm:$0xff] }
 0x107   :  { %v4379_v26 = vpop.f32.mrb[20].mxu0  ;;  %3236 = vmatpush1.bf16.msra.mxu1 %v3235_v11  ;;  %v1094_v11 = vld [vmem:[%s6074_s6 + $0x170] sm:$0xff]  ;;  %v487_v39 = vmax.f32 %v4423_v3, 0.0  ;;  %v4644_v3 = vld [vmem:[%s6076_s1 + $0x20] sm:$0xff] }
 0x108   :  { %v4381_v33 = vpop.f32.mrb[21].mxu0  ;;  %3238 = vmatprep.subr.bf16.mxu1 %v3237_v16  ;;  %v1056_v16 = vld [vmem:[%s6074_s6 + $0x40] sm:$0xff]  ;;  %v4518_v1 = vadd.f32 %v4379_v26, %v4150_v29  ;;  %v1083_v26 = vld [vmem:[%s6074_s6 + $0x118] sm:$0xff] }
 0x109   :  { %685 = vmatmul.mubr.f32.gmra.mrb[50].mxu0 %v478_v21  ;;  %721 = vmatmul.mubr.f32.gmra.mrb[8].mxu1 %v484_v25  ;;  %v4481_v43 = vadd.f32 %v4150_v29, %v4381_v33 }
 0x10a   :  { %690 = vmatprep.mubr.f32.mxu0 %v3840_v22  ;;  %726 = vmatprep.mubr.f32.mxu1 %v3840_v22 }
 0x10b   :  { %v2976_v47 = vpop.f32.mrb[22].mxu0  ;;  %3240 = vmatpush1.bf16.msra.mxu1 %v3239_v27 }
 0x10c   :  { %v4407_v55 = vadd.f32 %v2976_v47, %v4150_v29  ;;  %v420_v59 = vpop.f32.mrb[23].mxu0  ;;  %3242 = vmatprep.subr.bf16.mxu1 %v3241_v37  ;;  %v3249_v37 = vpack.c.bf16 %v1094_v11, %v1091_v54  ;;  %v1065_v47 = vld [vmem:[%s6074_s6 + $0x88] sm:$0xff]  ;;  %v489_v11 = vmax.f32 %v4481_v43, 0.0  ;;  %v62_v43 = vld [vmem:[%s6076_s1 + $0xb0] sm:$0xff] }
 0x10d   :  { %691 = vmatmul.mubr.f32.gmra.mrb[52].mxu0 %v479_v44  ;;  %727 = vmatmul.mubr.f32.gmra.mrb[10].mxu1 %v485_v6  ;;  %v4426_v4 = vadd.f32 %v4150_v29, %v420_v59  ;;  %v3261_v62 = vpack.c.bf16 %v1065_v47, %v1062_v41  ;;  %v54_v41 = vld [vmem:[%s6076_s1 + $0x70] sm:$0xff]  ;;  %v55_v47 = vld [vmem:[%s6076_s1 + $0x78] sm:$0xff] }
 0x10e   :  { %3021 = vmatprep.mubr.f32.mxu0 %v469_v36  ;;  %732 = vmatprep.mubr.f32.mxu1 %v3840_v22  ;;  %v3257_v36 = vpack.c.bf16 %v1059_v17, %v1056_v16  ;;  %v1077_v16 = vld [vmem:[%s6074_s6 + $0xe8] sm:$0xff]  ;;  %v492_v24 = vmax.f32 %v4407_v55, 0.0  ;;  %v4636_v55 = vld [vmem:[%s6076_s1 + $0x18] sm:$0xff] }
 0x10f   :  { %v2979_v58 = vpop.f32.mrb[24].mxu0  ;;  %3244 = vmatpush1.bf16.msra.mxu1 %v3243_v48  ;;  %v3251_v48 = vpack.c.bf16 %v1093_v34, %v1090_v38  ;;  %v4696_v38 = vld [vmem:[%s6076_s1 + $0x48] sm:$0xff]  ;;  %v50_v34 = vld [vmem:[%s6076_s1 + $0x50] sm:$0xff] }
 0x110   :  { %v4442_v20 = vadd.f32 %v2979_v58, %v4150_v29  ;;  %v430_v27 = vpop.f32.mrb[25].mxu0  ;;  %3246 = vmatprep.subr.bf16.mxu1 %v3245_v61 }
 0x111   :  { %733 = vmatmul.mubr.f32.gmra.mrb[12].mxu1 %v486_v15  ;;  %3022 = vmatmul.mubr.f32.vlgmr.msra.gmra.mrb[54].mxu0 %v470_v42  ;;  %v4456_v40 = vadd.f32 %v4150_v29, %v430_v27  ;;  %v490_v27 = vmax.f32 %v4518_v1, 0.0 }
 0x112   :  { %3024 = vmatprep.mubr.f32.mxu0 %v471_v50  ;;  %738 = vmatprep.mubr.f32.mxu1 %v3840_v22 }
 0x113   :  { %v2982_v42 = vpop.f32.mrb[26].mxu0  ;;  %3248 = vmatpush1.bf16.msra.mxu1 %v3247_v19  ;;  %3256 = vmatpush3.bf16.msra.mxu0 %v4326_v60  ;;  %v1068_v60 = vld [vmem:[%s6074_s6 + $0xa0] sm:$0xff]  ;;  %v493_v5 = vmax.f32 %v4456_v40, 0.0  ;;  %v53_v40 = vld [vmem:[%s6076_s1 + $0x68] sm:$0xff] }
 0x114   :  { %v4473_v59 = vadd.f32 %v2982_v42, %v4150_v29  ;;  %v440_v61 = vpop.f32.mrb[27].mxu0  ;;  %3250 = vmatprep.subr.bf16.mxu1 %v3249_v37  ;;  %3258 = vmatprep.subr.bf16.mxu0 %v3257_v36  ;;  %v3265_v54 = vpack.c.bf16 %v1071_v10, %v1068_v60  ;;  %v4684_v37 = vld [vmem:[%s6076_s1 + $0x40] sm:$0xff]  ;;  %v57_v42 = vld [vmem:[%s6076_s1 + $0x88] sm:$0xff] }
 0x115   :  { %739 = vmatmul.mubr.f32.gmra.mrb[14].mxu1 %v487_v39  ;;  %3025 = vmatmul.mubr.f32.gmra.mrb[56].mxu0 %v472_v56  ;;  %v4484_v50 = vadd.f32 %v4150_v29, %v440_v61  ;;  %v60_v61 = vld [vmem:[%s6076_s1 + $0xa0] sm:$0xff]  ;;  %v65_v10 = vld [vmem:[%s6076_s1 + $0xc8] sm:$0xff] }
 0x116   :  { %3027 = vmatprep.mubr.f32.mxu0 %v473_v2  ;;  %744 = vmatprep.mubr.f32.mxu1 %v3840_v22  ;;  %v1074_v2 = vld [vmem:[%s6074_s6 + $0xd0] sm:$0xff]  ;;  %v496_v31 = vmax.f32 %v4473_v59, 0.0  ;;  %v59_v59 = vld [vmem:[%s6076_s1 + $0x98] sm:$0xff]  ;;  %v64_v60 = vld [vmem:[%s6076_s1 + $0xc0] sm:$0xff] }
 0x117   :  { %v2985_v56 = vpop.f32.mrb[28].mxu0  ;;  %3252 = vmatpush1.bf16.msra.mxu1 %v3251_v48  ;;  %3260 = vmatpush3.bf16.msra.mxu0 %v3257_v36  ;;  %v3269_v19 = vpack.c.bf16 %v1077_v16, %v1074_v2  ;;  %v495_v23 = vmax.f32 %v4484_v50, 0.0  ;;  %v51_v36 = vld [vmem:[%s6076_s1 + $0x58] sm:$0xff]  ;;  %v58_v48 = vld [vmem:[%s6076_s1 + $0x90] sm:$0xff] }
 0x118   :  { %v4497_v33 = vadd.f32 %v2985_v56, %v4150_v29  ;;  %v450_v63 = vpop.f32.mrb[29].mxu0  ;;  %3262 = vmatprep.subr.bf16.mxu0 %v3261_v62  ;;  %v63_v50 = vld [vmem:[%s6076_s1 + $0xb8] sm:$0xff] }
 0x119   :  { %745 = vmatmul.mubr.f32.gmra.mrb[16].mxu1 %v488_v49  ;;  %3028 = vmatmul.mubr.f32.gmra.mrb[58].mxu0 %v474_v13  ;;  %v4505_v57 = vadd.f32 %v4150_v29, %v450_v63  ;;  %v67_v56 = vld [vmem:[%s6076_s1 + $0xd8] sm:$0xff]  ;;  %v69_v63 = vld [vmem:[%s6076_s1 + $0xe8] sm:$0xff] }
 0x11a   :  { %3030 = vmatprep.mubr.f32.mxu0 %v475_v30  ;;  %750 = vmatprep.mubr.f32.mxu1 %v3840_v22  ;;  %v1080_v30 = vld [vmem:[%s6074_s6 + $0x100] sm:$0xff]  ;;  %v498_v45 = vmax.f32 %v4497_v33, 0.0 }
 0x11b   :  { %v2988_v13 = vpop.f32.mrb[30].mxu0  ;;  %3264 = vmatpush3.bf16.msra.mxu0 %v3261_v62  ;;  %v3273_v28 = vpack.c.bf16 %v1083_v26, %v1080_v30  ;;  %v61_v62 = vld [vmem:[%s6076_s1 + $0xa8] sm:$0xff]  ;;  %v68_v33 = vld [vmem:[%s6076_s1 + $0xe0] sm:$0xff] }
 0x11c   :  { %v4521_v17 = vadd.f32 %v2988_v13, %v4150_v29  ;;  %v460_v58 = vpop.f32.mrb[31].mxu0  ;;  %3266 = vmatprep.subr.bf16.mxu0 %v3265_v54 }
 0x11d   :  { %751 = vmatmul.mubr.f32.gmra.mrb[18].mxu1 %v489_v11  ;;  %3031 = vmatmul.mubr.f32.gmra.mrb[60].mxu0 %v476_v51  ;;  %v4528_v14 = vadd.f32 %v4150_v29, %v460_v58  ;;  %v491_v29 = vmax.f32 %v4426_v4, 0.0  ;;  %v1086_v51 = vld [vmem:[%s6074_s6 + $0x130] sm:$0xff]  ;;  %v4656_v4 = vld [vmem:[%s6076_s1 + $0x28] sm:$0xff] }
 0x11e   :  { %3033 = vmatprep.mubr.f32.mxu0 %v477_v8  ;;  %756 = vmatprep.mubr.f32.mxu1 %v3840_v22  ;;  %v3277_v8 = vpack.c.bf16 %v1089_v52, %v1086_v51  ;;  %v500_v18 = vmax.f32 %v4521_v17, 0.0 }
 0x11f   :  { %3268 = vmatpush3.bf16.msra.mxu0 %v3265_v54  ;;  %v70_v54 = vld [vmem:[%s6076_s1 + $0xf0] sm:$0xff] }
 0x120   :  { %3270 = vmatprep.subr.bf16.mxu0 %v3269_v19 }
 0x121   :  { %757 = vmatmul.mubr.f32.gmra.mrb[20].mxu1 %v490_v27  ;;  %3034 = vmatmul.mubr.f32.gmra.mrb[62].mxu0 %v478_v21  ;;  %v1095_v21 = vld [vmem:[%s6074_s6 + $0x178] sm:$0xff] }
 0x122   :  { %3036 = vmatprep.mubr.f32.mxu0 %v479_v44  ;;  %762 = vmatprep.mubr.f32.mxu1 %v3840_v22  ;;  %v3281_v44 = vpack.c.bf16 %v1095_v21, %v1092_v7 }
 0x123   :  { %3272 = vmatpush3.bf16.msra.mxu0 %v3269_v19 }
 0x124   :  { %3274 = vmatprep.subr.bf16.mxu0 %v3273_v28 }
 0x125   :  { %763 = vmatmul.mubr.f32.gmra.mrb[22].mxu1 %v491_v29  ;;  %3037 = vmatmul.mubr.f32.gmra.mrb[64].mxu0 %v480_v12  ;;  %v494_v12 = vmax.f32 %v4442_v20, 0.0  ;;  %v4676_v20 = vld [vmem:[%s6076_s1 + $0x38] sm:$0xff] }
 0x126   :  { %3039 = vmatprep.mubr.f32.mxu0 %v481_v32  ;;  %768 = vmatprep.mubr.f32.mxu1 %v3840_v22  ;;  %v497_v32 = vmax.f32 %v4505_v57, 0.0 }
 0x127   :  { %3276 = vmatpush3.bf16.msra.mxu0 %v3273_v28 }
 0x128   :  { %3278 = vmatprep.subr.bf16.mxu0 %v3277_v8 }
 0x129   :  { %769 = vmatmul.mubr.f32.gmra.mrb[24].mxu1 %v492_v24  ;;  %3040 = vmatmul.mubr.f32.gmra.mrb[66].mxu0 %v482_v53  ;;  %v499_v53 = vmax.f32 %v4528_v14, 0.0 }
 0x12a   :  { %3042 = vmatprep.mubr.f32.mxu0 %v483_v0  ;;  %774 = vmatprep.mubr.f32.mxu1 %v3840_v22  ;;  %v37_v0 = vlaneseq }
 0x12b   :  { %3280 = vmatpush3.bf16.msra.mxu0 %v3277_v8 }
 0x12c   :  { %3282 = vmatprep.subr.bf16.mxu0 %v3281_v44  ;;  %v4596_v9 = vand.u32 127, %v37_v0 }
 0x12d   :  { %775 = vmatmul.mubr.f32.gmra.mrb[26].mxu1 %v493_v5  ;;  %3043 = vmatmul.mubr.f32.gmra.mrb[68].mxu0 %v484_v25  ;;  %v4604_v25 = vld [vmem:[%s6076_s1] sm:$0xff] }
 0x12e   :  { %3045 = vmatprep.mubr.f32.mxu0 %v485_v6  ;;  %780 = vmatprep.mubr.f32.mxu1 %v3840_v22  ;;  %vm39_vm1 = vcmp.lt.s32.totalorder %v4596_v9, 32  ;;  %v4613_v6 = vld [vmem:[%s6076_s1 + $0x8] sm:$0xff]  ;;  %vm2409_vm2 = vcmp.eq.s32.totalorder %v4596_v9, 32 }
 0x12f   :  { %3284 = vmatpush3.bf16.msra.mxu0 %v3281_v44 }
 0x131   :  { %781 = vmatmul.mubr.f32.gmra.mrb[28].mxu1 %v494_v12  ;;  %3046 = vmatmul.mubr.f32.gmra.mrb[70].mxu0 %v486_v15  ;;  %v4664_v15 = vld [vmem:[%s6076_s1 + $0x30] sm:$0xff] }
 0x132   :  { %3048 = vmatprep.mubr.f32.mxu0 %v487_v39  ;;  %786 = vmatprep.mubr.f32.mxu1 %v3840_v22  ;;  %v52_v39 = vld [vmem:[%s6076_s1 + $0x60] sm:$0xff] }
 0x135   :  { %787 = vmatmul.mubr.f32.gmra.mrb[30].mxu1 %v495_v23  ;;  %3049 = vmatmul.mubr.f32.gmra.mrb[72].mxu0 %v488_v49  ;;  %v66_v49 = vld [vmem:[%s6076_s1 + $0xd0] sm:$0xff] }
 0x136   :  { %3051 = vmatprep.mubr.f32.mxu0 %v489_v11  ;;  %792 = vmatprep.mubr.f32.mxu1 %v3840_v22  ;;  %v71_v11 = vld [vmem:[%s6076_s1 + $0xf8] sm:$0xff] }
 0x139   :  { %793 = vmatmul.mubr.f32.gmra.mrb[32].mxu1 %v496_v31  ;;  %3052 = vmatmul.mubr.f32.gmra.mrb[74].mxu0 %v490_v27 }
 0x13a   :  { %3054 = vmatprep.mubr.f32.mxu0 %v491_v29  ;;  %798 = vmatprep.mubr.f32.mxu1 %v3840_v22 }
 0x13d   :  { %799 = vmatmul.mubr.f32.gmra.mrb[34].mxu1 %v497_v32  ;;  %3055 = vmatmul.mubr.f32.gmra.mrb[76].mxu0 %v492_v24 }
 0x13e   :  { %3057 = vmatprep.mubr.f32.mxu0 %v493_v5  ;;  %804 = vmatprep.mubr.f32.mxu1 %v3840_v22 }
 0x141   :  { %805 = vmatmul.mubr.f32.gmra.mrb[36].mxu1 %v498_v45  ;;  %3058 = vmatmul.mubr.f32.gmra.mrb[78].mxu0 %v494_v12 }
 0x142   :  { %3060 = vmatprep.mubr.f32.mxu0 %v495_v23  ;;  %810 = vmatprep.mubr.f32.mxu1 %v3840_v22 }
 0x145   :  { %811 = vmatmul.mubr.f32.gmra.mrb[38].mxu1 %v499_v53  ;;  %3061 = vmatmul.mubr.f32.gmra.mrb[80].mxu0 %v496_v31 }
 0x146   :  { %3063 = vmatprep.mubr.f32.mxu0 %v497_v32  ;;  %816 = vmatprep.mubr.f32.mxu1 %v3840_v22 }
 0x149   :  { %817 = vmatmul.mubr.f32.gmra.mrb[40].mxu1 %v500_v18  ;;  %3064 = vmatmul.mubr.f32.gmra.mrb[82].mxu0 %v498_v45 }
 0x14a   :  { %3066 = vmatprep.mubr.f32.mxu0 %v499_v53  ;;  %1177 = vmatprep.mubr.f32.mxu1 %v3840_v22 }
 0x14d   :  { %3067 = vmatmul.mubr.f32.gmra.mrb[84].mxu0 %v500_v18  ;;  %2671 = vmatmul.mubr.msk.f32.vlgmr.msra.gmra.mrb[42].mxu1 %vm39_vm1, %v4604_v25 }
 0x14e   :  { %1183 = vmatprep.mubr.f32.mxu1 %v3840_v22  ;;  %3101 = vmatprep.mubr.msk.f32.mxu0 %vm39_vm1, %v4604_v25 }
 0x151   :  { %2672 = vmatmul.mubr.msk.f32.gmra.mrb[44].mxu1 %vm39_vm1, %v4613_v6  ;;  %3102 = vmatmul.mubr.msk.f32.vlgmr.msra.gmra.mrb[86].mxu0 %vm39_vm1, %v4613_v6 }
 0x152   :  { %1189 = vmatprep.mubr.f32.mxu1 %v3840_v22  ;;  %3104 = vmatprep.mubr.msk.f32.mxu0 %vm39_vm1, %v4624_v46 }
 0x155   :  { %2673 = vmatmul.mubr.msk.f32.gmra.mrb[46].mxu1 %vm39_vm1, %v4624_v46  ;;  %3105 = vmatmul.mubr.msk.f32.gmra.mrb[88].mxu0 %vm39_vm1, %v4636_v55 }
 0x156   :  { %1195 = vmatprep.mubr.f32.mxu1 %v3840_v22  ;;  %3107 = vmatprep.mubr.msk.f32.mxu0 %vm39_vm1, %v4644_v3 }
 0x159   :  { %2674 = vmatmul.mubr.msk.f32.gmra.mrb[48].mxu1 %vm39_vm1, %v4636_v55  ;;  %3108 = vmatmul.mubr.msk.f32.gmra.mrb[90].mxu0 %vm39_vm1, %v4656_v4 }
 0x15a   :  { %1201 = vmatprep.mubr.f32.mxu1 %v3840_v22  ;;  %3110 = vmatprep.mubr.msk.f32.mxu0 %vm39_vm1, %v4664_v15 }
 0x15d   :  { %2675 = vmatmul.mubr.msk.f32.gmra.mrb[50].mxu1 %vm39_vm1, %v4644_v3  ;;  %3111 = vmatmul.mubr.msk.f32.gmra.mrb[92].mxu0 %vm39_vm1, %v4676_v20 }
 0x15e   :  { %1207 = vmatprep.mubr.f32.mxu1 %v3840_v22  ;;  %3113 = vmatprep.mubr.msk.f32.mxu0 %vm39_vm1, %v4684_v37 }
 0x161   :  { %2676 = vmatmul.mubr.msk.f32.gmra.mrb[52].mxu1 %vm39_vm1, %v4656_v4  ;;  %3114 = vmatmul.mubr.msk.f32.gmra.mrb[94].mxu0 %vm39_vm1, %v4696_v38 }
 0x162   :  { %1213 = vmatprep.mubr.f32.mxu1 %v3840_v22  ;;  %3116 = vmatprep.mubr.msk.f32.mxu0 %vm39_vm1, %v50_v34 }
 0x165   :  { %2677 = vmatmul.mubr.msk.f32.gmra.mrb[54].mxu1 %vm39_vm1, %v4664_v15  ;;  %3117 = vmatmul.mubr.msk.f32.gmra.mrb[96].mxu0 %vm39_vm1, %v51_v36 }
 0x166   :  { %1219 = vmatprep.mubr.f32.mxu1 %v3840_v22  ;;  %3119 = vmatprep.mubr.msk.f32.mxu0 %vm39_vm1, %v52_v39 }
 0x169   :  { %2678 = vmatmul.mubr.msk.f32.gmra.mrb[56].mxu1 %vm39_vm1, %v4676_v20  ;;  %3120 = vmatmul.mubr.msk.f32.gmra.mrb[98].mxu0 %vm39_vm1, %v53_v40 }
 0x16a   :  { %1225 = vmatprep.mubr.f32.mxu1 %v3840_v22  ;;  %3122 = vmatprep.mubr.msk.f32.mxu0 %vm39_vm1, %v54_v41 }
 0x16d   :  { %2679 = vmatmul.mubr.msk.f32.gmra.mrb[58].mxu1 %vm39_vm1, %v4684_v37  ;;  %3123 = vmatmul.mubr.msk.f32.gmra.mrb[100].mxu0 %vm39_vm1, %v55_v47 }
 0x16e   :  { %1231 = vmatprep.mubr.f32.mxu1 %v3840_v22  ;;  %3125 = vmatprep.mubr.msk.f32.mxu0 %vm39_vm1, %v56_v35 }
 0x171   :  { %2680 = vmatmul.mubr.msk.f32.gmra.mrb[60].mxu1 %vm39_vm1, %v4696_v38  ;;  %3126 = vmatmul.mubr.msk.f32.gmra.mrb[102].mxu0 %vm39_vm1, %v57_v42 }
 0x172   :  { %1237 = vmatprep.mubr.f32.mxu1 %v3840_v22  ;;  %3128 = vmatprep.mubr.msk.f32.mxu0 %vm39_vm1, %v58_v48 }
 0x175   :  { %2681 = vmatmul.mubr.msk.f32.gmra.mrb[62].mxu1 %vm39_vm1, %v50_v34  ;;  %3129 = vmatmul.mubr.msk.f32.gmra.mrb[104].mxu0 %vm39_vm1, %v59_v59 }
 0x176   :  { %1243 = vmatprep.mubr.f32.mxu1 %v3840_v22  ;;  %3131 = vmatprep.mubr.msk.f32.mxu0 %vm39_vm1, %v60_v61 }
 0x179   :  { %2682 = vmatmul.mubr.msk.f32.gmra.mrb[0].mxu1 %vm39_vm1, %v51_v36  ;;  %3132 = vmatmul.mubr.msk.f32.gmra.mrb[106].mxu0 %vm39_vm1, %v61_v62 }
 0x17a   :  { %1249 = vmatprep.mubr.f32.mxu1 %v3840_v22  ;;  %3134 = vmatprep.mubr.msk.f32.mxu0 %vm39_vm1, %v62_v43 }
 0x17d   :  { %2683 = vmatmul.mubr.msk.f32.gmra.mrb[2].mxu1 %vm39_vm1, %v52_v39  ;;  %3135 = vmatmul.mubr.msk.f32.gmra.mrb[108].mxu0 %vm39_vm1, %v63_v50 }
 0x17e   :  { %1255 = vmatprep.mubr.f32.mxu1 %v3840_v22  ;;  %3137 = vmatprep.mubr.msk.f32.mxu0 %vm39_vm1, %v64_v60 }
 0x181   :  { %2684 = vmatmul.mubr.msk.f32.gmra.mrb[4].mxu1 %vm39_vm1, %v53_v40  ;;  %3138 = vmatmul.mubr.msk.f32.gmra.mrb[110].mxu0 %vm39_vm1, %v65_v10  ;;  %v4963_v40 = vshrl.u32 %v37_v0, 7 }
 0x182   :  { %1261 = vmatprep.mubr.f32.mxu1 %v3840_v22  ;;  %3140 = vmatprep.mubr.msk.f32.mxu0 %vm39_vm1, %v66_v49 }
 0x185   :  { %2685 = vmatmul.mubr.msk.f32.gmra.mrb[6].mxu1 %vm39_vm1, %v54_v41  ;;  %3141 = vmatmul.mubr.msk.f32.gmra.mrb[112].mxu0 %vm39_vm1, %v67_v56 }
 0x186   :  { %1267 = vmatprep.mubr.f32.mxu1 %v3840_v22  ;;  %3143 = vmatprep.mubr.msk.f32.mxu0 %vm39_vm1, %v68_v33 }
 0x189   :  { %2686 = vmatmul.mubr.msk.f32.gmra.mrb[8].mxu1 %vm39_vm1, %v55_v47  ;;  %3144 = vmatmul.mubr.msk.f32.gmra.mrb[114].mxu0 %vm39_vm1, %v69_v63  ;;  %v6082_v47 = vsub.s32 2, %v4963_v40 }
 0x18a   :  { %1273 = vmatprep.mubr.f32.mxu1 %v3840_v22  ;;  %3146 = vmatprep.mubr.msk.f32.mxu0 %vm39_vm1, %v70_v54 }
 0x18d   :  { %2687 = vmatmul.mubr.msk.f32.gmra.mrb[10].mxu1 %vm39_vm1, %v56_v35  ;;  %3147 = vmatmul.mubr.msk.f32.gmra.mrb[116].mxu0 %vm39_vm1, %v71_v11 }
 0x18e   :  { %1279 = vmatprep.mubr.f32.mxu1 %v3840_v22 }
 0x191   :  { %2688 = vmatmul.mubr.msk.f32.gmra.mrb[12].mxu1 %vm39_vm1, %v57_v42 }
 0x192   :  { %1285 = vmatprep.mubr.f32.mxu1 %v3840_v22 }
 0x195   :  { %2689 = vmatmul.mubr.msk.f32.gmra.mrb[14].mxu1 %vm39_vm1, %v58_v48  ;;  %v549_v48 = vld [vmem:[%s6077_s5] sm:$0x7] }
 0x196   :  { %1291 = vmatprep.mubr.f32.mxu1 %v3840_v22 }
 0x199   :  { %2690 = vmatmul.mubr.msk.f32.gmra.mrb[16].mxu1 %vm39_vm1, %v59_v59  ;;  %v4977_v59 = vrot.slane %v549_v48, %v6082_v47 }
 0x19a   :  { %1297 = vmatprep.mubr.f32.mxu1 %v3840_v22 }
 0x19d   :  { %2691 = vmatmul.mubr.msk.f32.gmra.mrb[18].mxu1 %vm39_vm1, %v60_v61 }
 0x19e   :  { %1303 = vmatprep.mubr.f32.mxu1 %v3840_v22 }
 0x1a1   :  { %2692 = vmatmul.mubr.msk.f32.gmra.mrb[20].mxu1 %vm39_vm1, %v61_v62 }
 0x1a2   :  { %1309 = vmatprep.mubr.f32.mxu1 %v3840_v22 }
 0x1a5   :  { %2693 = vmatmul.mubr.msk.f32.gmra.mrb[22].mxu1 %vm39_vm1, %v62_v43 }
 0x1a6   :  { %1315 = vmatprep.mubr.f32.mxu1 %v3840_v22 }
 0x1a9   :  { %2694 = vmatmul.mubr.msk.f32.gmra.mrb[24].mxu1 %vm39_vm1, %v63_v50 }
 0x1aa   :  { %1321 = vmatprep.mubr.f32.mxu1 %v3840_v22 }
 0x1ad   :  { %2695 = vmatmul.mubr.msk.f32.gmra.mrb[26].mxu1 %vm39_vm1, %v64_v60 }
 0x1ae   :  { %1327 = vmatprep.mubr.f32.mxu1 %v3840_v22 }
 0x1b1   :  { %2696 = vmatmul.mubr.msk.f32.gmra.mrb[28].mxu1 %vm39_vm1, %v65_v10 }
 0x1b2   :  { %1333 = vmatprep.mubr.f32.mxu1 %v3840_v22 }
 0x1b5   :  { %2697 = vmatmul.mubr.msk.f32.gmra.mrb[30].mxu1 %vm39_vm1, %v66_v49 }
 0x1b6   :  { %1339 = vmatprep.mubr.f32.mxu1 %v3840_v22 }
 0x1b8   :  { %v4882_v57 = vpop.f32.mrb[32].mxu0 }
 0x1b9   :  { %v4884_v2 = vpop.f32.mrb[33].mxu0  ;;  %2698 = vmatmul.mubr.msk.f32.gmra.mrb[32].mxu1 %vm39_vm1, %v67_v56 }
 0x1ba   :  { %1345 = vmatprep.mubr.f32.mxu1 %v3840_v22 }
 0x1bc   :  { %v4889_v16 = vpop.f32.mrb[34].mxu0 }
 0x1bd   :  { %v4891_v1 = vpop.f32.mrb[35].mxu0  ;;  %2699 = vmatmul.mubr.msk.f32.gmra.mrb[34].mxu1 %vm39_vm1, %v68_v33 }
 0x1be   :  { %1351 = vmatprep.mubr.f32.mxu1 %v3840_v22 }
 0x1c0   :  { %v4896_v13 = vpop.f32.mrb[36].mxu0 }
 0x1c1   :  { %v4898_v17 = vpop.f32.mrb[37].mxu0  ;;  %2700 = vmatmul.mubr.msk.f32.gmra.mrb[36].mxu1 %vm39_vm1, %v69_v63 }
 0x1c2   :  { %1357 = vmatprep.mubr.f32.mxu1 %v3840_v22 }
 0x1c4   :  { %v4903_v58 = vpop.f32.mrb[38].mxu0 }
 0x1c5   :  { %v4905_v19 = vpop.f32.mrb[39].mxu0  ;;  %2701 = vmatmul.mubr.msk.f32.gmra.mrb[38].mxu1 %vm39_vm1, %v70_v54 }
 0x1c6   :  { %1363 = vmatprep.mubr.f32.mxu1 %v3840_v22 }
 0x1c8   :  { %v4910_v14 = vpop.f32.mrb[40].mxu0 }
 0x1c9   :  { %v4912_v30 = vpop.f32.mrb[41].mxu0  ;;  %2702 = vmatmul.mubr.msk.f32.gmra.mrb[40].mxu1 %vm39_vm1, %v71_v11 }
 0x1cc   :  { %v4916_v26 = vpop.f32.mrb[42].mxu0 }
 0x1cd   :  { %v4918_v27 = vpop.f32.mrb[43].mxu0 }
 0x1d0   :  { %v4920_v28 = vpop.f32.mrb[44].mxu0 }
 0x1d1   :  { %v4922_v29 = vpop.f32.mrb[45].mxu0 }
 0x1d4   :  { %v4924_v51 = vpop.f32.mrb[46].mxu0 }
 0x1d5   :  { %v4926_v52 = vpop.f32.mrb[47].mxu0 }
 0x1d8   :  { %v4928_v22 = vpop.f32.mrb[48].mxu0 }
 0x1d9   :  { %v4930_v8 = vpop.f32.mrb[49].mxu0 }
 0x1dc   :  { %v4932_v7 = vpop.f32.mrb[50].mxu0 }
 0x1dd   :  { %v4934_v21 = vpop.f32.mrb[51].mxu0 }
 0x1e0   :  { %v4936_v24 = vpop.f32.mrb[52].mxu0 }
 0x1e1   :  { %v4938_v44 = vpop.f32.mrb[53].mxu0 }
 0x1e4   :  { %v4940_v5 = vpop.f32.mrb[54].mxu0 }
 0x1e5   :  { %v4942_v12 = vpop.f32.mrb[55].mxu0 }
 0x1e8   :  { %v4944_v23 = vpop.f32.mrb[56].mxu0 }
 0x1e9   :  { %v4946_v31 = vpop.f32.mrb[57].mxu0 }
 0x1ec   :  { %v4948_v32 = vpop.f32.mrb[58].mxu0 }
 0x1ed   :  { %v4950_v45 = vpop.f32.mrb[59].mxu0 }
 0x1f0   :  { %v4952_v53 = vpop.f32.mrb[60].mxu0 }
 0x1f1   :  { %v4954_v18 = vpop.f32.mrb[61].mxu0 }
 0x1f4   :  { %v4956_v34 = vpop.f32.mrb[62].mxu0 }
 0x1f5   :  { %v4958_v36 = vpop.f32.mrb[63].mxu0 }
 0x1f8   :  { %v4960_v39 = vpop.f32.mrb[64].mxu0 }
 0x1f9   :  { %6089 = vst [vmem:[#allocation3_spill] sm:$0xff] %v4960_v39  ;;  %v4965_v41 = vpop.f32.mrb[65].mxu0 }
 0x1fa   :  { %6090 = vst [vmem:[#allocation4_spill] sm:$0xff] %v4965_v41 }
 0x1fc   :  { %v4968_v35 = vpop.f32.mrb[66].mxu0 }
 0x1fd   :  { %6091 = vst [vmem:[#allocation5_spill] sm:$0xff] %v4968_v35  ;;  %v4970_v42 = vpop.f32.mrb[67].mxu0 }
 0x1fe   :  { %6092 = vst [vmem:[#allocation6_spill] sm:$0xff] %v4970_v42 }
 0x200   :  { %v3044_v61 = vpop.f32.mrb[68].mxu0 }
 0x201   :  { %v4980_v0 = vadd.f32 %v3044_v61, %v4977_v59  ;;  %v959_v62 = vpop.f32.mrb[69].mxu0 }
 0x202   :  { %v4983_v43 = vadd.f32 %v959_v62, %v4977_v59 }
 0x203   :  { %6093 = vst [vmem:[#allocation7_spill] sm:$0xff] %v4980_v0 }
 0x204   :  { %6094 = vst [vmem:[#allocation8_spill] sm:$0xff] %v4983_v43  ;;  %v3047_v50 = vpop.f32.mrb[70].mxu0 }
 0x205   :  { %v4986_v60 = vadd.f32 %v3047_v50, %v4977_v59  ;;  %v969_v10 = vpop.f32.mrb[71].mxu0 }
 0x206   :  { %v4989_v49 = vadd.f32 %v969_v10, %v4977_v59 }
 0x207   :  { %6095 = vst [vmem:[#allocation9_spill] sm:$0xff] %v4986_v60 }
 0x208   :  { %6096 = vst [vmem:[#allocation10_spill] sm:$0xff] %v4989_v49  ;;  %v3050_v56 = vpop.f32.mrb[72].mxu0 }
 0x209   :  { %v4992_v33 = vadd.f32 %v3050_v56, %v4977_v59  ;;  %v979_v63 = vpop.f32.mrb[73].mxu0 }
 0x20a   :  { %v4995_v54 = vadd.f32 %v979_v63, %v4977_v59  ;;  %v557_v63 = vsub.s32 1, %v4963_v40 }
 0x20b   :  { %6097 = vst [vmem:[#allocation11_spill] sm:$0xff] %v4992_v33  ;;  %v553_v33 = vsub.s32 0, %v4963_v40 }
 0x20c   :  { %6098 = vst [vmem:[#allocation12_spill] sm:$0xff] %v4995_v54  ;;  %v3053_v11 = vpop.f32.mrb[74].mxu0 }
 0x20d   :  { %v4998_v61 = vadd.f32 %v3053_v11, %v4977_v59  ;;  %v989_v62 = vpop.f32.mrb[75].mxu0 }
 0x20e   :  { %v5001_v50 = vadd.f32 %v989_v62, %v4977_v59 }
 0x20f   :  { %6099 = vst [vmem:[#allocation13_spill] sm:$0xff] %v4998_v61 }
 0x210   :  { %6100 = vst [vmem:[#allocation14_spill] sm:$0xff] %v5001_v50  ;;  %v3056_v47 = vpop.f32.mrb[76].mxu0  ;;  %v5017_v50 = vrot.slane %v549_v48, %v553_v33 }
 0x211   :  { %v5004_v10 = vadd.f32 %v3056_v47, %v4977_v59  ;;  %v999_v60 = vpop.f32.mrb[77].mxu0  ;;  %v5019_v47 = vrot.slane %v549_v48, %v557_v63 }
 0x212   :  { %v5007_v56 = vadd.f32 %v999_v60, %v4977_v59  ;;  %v1096_v60 = vld [vmem:[%s6078_s7] sm:$0x7] }
 0x213   :  { %6101 = vst [vmem:[#allocation15_spill] sm:$0xff] %v5004_v10  ;;  %v635_v48 = vadd.f32 %v4884_v2, %v5019_v47  ;;  %v5036_v0 = vrot.slane %v1096_v60, %v557_v63  ;;  %v647_v41 = vadd.f32 %v4898_v17, %v5019_v47  ;;  %v653_v17 = vadd.f32 %v4905_v19, %v5019_v47 }
 0x214   :  { %6102 = vst [vmem:[#allocation16_spill] sm:$0xff] %v5007_v56  ;;  %v3059_v54 = vpop.f32.mrb[78].mxu0 }
 0x215   :  { %v5012_v11 = vadd.f32 %v3059_v54, %v4977_v59  ;;  %v1009_v61 = vpop.f32.mrb[79].mxu0  ;;  %v3305_v63 = vadd.f32 %v5036_v0, %v635_v48 }
 0x216   :  { %v5015_v62 = vadd.f32 %v1009_v61, %v4977_v59  ;;  %v633_v61 = vadd.f32 %v4882_v57, %v5017_v50 }
 0x217   :  { %6103 = vst [vmem:[#allocation17_spill] sm:$0xff] %v5012_v11  ;;  %v5032_v11 = vrot.slane %v1096_v60, %v553_v33  ;;  %v641_v33 = vadd.f32 %v4891_v1, %v5019_v47 }
 0x218   :  { %6104 = vst [vmem:[#allocation18_spill] sm:$0xff] %v5015_v62  ;;  %v3062_v10 = vpop.f32.mrb[80].mxu0 }
 0x219   :  { %v5025_v56 = vadd.f32 %v3062_v10, %v4977_v59  ;;  %v1019_v49 = vpop.f32.mrb[81].mxu0  ;;  %v3302_v57 = vadd.f32 %v5032_v11, %v633_v61 }
 0x21a   :  { %v5028_v54 = vadd.f32 %v1019_v49, %v4977_v59  ;;  %v639_v49 = vadd.f32 %v4889_v16, %v5017_v50  ;;  %v645_v16 = vadd.f32 %v4896_v13, %v5017_v50  ;;  %v651_v13 = vadd.f32 %v4903_v58, %v5017_v50 }
 0x21b   :  { %6105 = vst [vmem:[#allocation19_spill] sm:$0xff] %v5025_v56 }
 0x21c   :  { %6106 = vst [vmem:[#allocation20_spill] sm:$0xff] %v5028_v54  ;;  %v3065_v62 = vpop.f32.mrb[82].mxu0  ;;  %v3308_v1 = vadd.f32 %v5032_v11, %v639_v49  ;;  %v3314_v49 = vadd.f32 %v5032_v11, %v645_v16  ;;  %v657_v16 = vadd.f32 %v4910_v14, %v5017_v50  ;;  %v663_v14 = vadd.f32 %v4916_v26, %v5017_v50 }
 0x21d   :  { %v5039_v43 = vadd.f32 %v3065_v62, %v4977_v59  ;;  %v1029_v10 = vpop.f32.mrb[83].mxu0 }
 0x21e   :  { %v5042_v56 = vadd.f32 %v1029_v10, %v4977_v59 }
 0x21f   :  { %6107 = vst [vmem:[#allocation21_spill] sm:$0xff] %v5039_v43 }
 0x220   :  { %6108 = vst [vmem:[#allocation22_spill] sm:$0xff] %v5042_v56  ;;  %v3068_v54 = vpop.f32.mrb[84].mxu0  ;;  %v1179_v2 = vpop.f32.mrb[42].mxu1 }
 0x221   :  { %v5051_v42 = vadd.f32 %v3068_v54, %v4977_v59  ;;  %v3303_v62 = vadd.f32 %v3302_v57, %v1179_v2  ;;  %v1039_v43 = vpop.f32.mrb[85].mxu0  ;;  %v1181_v35 = vpop.f32.mrb[43].mxu1  ;;  %v3311_v54 = vadd.f32 %v5036_v0, %v641_v33  ;;  %v3317_v33 = vadd.f32 %v5036_v0, %v647_v41 }
 0x222   :  { %v5054_v10 = vadd.f32 %v1039_v43, %v4977_v59  ;;  %v3306_v56 = vadd.f32 %v3305_v63, %v1181_v35  ;;  %v3320_v41 = vadd.f32 %v5032_v11, %v651_v13 }
 0x223   :  { %6109 = vst [vmem:[#allocation23_spill] sm:$0xff] %v5051_v42  ;;  %v2735_v61 = vmul.f32 -1.442695, %v3303_v62 }
 0x224   :  { %6110 = vst [vmem:[#allocation24_spill] sm:$0xff] %v5054_v10  ;;  %v1185_v48 = vpop.f32.mrb[44].mxu1  ;;  %v5062_v42 = vpop.f32.mrb[86].mxu0  ;;  %v2767_v63 = vmul.f32 -1.442695, %v3306_v56 }
 0x225   :  { %3497 = vpow2.f32 %v2735_v61  ;;  %v3309_v57 = vadd.f32 %v3308_v1, %v1185_v48  ;;  %v1187_v2 = vpop.f32.mrb[45].mxu1  ;;  %v5064_v43 = vpop.f32.mrb[87].mxu0 }
 0x226   :  { %v3312_v35 = vadd.f32 %v3311_v54, %v1187_v2  ;;  %v6111_v54 = vsub.s32 2, %v4963_v40  ;;  %v659_v2 = vadd.f32 %v4912_v30, %v5019_v47 }
 0x227   :  { %v2736_v62 = vmul.f32 -1.442695, %v3309_v57 }
 0x228   :  { %v1191_v10 = vpop.f32.mrb[46].mxu1  ;;  %v5072_v39 = vpop.f32.mrb[88].mxu0  ;;  %v5078_v58 = vrot.slane %v1096_v60, %v6111_v54  ;;  %v2768_v56 = vmul.f32 -1.442695, %v3312_v35  ;;  %v3323_v60 = vadd.f32 %v5036_v0, %v653_v17  ;;  %v5105_v17 = vsel %vm39_vm1, %v4604_v25, 0.0 }
 0x229   :  { %3499 = vpow2.f32 %v2736_v62  ;;  %v3315_v61 = vadd.f32 %v3314_v49, %v1191_v10  ;;  %v1193_v1 = vpop.f32.mrb[47].mxu1  ;;  %v5074_v48 = vpop.f32.mrb[89].mxu0  ;;  %v5087_v10 = vadd.f32 %v5032_v11, %v5017_v50  ;;  %v5118_v25 = vsel %vm39_vm1, %v4613_v6, 0.0 }
 0x22a   :  { %v3318_v57 = vadd.f32 %v3317_v33, %v1193_v1  ;;  %3501 = vpow2.f32 %v2767_v63  ;;  %v5096_v63 = vadd.f32 %v5036_v0, %v5019_v47  ;;  %v665_v33 = vadd.f32 %v4918_v27, %v5019_v47 }
 0x22b   :  { %v2737_v19 = vmul.f32 -1.442695, %v3315_v61  ;;  %v669_v1 = vadd.f32 %v4920_v28, %v5017_v50  ;;  %v675_v28 = vadd.f32 %v4924_v51, %v5017_v50  ;;  %v677_v51 = vadd.f32 %v4926_v52, %v5019_v47 }
 0x22c   :  { %v2769_v62 = vmul.f32 -1.442695, %v3318_v57  ;;  %v1197_v40 = vpop.f32.mrb[48].mxu1  ;;  %v5090_v35 = vpop.f32.mrb[90].mxu0  ;;  %v3326_v57 = vadd.f32 %v5032_v11, %v657_v16  ;;  %v683_v52 = vadd.f32 %v4930_v8, %v5019_v47 }
 0x22d   :  { %3503 = vpow2.f32 %v2737_v19  ;;  %v3321_v13 = vadd.f32 %v3320_v41, %v1197_v40  ;;  %v1199_v30 = vpop.f32.mrb[49].mxu1  ;;  %v5098_v49 = vpop.f32.mrb[91].mxu0  ;;  %v671_v19 = vadd.f32 %v4922_v29, %v5019_v47  ;;  %v3347_v8 = vadd.f32 %v5036_v0, %v677_v51 }
 0x22e   :  { %3505 = vpow2.f32 %v2768_v56  ;;  %v3324_v61 = vadd.f32 %v3323_v60, %v1199_v30  ;;  %v3329_v56 = vadd.f32 %v5036_v0, %v659_v2  ;;  %v3332_v60 = vadd.f32 %v5032_v11, %v663_v14 }
 0x22f   :  { %v3498_v26 = vpop.eup %3497  ;;  %3507 = vpow2.f32 %v2769_v62  ;;  %v2738_v54 = vmul.f32 -1.442695, %v3321_v13  ;;  %v3335_v2 = vadd.f32 %v5036_v0, %v665_v33  ;;  %v5129_v30 = vsel %vm39_vm1, %v4624_v46, 0.0 }
 0x230   :  { %v1723_v41 = vadd.f32 1.0, %v3498_v26  ;;  %v1203_v27 = vpop.f32.mrb[50].mxu1  ;;  %v5113_v40 = vpop.f32.mrb[92].mxu0  ;;  %6113 = vst [vmem:[#allocation26_spill] sm:$0xff] %v5129_v30  ;;  %v2770_v26 = vmul.f32 -1.442695, %v3324_v61  ;;  %v681_v14 = vadd.f32 %v4928_v22, %v5017_v50  ;;  %v3341_v33 = vadd.f32 %v5036_v0, %v671_v19 }
 0x231   :  { %6112 = vst [vmem:[#allocation25_spill] sm:$0xff] %v5113_v40  ;;  %3509 = vpow2.f32 %v2738_v54  ;;  %v3327_v62 = vadd.f32 %v3326_v57, %v1203_v27  ;;  %v1205_v16 = vpop.f32.mrb[51].mxu1  ;;  %v5123_v29 = vpop.f32.mrb[93].mxu0  ;;  %v3338_v57 = vadd.f32 %v5032_v11, %v669_v1  ;;  %v5142_v46 = vsel %vm39_vm1, %v4636_v55, 0.0 }
 0x232   :  { %3511 = vrcp.f32 %v1723_v41  ;;  %v3330_v13 = vadd.f32 %v3329_v56, %v1205_v16  ;;  %6115 = vst [vmem:[#allocation28_spill] sm:$0xff] %v5142_v46  ;;  %v3344_v22 = vadd.f32 %v5032_v11, %v675_v28  ;;  %v687_v19 = vadd.f32 %v4932_v7, %v5017_v50 }
 0x233   :  { %v3500_v6 = vpop.eup %3499  ;;  %v2739_v54 = vmul.f32 -1.442695, %v3327_v62  ;;  %v5160_v7 = vsel %vm39_vm1, %v4644_v3, 0.0  ;;  %v1437_v51 = vadd.f32 %v5064_v43, %v5078_v58 }
 0x234   :  { %v1724_v41 = vadd.f32 1.0, %v3500_v6  ;;  %v1209_v27 = vpop.f32.mrb[52].mxu1  ;;  %v5137_v56 = vpop.f32.mrb[94].mxu0  ;;  %v689_v6 = vadd.f32 %v4934_v21, %v5019_v47  ;;  %v2771_v30 = vmul.f32 -1.442695, %v3330_v13 }
 0x235   :  { %6114 = vst [vmem:[#allocation27_spill] sm:$0xff] %v5137_v56  ;;  %v3502_v16 = vpop.eup %3501  ;;  %3513 = vpow2.f32 %v2739_v54  ;;  %v3333_v61 = vadd.f32 %v3332_v60, %v1209_v27  ;;  %v1211_v1 = vpop.f32.mrb[53].mxu1 }
 0x236   :  { %v5147_v62 = vpop.f32.mrb[95].mxu0  ;;  %3515 = vrcp.f32 %v1724_v41  ;;  %v3336_v55 = vadd.f32 %v3335_v2, %v1211_v1  ;;  %v1947_v54 = vadd.f32 1.0, %v3502_v16  ;;  %v5171_v16 = vadd.f32 %v5036_v0, %v689_v6 }
 0x237   :  { %6116 = vst [vmem:[#allocation29_spill] sm:$0xff] %v5147_v62  ;;  %v3504_v56 = vpop.eup %3503  ;;  %3517 = vpow2.f32 %v2770_v26  ;;  %v2740_v46 = vmul.f32 -1.442695, %v3333_v61  ;;  %v3350_v62 = vadd.f32 %v5032_v11, %v681_v14  ;;  %v3353_v26 = vadd.f32 %v5036_v0, %v683_v52 }
 0x238   :  { %v3506_v60 = vpop.eup %3505  ;;  %v1725_v27 = vadd.f32 1.0, %v3504_v56  ;;  %v1215_v28 = vpop.f32.mrb[54].mxu1  ;;  %v5168_v56 = vadd.f32 %v5032_v11, %v687_v19 }
 0x239   :  { %v5155_v40 = vpop.f32.mrb[96].mxu0  ;;  %v3508_v21 = vpop.eup %3507  ;;  %3519 = vpow2.f32 %v2740_v46  ;;  %v3339_v2 = vadd.f32 %v3338_v57, %v1215_v28  ;;  %v890_v57 = vadd.f32 %v4942_v12, %v4977_v59  ;;  %v1948_v46 = vadd.f32 1.0, %v3506_v60 }
 0x23a   :  { %6117 = vst [vmem:[#allocation30_spill] sm:$0xff] %v5155_v40  ;;  %v1217_v13 = vpop.f32.mrb[55].mxu1  ;;  %v5165_v41 = vpop.f32.mrb[97].mxu0  ;;  %3521 = vrcp.f32 %v1725_v27  ;;  %v1949_v52 = vadd.f32 1.0, %v3508_v21  ;;  %v2772_v28 = vmul.f32 -1.442695, %v3336_v55  ;;  %v693_v12 = vadd.f32 %v4936_v24, %v5017_v50 }
 0x23b   :  { %6118 = vst [vmem:[#allocation31_spill] sm:$0xff] %v5165_v41  ;;  %v3342_v14 = vadd.f32 %v3341_v33, %v1217_v13  ;;  %v3510_v3 = vpop.eup %3509  ;;  %3523 = vpow2.f32 %v2771_v30  ;;  %v2741_v61 = vmul.f32 -1.442695, %v3339_v2  ;;  %v1442_v33 = vadd.f32 %v5062_v42, %v5078_v58 }
 0x23c   :  { %v3512_v43 = vpop.eup %3511  ;;  %3525 = vrcp.f32 %v1947_v54  ;;  %v1726_v1 = vadd.f32 1.0, %v3510_v3  ;;  %v1221_v27 = vpop.f32.mrb[56].mxu1  ;;  %v695_v30 = vadd.f32 %v4938_v44, %v5019_v47  ;;  %v895_v42 = vadd.f32 %v4940_v5, %v4977_v59 }
 0x23d   :  { %v5177_v19 = vpop.f32.mrb[98].mxu0  ;;  %3527 = vpow2.f32 %v2741_v61  ;;  %v2043_v6 = vmul.f32 %v3512_v43, %v1437_v51  ;;  %v3345_v13 = vadd.f32 %v3344_v22, %v1221_v27  ;;  %v1223_v40 = vpop.f32.mrb[57].mxu1  ;;  %v5190_v22 = vsel %vm39_vm1, %v4656_v4, 0.0 }
 0x23e   :  { %v5179_v41 = vpop.f32.mrb[99].mxu0  ;;  %3529 = vrcp.f32 %v1726_v1  ;;  %v3348_v60 = vadd.f32 %v3347_v8, %v1223_v40  ;;  %v1447_v44 = vadd.f32 %v5074_v48, %v5078_v58  ;;  %v2773_v5 = vmul.f32 -1.442695, %v3342_v14 }
 0x23f   :  { %v3514_v54 = vpop.eup %3513  ;;  %3531 = vrcp.f32 %v1948_v46  ;;  %v2075_v55 = vadd.f32 %v2043_v6, %v890_v57  ;;  %v2742_v24 = vmul.f32 -1.442695, %v3345_v13  ;;  %v3362_v46 = vadd.f32 %v5032_v11, %v693_v12 }
 0x240   :  { %v3516_v21 = vpop.eup %3515  ;;  %3533 = vrcp.f32 %v1949_v52  ;;  %v1727_v2 = vadd.f32 1.0, %v3514_v54  ;;  %v1227_v50 = vpop.f32.mrb[58].mxu1  ;;  %v3365_v61 = vadd.f32 %v5036_v0, %v695_v30  ;;  %v900_v48 = vadd.f32 %v4946_v31, %v4977_v59 }
 0x241   :  { %v5194_v47 = vpop.f32.mrb[100].mxu0  ;;  %v3518_v40 = vpop.eup %3517  ;;  %3535 = vpow2.f32 %v2772_v28  ;;  %v2044_v8 = vmul.f32 %v3516_v21, %v1442_v33  ;;  %v3351_v51 = vadd.f32 %v3350_v62, %v1227_v50  ;;  %v5205_v14 = vsel %vm39_vm1, %v4664_v15, 0.0 }
 0x242   :  { %v1229_v3 = vpop.f32.mrb[59].mxu1  ;;  %v5196_v57 = vpop.f32.mrb[101].mxu0  ;;  %3537 = vrcp.f32 %v1727_v2  ;;  %v1950_v1 = vadd.f32 1.0, %v3518_v40  ;;  %v1452_v11 = vadd.f32 %v5072_v39, %v5078_v58  ;;  %v2774_v31 = vmul.f32 -1.442695, %v3348_v60 }
 0x243   :  { %v3354_v4 = vadd.f32 %v3353_v26, %v1229_v3  ;;  %v3520_v43 = vpop.eup %3519  ;;  %v2076_v52 = vadd.f32 %v2044_v8, %v895_v42  ;;  %3539 = vtanh.f32 %v2075_v55  ;;  %v905_v30 = vadd.f32 %v4944_v23, %v4977_v59 }
 0x244   :  { %v3522_v62 = vpop.eup %3521  ;;  %v1728_v33 = vadd.f32 1.0, %v3520_v43  ;;  %3541 = vpow2.f32 %v2742_v24  ;;  %v1233_v26 = vpop.f32.mrb[60].mxu1  ;;  %v5220_v39 = vsel %vm39_vm1, %v4676_v20, 0.0  ;;  %v5224_v60 = vadd.f32 %v4948_v32, %v4977_v59 }
 0x245   :  { %v5209_v0 = vpop.f32.mrb[102].mxu0  ;;  %v3524_v27 = vpop.eup %3523  ;;  %3543 = vpow2.f32 %v2773_v5  ;;  %v2045_v28 = vmul.f32 %v3522_v62, %v1447_v44  ;;  %v3357_v6 = vadd.f32 %v5168_v56, %v1233_v26  ;;  %v2743_v56 = vmul.f32 -1.442695, %v3351_v51 }
 0x246   :  { %v1235_v13 = vpop.f32.mrb[61].mxu1  ;;  %v5212_v12 = vpop.f32.mrb[103].mxu0  ;;  %3545 = vrcp.f32 %v1728_v33  ;;  %v1951_v2 = vadd.f32 1.0, %v3524_v27  ;;  %v2775_v44 = vmul.f32 -1.442695, %v3354_v4  ;;  %v910_v3 = vadd.f32 %v4950_v45, %v4977_v59 }
 0x247   :  { %v3526_v15 = vpop.eup %3525  ;;  %v3360_v54 = vadd.f32 %v5171_v16, %v1235_v13  ;;  %3547 = vtanh.f32 %v2076_v52  ;;  %v2077_v55 = vadd.f32 %v2045_v28, %v900_v48  ;;  %v1457_v16 = vadd.f32 %v5098_v49, %v5078_v58 }
 0x248   :  { %v3528_v42 = vpop.eup %3527  ;;  %3549 = vrcp.f32 %v1950_v1  ;;  %v1239_v24 = vpop.f32.mrb[62].mxu1  ;;  %v5239_v49 = vsel %vm39_vm1, %v4684_v37, 0.0  ;;  %v5243_v4 = vadd.f32 %v4952_v53, %v4977_v59  ;;  %v2744_v45 = vmul.f32 -1.442695, %v3357_v6 }
 0x249   :  { %v3530_v21 = vpop.eup %3529  ;;  %v1729_v23 = vadd.f32 1.0, %v3528_v42  ;;  %v5228_v50 = vpop.f32.mrb[104].mxu0  ;;  %3551 = vpow2.f32 %v2774_v31  ;;  %v3363_v5 = vadd.f32 %v3362_v46, %v1239_v24  ;;  %v5247_v46 = vadd.f32 %v4954_v18, %v4977_v59 }
 0x24a   :  { %v3532_v20 = vpop.eup %3531  ;;  %v2046_v40 = vmul.f32 %v3530_v21, %v1452_v11  ;;  %v1241_v32 = vpop.f32.mrb[63].mxu1  ;;  %v2139_v1 = vsub.f32 1.0, %v3526_v15  ;;  %v5252_v37 = vsel %vm39_vm1, %v4696_v38, 0.0  ;;  %v1462_v18 = vadd.f32 %v5090_v35, %v5078_v58  ;;  %v5266_v35 = vld [vmem:[%s6079_s8] ss:$0 sm:$0xff] }
 0x24b   :  { %v5230_v8 = vpop.f32.mrb[105].mxu0  ;;  %v5232_v51 = vpop.eup %3533  ;;  %3553 = vrcp.f32 %v1729_v23  ;;  %v3366_v43 = vadd.f32 %v3365_v61, %v1241_v32  ;;  %v1467_v27 = vadd.f32 %v5123_v29, %v5078_v58  ;;  %v2203_v38 = vmul.f32 %v3526_v15, %v5105_v17 }
 0x24c   :  { %v3536_v48 = vpop.eup %3535  ;;  %3555 = vpow2.f32 %v2743_v56  ;;  %v2078_v52 = vadd.f32 %v2046_v40, %v905_v30  ;;  %v1245_v61 = vpop.f32.mrb[0].mxu1  ;;  %v2745_v56 = vmul.f32 -1.442695, %v3363_v5  ;;  %v2776_v29 = vmul.f32 -1.442695, %v3360_v54 }
 0x24d   :  { %v3538_v62 = vpop.eup %3537  ;;  %3557 = vrcp.f32 %v1951_v2  ;;  %v5254_v33 = vpop.f32.mrb[106].mxu0  ;;  %v1952_v6 = vadd.f32 1.0, %v3536_v48  ;;  %v2777_v15 = vmul.f32 -1.442695, %v3366_v43  ;;  %v3368_v40 = vadd.f32 %v5087_v10, %v1245_v61 }
 0x24e   :  { %v3540_v53 = vpop.eup %3539  ;;  %3559 = vpow2.f32 %v2775_v44  ;;  %v2047_v11 = vmul.f32 %v3538_v62, %v1457_v16  ;;  %v1247_v26 = vpop.f32.mrb[1].mxu1  ;;  %v2140_v16 = vsub.f32 1.0, %v3532_v20  ;;  %v5284_v43 = vadd.f32 %v4958_v36, %v4977_v59 }
 0x24f   :  { %v5260_v31 = vpop.f32.mrb[107].mxu0  ;;  %v3542_v28 = vpop.eup %3541  ;;  %3561 = vtanh.f32 %v2078_v52  ;;  %v2171_v13 = vmul.f32 %v3540_v53, %v2139_v1  ;;  %v2204_v52 = vmul.f32 %v3532_v20, %v5118_v25  ;;  %v6120_v53 = vld [vmem:[#allocation3_spill] sm:$0xff] }
 0x250   :  { %v3544_v30 = vpop.eup %3543  ;;  %v1730_v42 = vadd.f32 1.0, %v3542_v28  ;;  %3563 = vtanh.f32 %v2077_v55  ;;  %v2079_v21 = vadd.f32 %v2047_v11, %v910_v3  ;;  %v1251_v23 = vpop.f32.mrb[2].mxu1 }
 0x251   :  { %v3546_v2 = vpop.eup %3545  ;;  %3565 = vpow2.f32 %v2744_v45  ;;  %v5268_v24 = vadd.f32 %v2203_v38, %v2171_v13  ;;  %v5270_v44 = vpop.f32.mrb[108].mxu0  ;;  %v5280_v45 = vadd.f32 %v4956_v34, %v4977_v59  ;;  %v3372_v25 = vadd.f32 %v5087_v10, %v1251_v23 }
 0x252   :  { %v3548_v17 = vpop.eup %3547  ;;  %3567 = vrcp.f32 %v1730_v42  ;;  %v2048_v55 = vmul.f32 %v3546_v2, %v1462_v18  ;;  %v1253_v5 = vpop.f32.mrb[3].mxu1  ;;  %v5289_v18 = vadd.f32 %v6120_v53, %v4977_v59  ;;  %v1953_v36 = vadd.f32 1.0, %v3544_v30 }
 0x253   :  { %6119 = vst [vmem:[#allocation32_spill] sm:$0xff] %v5268_v24  ;;  %v5273_v32 = vpop.f32.mrb[109].mxu0  ;;  %v3550_v3 = vpop.eup %3549  ;;  %3569 = vrcp.f32 %v1952_v6  ;;  %v2274_v54 = vmul.f32 %v5266_v35, %v5268_v24  ;;  %v2172_v48 = vmul.f32 %v3548_v17, %v2140_v16  ;;  %v2746_v6 = vmul.f32 -1.442695, %v3368_v40 }
 0x254   :  { %v3552_v62 = vpop.eup %3551  ;;  %3571 = vpow2.f32 %v2745_v56  ;;  %v2080_v61 = vadd.f32 %v2048_v55, %v5224_v60  ;;  %v1257_v20 = vpop.f32.mrb[4].mxu1  ;;  %v3370_v2 = vadd.f32 %v5096_v63, %v1247_v26  ;;  %v6122_v55 = vld [vmem:[#allocation25_spill] sm:$0xff]  ;;  %v2141_v26 = vsub.f32 1.0, %v5232_v51 }
 0x255   :  { %v3554_v1 = vpop.eup %3553  ;;  %3573 = vpow2.f32 %v2776_v29  ;;  %2306 = vadd.xlane.f32.xlu0 %v2274_v54  ;;  %v5292_v11 = vadd.f32 %v2204_v52, %v2172_v48  ;;  %v5294_v34 = vpop.f32.mrb[110].mxu0  ;;  %v1954_v16 = vadd.f32 1.0, %v3552_v62  ;;  %v1472_v40 = vadd.f32 %v6122_v55, %v5078_v58 }
 0x256   :  { %v3556_v28 = vpop.eup %3555  ;;  %3575 = vpow2.f32 %v2777_v15  ;;  %v2049_v13 = vmul.f32 %v3554_v1, %v1467_v27  ;;  %v5296_v60 = vpop.f32.mrb[5].mxu1  ;;  %v2142_v27 = vsub.f32 1.0, %v3550_v3  ;;  %v2747_v15 = vmul.f32 -1.442695, %v3372_v25 }
 0x257   :  { %6121 = vst [vmem:[#allocation3_spill] sm:$0xff] %v5292_v11  ;;  %v5298_v38 = vpop.f32.mrb[111].mxu0  ;;  %v5300_v42 = vpop.eup %3557  ;;  %v1731_v56 = vadd.f32 1.0, %v3556_v28  ;;  %3577 = vtanh.f32 %v2080_v61  ;;  %v2275_v29 = vmul.f32 %v5266_v35, %v5292_v11  ;;  %v6123_v61 = vld [vmem:[#allocation28_spill] sm:$0xff]  ;;  %v2778_v28 = vmul.f32 -1.442695, %v3370_v2 }
 0x258   :  { %v3560_v23 = vpop.eup %3559  ;;  %3579 = vtanh.f32 %v2079_v21  ;;  %v5306_v30 = vadd.f32 %v2049_v13, %v5247_v46  ;;  %v1263_v54 = vpop.f32.mrb[6].mxu1  ;;  %v3374_v21 = vadd.f32 %v5096_v63, %v1253_v5  ;;  %v2206_v1 = vmul.f32 %v3550_v3, %v6123_v61 }
 0x259   :  { %v3562_v17 = vpop.eup %3561  ;;  %3581 = vrcp.f32 %v1731_v56  ;;  %2308 = vadd.xlane.f32.xlu0 %v2275_v29  ;;  %v5311_v48 = vpop.f32.mrb[112].mxu0  ;;  %v6124_v56 = vld [vmem:[#allocation26_spill] sm:$0xff]  ;;  %v1955_v11 = vadd.f32 1.0, %v3560_v23  ;;  %v3376_v3 = vadd.f32 %v5087_v10, %v1257_v20  ;;  %v6128_v23 = vld [vmem:[#allocation29_spill] sm:$0xff] }
 0x25a   :  { %v3564_v52 = vpop.eup %3563  ;;  %3583 = vpow2.f32 %v2746_v6  ;;  %v1265_v62 = vpop.f32.mrb[7].mxu1  ;;  %v2174_v46 = vmul.f32 %v3562_v17, %v2142_v27  ;;  %v2205_v29 = vmul.f32 %v5232_v51, %v6124_v56  ;;  %v6127_v51 = vld [vmem:[#allocation27_spill] sm:$0xff] }
 0x25b   :  { %v5315_v53 = vpop.f32.mrb[113].mxu0  ;;  %v3566_v25 = vpop.eup %3565  ;;  %3585 = vrcp.f32 %v1953_v36  ;;  %v2173_v13 = vmul.f32 %v3564_v52, %v2141_v26  ;;  %v2779_v26 = vmul.f32 -1.442695, %v3374_v21  ;;  %v1477_v52 = vadd.f32 %v6128_v23, %v5078_v58 }
 0x25c   :  { %v3568_v55 = vpop.eup %3567  ;;  %3587 = vrcp.f32 %v1954_v16  ;;  %v1732_v24 = vadd.f32 1.0, %v3566_v25  ;;  %v5319_v6 = vadd.f32 %v2206_v1, %v2174_v46  ;;  %v1269_v61 = vpop.f32.mrb[8].mxu1  ;;  %v5328_v16 = vadd.f32 %v6127_v51, %v5078_v58 }
 0x25d   :  { %v3570_v5 = vpop.eup %3569  ;;  %3589 = vpow2.f32 %v2747_v15  ;;  %v2050_v27 = vmul.f32 %v3568_v55, %v1472_v40  ;;  %v5322_v17 = vadd.f32 %v2205_v29, %v2173_v13  ;;  %v5324_v36 = vpop.f32.mrb[114].mxu0  ;;  %v3380_v25 = vadd.f32 %v5087_v10, %v1263_v54 }
 0x25e   :  { %6125 = vst [vmem:[#allocation25_spill] sm:$0xff] %v5319_v6  ;;  %v3572_v2 = vpop.eup %3571  ;;  %3591 = vrcp.f32 %v1732_v24  ;;  %v5332_v46 = vpop.f32.mrb[9].mxu1  ;;  %v2143_v13 = vsub.f32 1.0, %v5300_v42  ;;  %v2144_v56 = vsub.f32 1.0, %v3570_v5  ;;  %v2748_v55 = vmul.f32 -1.442695, %v3376_v3 }
 0x25f   :  { %6126 = vst [vmem:[#allocation28_spill] sm:$0xff] %v5322_v17  ;;  %v5334_v15 = vpop.f32.mrb[115].mxu0  ;;  %v3574_v20 = vpop.eup %3573  ;;  %v1733_v40 = vadd.f32 1.0, %v3572_v2  ;;  %3593 = vpow2.f32 %v2778_v28  ;;  %v2082_v1 = vadd.f32 %v2050_v27, %v5243_v4  ;;  %v2276_v24 = vmul.f32 %v5266_v35, %v5322_v17 }
 0x260   :  { %v3576_v21 = vpop.eup %3575  ;;  %3595 = vrcp.f32 %v1955_v11  ;;  %v2277_v2 = vmul.f32 %v5266_v35, %v5319_v6  ;;  %v1275_v28 = vpop.f32.mrb[10].mxu1  ;;  %v2207_v4 = vmul.f32 %v5300_v42, %v5160_v7  ;;  %v1956_v11 = vadd.f32 1.0, %v3574_v20 }
 0x261   :  { %v3578_v29 = vpop.eup %3577  ;;  %3597 = vrcp.f32 %v1733_v40  ;;  %2310 = vadd.xlane.f32.xlu1 %v2276_v24  ;;  %v5345_v27 = vpop.f32.mrb[116].mxu0  ;;  %v2208_v17 = vmul.f32 %v3570_v5, %v5190_v22  ;;  %v3378_v24 = vadd.f32 %v5096_v63, %v5296_v60  ;;  %v3382_v6 = vadd.f32 %v5096_v63, %v1265_v62 }
 0x262   :  { %6129 = vst [vmem:[#allocation26_spill] sm:$0xff] %v5345_v27  ;;  %v3580_v51 = vpop.eup %3579  ;;  %3599 = vpow2.f32 %v2779_v26  ;;  %v5347_v54 = vpop.f32.mrb[11].mxu1  ;;  %v2176_v23 = vmul.f32 %v3578_v29, %v2144_v56  ;;  %v2749_v20 = vmul.f32 -1.442695, %v3380_v25  ;;  %v1957_v22 = vadd.f32 1.0, %v3576_v21 }
 0x263   :  { %v5350_v40 = vpop.f32.mrb[117].mxu0  ;;  %v3582_v3 = vpop.eup %3581  ;;  %3601 = vtanh.f32 %v2082_v1  ;;  %v2175_v7 = vmul.f32 %v3580_v51, %v2143_v13  ;;  %v2780_v25 = vmul.f32 -1.442695, %v3378_v24  ;;  %v2781_v51 = vmul.f32 -1.442695, %v3382_v6 }
 0x264   :  { %6130 = vst [vmem:[#allocation27_spill] sm:$0xff] %v5350_v40  ;;  %v3584_v42 = vpop.eup %3583  ;;  %3603 = vtanh.f32 %v5306_v30  ;;  %v2051_v26 = vmul.f32 %v3582_v3, %v1477_v52  ;;  %v5356_v27 = vadd.f32 %v2208_v17, %v2176_v23  ;;  %v5362_v29 = vpop.f32.mrb[12].mxu1  ;;  %v3817_v17 = vld [vmem:[%s6076_s1 + $0x50] sm:$0xff]  ;;  %v3388_v24 = vadd.f32 %v5087_v10, %v1275_v28 }
 0x265   :  { %v5358_v56 = vpop.eup %3585  ;;  %v1734_v5 = vadd.f32 1.0, %v3584_v42  ;;  %3605 = vpow2.f32 %v2748_v55  ;;  %2312 = vadd.xlane.f32.xlu1 %v2277_v2  ;;  %v5360_v1 = vadd.f32 %v2207_v4, %v2175_v7  ;;  %v5365_v13 = vpop.f32.mrb[13].mxu1  ;;  %v5374_v52 = vsel %vm39_vm1, %v3817_v17, 0.0  ;;  %v6134_v7 = vld [vmem:[#allocation4_spill] sm:$0xff]  ;;  %v6136_v17 = vld [vmem:[#allocation6_spill] sm:$0xff] }
 0x266   :  { %6131 = vst [vmem:[#allocation29_spill] sm:$0xff] %v5356_v27  ;;  %v3588_v60 = vpop.eup %3587  ;;  %3607 = vrcp.f32 %v1956_v11  ;;  %v2083_v62 = vadd.f32 %v2051_v26, %v5284_v43  ;;  %v2279_v30 = vmul.f32 %v5266_v35, %v5356_v27  ;;  %v3384_v55 = vadd.f32 %v5087_v10, %v1269_v61  ;;  %v6133_v11 = vld [vmem:[#allocation31_spill] sm:$0xff] }
 0x267   :  { %6132 = vst [vmem:[#allocation33_spill] sm:$0xff] %v5360_v1  ;;  %v3590_v21 = vpop.eup %3589  ;;  %3609 = vrcp.f32 %v1734_v5  ;;  %v2278_v43 = vmul.f32 %v5266_v35, %v5360_v1  ;;  %v1487_v23 = vadd.f32 %v6133_v11, %v5078_v58  ;;  %v940_v42 = vadd.f32 %v6134_v7, %v4977_v59 }
 0x268   :  { %v3592_v2 = vpop.eup %3591  ;;  %v1735_v4 = vadd.f32 1.0, %v3590_v21  ;;  %3611 = vpow2.f32 %v2749_v20  ;;  %v1287_v61 = vpop.f32.mrb[14].mxu1  ;;  %v6135_v20 = vld [vmem:[#allocation5_spill] sm:$0xff]  ;;  %v5393_v21 = vadd.f32 %v6136_v17, %v4977_v59  ;;  %v2209_v1 = vmul.f32 %v5358_v56, %v5205_v14 }
 0x269   :  { %v3594_v3 = vpop.eup %3593  ;;  %3613 = vrcp.f32 %v1957_v22  ;;  %v2052_v26 = vmul.f32 %v3592_v2, %v5328_v16  ;;  %2314 = vadd.xlane.f32.xlu0 %v2278_v43  ;;  %2316 = vadd.xlane.f32.xlu1 %v2279_v30  ;;  %v5389_v6 = vadd.f32 %v6135_v20, %v4977_v59  ;;  %v6137_v22 = vld [vmem:[#allocation30_spill] sm:$0xff]  ;;  %v5397_v16 = vpop.f32.mrb[15].mxu1  ;;  %v2750_v43 = vmul.f32 -1.442695, %v3384_v55 }
 0x26a   :  { %v5385_v5 = vpop.eup %3595  ;;  %3615 = vrcp.f32 %v1735_v4  ;;  %v1492_v11 = vadd.f32 %v6137_v22, %v5078_v58  ;;  %v3386_v2 = vadd.f32 %v5096_v63, %v5332_v46  ;;  %v1958_v20 = vadd.f32 1.0, %v3594_v3 }
 0x26b   :  { %v3598_v28 = vpop.eup %3597  ;;  %3617 = vpow2.f32 %v2780_v25  ;;  %v2084_v30 = vadd.f32 %v2052_v26, %v5280_v45  ;;  %v2146_v59 = vsub.f32 1.0, %v3588_v60  ;;  %v2751_v4 = vmul.f32 -1.442695, %v3388_v24 }
 0x26c   :  { %v3600_v7 = vpop.eup %3599  ;;  %3619 = vpow2.f32 %v2781_v51  ;;  %v2053_v27 = vmul.f32 %v3598_v28, %v1487_v23  ;;  %v2145_v22 = vsub.f32 1.0, %v5358_v56  ;;  %v5405_v25 = vpop.f32.mrb[16].mxu1  ;;  %v2210_v51 = vmul.f32 %v3588_v60, %v5220_v39 }
 0x26d   :  { %v3602_v17 = vpop.eup %3601  ;;  %3621 = vtanh.f32 %v2084_v30  ;;  %v5407_v26 = vpop.f32.mrb[17].mxu1  ;;  %v1959_v3 = vadd.f32 1.0, %v3600_v7  ;;  %v2782_v28 = vmul.f32 -1.442695, %v3386_v2  ;;  %v3390_v14 = vadd.f32 %v5096_v63, %v5347_v54 }
 0x26e   :  { %v3604_v45 = vpop.eup %3603  ;;  %3623 = vtanh.f32 %v2083_v62  ;;  %v2085_v55 = vadd.f32 %v2053_v27, %v940_v42  ;;  %v2178_v46 = vmul.f32 %v3602_v17, %v2146_v59  ;;  %v3392_v27 = vadd.f32 %v5087_v10, %v5362_v29 }
 0x26f   :  { %v3606_v23 = vpop.eup %3605  ;;  %3625 = vpow2.f32 %v2750_v43  ;;  %v2177_v24 = vmul.f32 %v3604_v45, %v2145_v22  ;;  %v1497_v39 = vadd.f32 %v5179_v41, %v5078_v58  ;;  %v3394_v54 = vadd.f32 %v5096_v63, %v5365_v13  ;;  %v3818_v13 = vld [vmem:[%s6076_s1 + $0x58] sm:$0xff] }
 0x270   :  { %v3608_v30 = vpop.eup %3607  ;;  %3627 = vrcp.f32 %v1958_v20  ;;  %v1736_v40 = vadd.f32 1.0, %v3606_v23  ;;  %v5412_v56 = vadd.f32 %v2210_v51, %v2178_v46  ;;  %v5420_v42 = vpop.f32.mrb[18].mxu1  ;;  %v3396_v41 = vadd.f32 %v5087_v10, %v1287_v61 }
 0x271   :  { %v3610_v62 = vpop.eup %3609  ;;  %3629 = vpow2.f32 %v2751_v4  ;;  %v5418_v60 = vadd.f32 %v2209_v1, %v2177_v24  ;;  %v5426_v20 = vpop.f32.mrb[19].mxu1  ;;  %v5439_v4 = vsel %vm39_vm1, %v3818_v13, 0.0  ;;  %v2752_v61 = vmul.f32 -1.442695, %v3392_v27 }
 0x272   :  { %v3612_v43 = vpop.eup %3611  ;;  %3631 = vrcp.f32 %v1736_v40  ;;  %v2054_v2 = vmul.f32 %v3610_v62, %v1492_v11  ;;  %v2281_v7 = vmul.f32 %v5266_v35, %v5412_v56  ;;  %v2783_v40 = vmul.f32 -1.442695, %v3390_v14 }
 0x273   :  { %v5428_v59 = vpop.eup %3613  ;;  %3633 = vrcp.f32 %v1959_v3  ;;  %v1737_v29 = vadd.f32 1.0, %v3612_v43  ;;  %v2280_v1 = vmul.f32 %v5266_v35, %v5418_v60  ;;  %v1502_v45 = vadd.f32 %v5177_v19, %v5078_v58 }
 0x274   :  { %v3616_v17 = vpop.eup %3615  ;;  %3635 = vpow2.f32 %v2782_v28  ;;  %v2086_v11 = vadd.f32 %v2054_v2, %v5289_v18  ;;  %2320 = vadd.xlane.f32.xlu1 %v2281_v7  ;;  %v5443_v51 = vpop.f32.mrb[20].mxu1  ;;  %v2784_v23 = vmul.f32 -1.442695, %v3394_v54  ;;  %v3398_v3 = vadd.f32 %v5096_v63, %v5397_v16 }
 0x275   :  { %v3618_v22 = vpop.eup %3617  ;;  %3637 = vrcp.f32 %v1737_v29  ;;  %v2055_v46 = vmul.f32 %v3616_v17, %v1497_v39  ;;  %2318 = vadd.xlane.f32.xlu0 %v2280_v1  ;;  %v5447_v28 = vpop.f32.mrb[21].mxu1  ;;  %v2148_v24 = vsub.f32 1.0, %v3608_v30  ;;  %v2753_v62 = vmul.f32 -1.442695, %v3396_v41 }
 0x276   :  { %v3620_v18 = vpop.eup %3619  ;;  %3639 = vtanh.f32 %v2086_v11  ;;  %v2147_v19 = vsub.f32 1.0, %v5385_v5  ;;  %v1507_v43 = vadd.f32 %v5196_v57, %v5078_v58  ;;  %v2212_v54 = vmul.f32 %v3608_v30, %v5252_v37 }
 0x277   :  { %v3622_v14 = vpop.eup %3621  ;;  %3641 = vtanh.f32 %v2085_v55  ;;  %v2087_v27 = vadd.f32 %v2055_v46, %v5393_v21  ;;  %v1960_v16 = vadd.f32 1.0, %v3618_v22  ;;  %v2211_v55 = vmul.f32 %v5385_v5, %v5239_v49 }
 0x278   :  { %v3624_v39 = vpop.eup %3623  ;;  %3643 = vpow2.f32 %v2783_v40  ;;  %v2180_v2 = vmul.f32 %v3622_v14, %v2148_v24  ;;  %v5456_v41 = vpop.f32.mrb[22].mxu1  ;;  %v2785_v17 = vmul.f32 -1.442695, %v3398_v3  ;;  %v1961_v13 = vadd.f32 1.0, %v3620_v18 }
 0x279   :  { %v3626_v7 = vpop.eup %3625  ;;  %3645 = vpow2.f32 %v2752_v61  ;;  %v2179_v29 = vmul.f32 %v3624_v39, %v2147_v19  ;;  %v5460_v11 = vpop.f32.mrb[23].mxu1  ;;  %v3400_v37 = vadd.f32 %v5087_v10, %v5405_v25  ;;  %v3402_v5 = vadd.f32 %v5096_v63, %v5407_v26 }
 0x27a   :  { %v3628_v21 = vpop.eup %3627  ;;  %v1738_v1 = vadd.f32 1.0, %v3626_v7  ;;  %3647 = vpow2.f32 %v2784_v23  ;;  %v5458_v40 = vadd.f32 %v2212_v54, %v2180_v2  ;;  %v3404_v18 = vadd.f32 %v5087_v10, %v5420_v42 }
 0x27b   :  { %v3630_v57 = vpop.eup %3629  ;;  %3649 = vpow2.f32 %v2753_v62  ;;  %v5464_v30 = vadd.f32 %v2211_v55, %v2179_v29  ;;  %v1512_v26 = vadd.f32 %v5194_v47, %v5078_v58  ;;  %v3820_v62 = vld [vmem:[%s6076_s1 + $0x68] sm:$0xff]  ;;  %v2754_v2 = vmul.f32 -1.442695, %v3400_v37 }
 0x27c   :  { %v3632_v22 = vpop.eup %3631  ;;  %3651 = vrcp.f32 %v1738_v1  ;;  %v1739_v49 = vadd.f32 1.0, %v3630_v57  ;;  %v2283_v61 = vmul.f32 %v5266_v35, %v5458_v40  ;;  %v5476_v3 = vpop.f32.mrb[24].mxu1  ;;  %v5494_v19 = vsel %vm39_vm1, %v3820_v62, 0.0 }
 0x27d   :  { %v5470_v46 = vpop.eup %3633  ;;  %3653 = vrcp.f32 %v1960_v16  ;;  %v2056_v23 = vmul.f32 %v3632_v22, %v1502_v45  ;;  %v2282_v25 = vmul.f32 %v5266_v35, %v5464_v30  ;;  %v5480_v14 = vpop.f32.mrb[25].mxu1  ;;  %v3819_v45 = vld [vmem:[%s6076_s1 + $0x60] sm:$0xff]  ;;  %v2150_v54 = vsub.f32 1.0, %v3628_v21 }
 0x27e   :  { %v3636_v24 = vpop.eup %3635  ;;  %3655 = vrcp.f32 %v1739_v49  ;;  %2324 = vadd.xlane.f32.xlu1 %v2283_v61  ;;  %v5487_v42 = vsel %vm39_vm1, %v3819_v45, 0.0  ;;  %v2786_v16 = vmul.f32 -1.442695, %v3402_v5  ;;  %v2149_v55 = vsub.f32 1.0, %v5428_v59 }
 0x27f   :  { %v3638_v47 = vpop.eup %3637  ;;  %3657 = vrcp.f32 %v1961_v13  ;;  %v2088_v39 = vadd.f32 %v2056_v23, %v5389_v6  ;;  %2322 = vadd.xlane.f32.xlu0 %v2282_v25  ;;  %v2755_v57 = vmul.f32 -1.442695, %v3404_v18  ;;  %v2214_v49 = vmul.f32 %v3628_v21, %v5439_v4  ;;  %v6138_v6 = vld [vmem:[#allocation8_spill] sm:$0xff] }
 0x280   :  { %v3640_v7 = vpop.eup %3639  ;;  %3659 = vtanh.f32 %v2087_v27  ;;  %v2057_v29 = vmul.f32 %v3638_v47, %v1507_v43  ;;  %v5499_v61 = vpop.f32.mrb[26].mxu1  ;;  %v2213_v27 = vmul.f32 %v5428_v59, %v5374_v52  ;;  %v1962_v25 = vadd.f32 1.0, %v3636_v24 }
 0x281   :  { %v3642_v1 = vpop.eup %3641  ;;  %3661 = vpow2.f32 %v2785_v17  ;;  %v2182_v22 = vmul.f32 %v3640_v7, %v2150_v54  ;;  %v5504_v5 = vpop.f32.mrb[27].mxu1  ;;  %v1517_v17 = vadd.f32 %v5212_v12, %v5078_v58  ;;  %v3406_v45 = vadd.f32 %v5096_v63, %v5426_v20 }
 0x282   :  { %v3644_v13 = vpop.eup %3643  ;;  %3663 = vtanh.f32 %v2088_v39  ;;  %v2089_v37 = vadd.f32 %v2057_v29, %v6138_v6  ;;  %v2181_v23 = vmul.f32 %v3642_v1, %v2149_v55  ;;  %v3408_v59 = vadd.f32 %v5087_v10, %v5443_v51  ;;  %v3821_v51 = vld [vmem:[%s6076_s1 + $0x70] sm:$0xff]  ;;  %v6139_v6 = vld [vmem:[#allocation7_spill] sm:$0xff] }
 0x283   :  { %v3646_v43 = vpop.eup %3645  ;;  %3665 = vpow2.f32 %v2754_v2  ;;  %v5508_v18 = vadd.f32 %v2214_v49, %v2182_v22  ;;  %v1963_v52 = vadd.f32 1.0, %v3644_v13  ;;  %v3412_v54 = vadd.f32 %v5087_v10, %v5456_v41  ;;  %v3822_v41 = vld [vmem:[%s6076_s1 + $0x78] sm:$0xff] }
 0x284   :  { %v3648_v4 = vpop.eup %3647  ;;  %v1740_v21 = vadd.f32 1.0, %v3646_v43  ;;  %3667 = vpow2.f32 %v2786_v16  ;;  %v5512_v62 = vadd.f32 %v2213_v27, %v2181_v23  ;;  %v5518_v12 = vpop.f32.mrb[28].mxu1  ;;  %v5531_v55 = vsel %vm39_vm1, %v3821_v51, 0.0 }
 0x285   :  { %v3650_v47 = vpop.eup %3649  ;;  %3669 = vpow2.f32 %v2755_v57  ;;  %v2285_v24 = vmul.f32 %v5266_v35, %v5508_v18  ;;  %v5524_v7 = vpop.f32.mrb[29].mxu1  ;;  %v5538_v1 = vsel %vm39_vm1, %v3822_v41, 0.0  ;;  %v1964_v22 = vadd.f32 1.0, %v3648_v4 }
 0x286   :  { %v3652_v39 = vpop.eup %3651  ;;  %3671 = vrcp.f32 %v1740_v21  ;;  %v1741_v2 = vadd.f32 1.0, %v3650_v47  ;;  %v2284_v20 = vmul.f32 %v5266_v35, %v5512_v62  ;;  %v2151_v49 = vsub.f32 1.0, %v5470_v46 }
 0x287   :  { %v3654_v16 = vpop.eup %3653  ;;  %3673 = vrcp.f32 %v1962_v25  ;;  %v2058_v29 = vmul.f32 %v3652_v39, %v1512_v26  ;;  %2328 = vadd.xlane.f32.xlu1 %v2285_v24  ;;  %v3410_v26 = vadd.f32 %v5096_v63, %v5447_v28  ;;  %v2756_v27 = vmul.f32 -1.442695, %v3408_v59 }
 0x288   :  { %v3656_v57 = vpop.eup %3655  ;;  %3675 = vrcp.f32 %v1741_v2  ;;  %2326 = vadd.xlane.f32.xlu0 %v2284_v20  ;;  %v5546_v25 = vpop.f32.mrb[30].mxu1  ;;  %v2787_v47 = vmul.f32 -1.442695, %v3406_v45  ;;  %v2757_v4 = vmul.f32 -1.442695, %v3412_v54  ;;  %v2215_v24 = vmul.f32 %v5470_v46, %v5487_v42  ;;  %v6140_v2 = vld [vmem:[#allocation10_spill] sm:$0xff] }
 0x289   :  { %v5543_v13 = vpop.eup %3657  ;;  %3677 = vrcp.f32 %v1963_v52  ;;  %v2090_v23 = vadd.f32 %v2058_v29, %v6139_v6  ;;  %v2059_v43 = vmul.f32 %v3656_v57, %v1517_v17  ;;  %v5550_v28 = vpop.f32.mrb[31].mxu1  ;;  %v2152_v51 = vsub.f32 1.0, %v3654_v16 }
 0x28a   :  { %v3660_v21 = vpop.eup %3659  ;;  %3679 = vtanh.f32 %v2089_v37  ;;  %v2788_v17 = vmul.f32 -1.442695, %v3410_v26  ;;  %v3414_v59 = vadd.f32 %v5096_v63, %v5460_v11  ;;  %v1522_v37 = vadd.f32 %v5209_v0, %v5078_v58 }
 0x28b   :  { %v3662_v39 = vpop.eup %3661  ;;  %3681 = vtanh.f32 %v2090_v23  ;;  %v2091_v20 = vadd.f32 %v2059_v43, %v6140_v2  ;;  %v2183_v52 = vmul.f32 %v3660_v21, %v2151_v49  ;;  %v2216_v54 = vmul.f32 %v3654_v16, %v5494_v19 }
 0x28c   :  { %v3664_v29 = vpop.eup %3663  ;;  %3683 = vrcp.f32 %v1964_v22  ;;  %v5560_v41 = vpop.f32.mrb[32].mxu1  ;;  %v3416_v22 = vadd.f32 %v5087_v10, %v5476_v3  ;;  %v1527_v11 = vadd.f32 %v5230_v8, %v5078_v58  ;;  %v1965_v6 = vadd.f32 1.0, %v3662_v39  ;;  %v3823_v8 = vld [vmem:[%s6076_s1 + $0x80] sm:$0xff] }
 0x28d   :  { %v3666_v45 = vpop.eup %3665  ;;  %3685 = vpow2.f32 %v2756_v27  ;;  %v5557_v46 = vadd.f32 %v2215_v24, %v2183_v52  ;;  %v2184_v42 = vmul.f32 %v3664_v29, %v2152_v51  ;;  %v5566_v26 = vpop.f32.mrb[33].mxu1  ;;  %v3420_v43 = vadd.f32 %v5087_v10, %v5499_v61 }
 0x28e   :  { %v3668_v57 = vpop.eup %3667  ;;  %v1742_v49 = vadd.f32 1.0, %v3666_v45  ;;  %3687 = vpow2.f32 %v2787_v47  ;;  %v5579_v3 = vsel %vm39_vm1, %v3823_v8, 0.0  ;;  %v2789_v47 = vmul.f32 -1.442695, %v3414_v59 }
 0x28f   :  { %v3670_v0 = vpop.eup %3669  ;;  %3689 = vpow2.f32 %v2757_v4  ;;  %v2286_v23 = vmul.f32 %v5266_v35, %v5557_v46  ;;  %v5570_v19 = vadd.f32 %v2216_v54, %v2184_v42  ;;  %v1966_v61 = vadd.f32 1.0, %v3668_v57 }
 0x290   :  { %v3672_v16 = vpop.eup %3671  ;;  %3691 = vrcp.f32 %v1742_v49  ;;  %v1743_v27 = vadd.f32 1.0, %v3670_v0  ;;  %v5583_v39 = vpop.f32.mrb[34].mxu1  ;;  %v2758_v52 = vmul.f32 -1.442695, %v3416_v22  ;;  %v3418_v51 = vadd.f32 %v5096_v63, %v5480_v14  ;;  %v6142_v14 = vld [vmem:[#allocation12_spill] sm:$0xff] }
 0x291   :  { %v3674_v21 = vpop.eup %3673  ;;  %3693 = vpow2.f32 %v2788_v17  ;;  %v2060_v4 = vmul.f32 %v3672_v16, %v1522_v37  ;;  %2330 = vadd.xlane.f32.xlu0 %v2286_v23  ;;  %v2287_v24 = vmul.f32 %v5266_v35, %v5570_v19  ;;  %v5587_v29 = vpop.f32.mrb[35].mxu1  ;;  %v6141_v17 = vld [vmem:[#allocation9_spill] sm:$0xff]  ;;  %v2153_v42 = vsub.f32 1.0, %v5543_v13 }
 0x292   :  { %v3676_v2 = vpop.eup %3675  ;;  %3695 = vrcp.f32 %v1743_v27  ;;  %v2759_v49 = vmul.f32 -1.442695, %v3420_v43  ;;  %v3422_v57 = vadd.f32 %v5096_v63, %v5504_v5  ;;  %v2154_v22 = vsub.f32 1.0, %v3674_v21  ;;  %v3824_v5 = vld [vmem:[%s6076_s1 + $0x88] sm:$0xff] }
 0x293   :  { %v5589_v45 = vpop.eup %3677  ;;  %3697 = vrcp.f32 %v1965_v6  ;;  %v2092_v59 = vadd.f32 %v2060_v4, %v6141_v17  ;;  %v2061_v37 = vmul.f32 %v3676_v2, %v1527_v11  ;;  %2332 = vadd.xlane.f32.xlu1 %v2287_v24  ;;  %v2217_v6 = vmul.f32 %v5543_v13, %v5531_v55 }
 0x294   :  { %v3680_v54 = vpop.eup %3679  ;;  %3699 = vtanh.f32 %v2091_v20  ;;  %v5598_v27 = vpop.f32.mrb[36].mxu1  ;;  %v2218_v20 = vmul.f32 %v3674_v21, %v5538_v1  ;;  %v89_v4 = vsel %vm39_vm1, %v3824_v5, 0.0  ;;  %v2790_v2 = vmul.f32 -1.442695, %v3418_v51 }
 0x295   :  { %v3682_v0 = vpop.eup %3681  ;;  %3701 = vtanh.f32 %v2092_v59  ;;  %v2093_v23 = vadd.f32 %v2061_v37, %v6142_v14  ;;  %v2185_v16 = vmul.f32 %v3680_v54, %v2153_v42  ;;  %v5601_v43 = vpop.f32.mrb[37].mxu1  ;;  %v1532_v55 = vadd.f32 %v5228_v50, %v5078_v58 }
 0x296   :  { %v3684_v11 = vpop.eup %3683  ;;  %3703 = vrcp.f32 %v1966_v61  ;;  %v2186_v8 = vmul.f32 %v3682_v0, %v2154_v22  ;;  %v3424_v1 = vadd.f32 %v5087_v10, %v5518_v12  ;;  %v2791_v37 = vmul.f32 -1.442695, %v3422_v57 }
 0x297   :  { %v3686_v24 = vpop.eup %3685  ;;  %3705 = vpow2.f32 %v2758_v52  ;;  %v5610_v13 = vadd.f32 %v2217_v6, %v2185_v16  ;;  %v1537_v52 = vadd.f32 %v5260_v31, %v5078_v58  ;;  %v3426_v31 = vadd.f32 %v5096_v63, %v5524_v7 }
 0x298   :  { %v3688_v61 = vpop.eup %3687  ;;  %v1744_v17 = vadd.f32 1.0, %v3686_v24  ;;  %3707 = vpow2.f32 %v2789_v47  ;;  %v5614_v21 = vadd.f32 %v2218_v20, %v2186_v8  ;;  %v5620_v50 = vpop.f32.mrb[38].mxu1  ;;  %v3428_v47 = vadd.f32 %v5087_v10, %v5546_v25  ;;  %v6143_v20 = vld [vmem:[#allocation11_spill] sm:$0xff] }
 0x299   :  { %v3690_v59 = vpop.eup %3689  ;;  %3709 = vpow2.f32 %v2759_v49  ;;  %v2288_v51 = vmul.f32 %v5266_v35, %v5610_v13  ;;  %v5626_v22 = vpop.f32.mrb[39].mxu1  ;;  %v1542_v0 = vadd.f32 %v5254_v33, %v5078_v58  ;;  %v1967_v16 = vadd.f32 1.0, %v3688_v61 }
 0x29a   :  { %v3692_v42 = vpop.eup %3691  ;;  %3711 = vrcp.f32 %v1744_v17  ;;  %v1745_v54 = vadd.f32 1.0, %v3690_v59  ;;  %v2289_v12 = vmul.f32 %v5266_v35, %v5614_v21  ;;  %v2760_v6 = vmul.f32 -1.442695, %v3424_v1 }
 0x29b   :  { %v3694_v49 = vpop.eup %3693  ;;  %3713 = vpow2.f32 %v2790_v2  ;;  %v2062_v57 = vmul.f32 %v3692_v42, %v1532_v55  ;;  %2334 = vadd.xlane.f32.xlu0 %v2288_v51  ;;  %v3430_v25 = vadd.f32 %v5096_v63, %v5550_v28  ;;  %v2155_v7 = vsub.f32 1.0, %v5589_v45  ;;  %v6144_v28 = vld [vmem:[#allocation14_spill] sm:$0xff] }
 0x29c   :  { %v3696_v14 = vpop.eup %3695  ;;  %3715 = vrcp.f32 %v1745_v54  ;;  %2336 = vadd.xlane.f32.xlu1 %v2289_v12  ;;  %v5638_v2 = vpop.f32.mrb[40].mxu1  ;;  %v1968_v55 = vadd.f32 1.0, %v3694_v49  ;;  %v2761_v61 = vmul.f32 -1.442695, %v3428_v47  ;;  %v2156_v17 = vsub.f32 1.0, %v3684_v11 }
 0x29d   :  { %v5634_v8 = vpop.eup %3697  ;;  %3717 = vpow2.f32 %v2791_v37  ;;  %v2094_v5 = vadd.f32 %v2062_v57, %v6143_v20  ;;  %v2063_v24 = vmul.f32 %v3696_v14, %v1537_v52  ;;  %v5640_v1 = vpop.f32.mrb[41].mxu1  ;;  %v2219_v37 = vmul.f32 %v5589_v45, %v5579_v3 }
 0x29e   :  { %v3700_v33 = vpop.eup %3699  ;;  %3719 = vtanh.f32 %v2093_v23  ;;  %v2220_v12 = vmul.f32 %v3684_v11, %v89_v4  ;;  %v15_v23 = vstv %s6080_s9  ;;  %v2792_v49 = vmul.f32 -1.442695, %v3426_v31 }
 0x29f   :  { %v3702_v59 = vpop.eup %3701  ;;  %3721 = vtanh.f32 %v2094_v5  ;;  %v2095_v51 = vadd.f32 %v2063_v24, %v6144_v28  ;;  %v2187_v42 = vmul.f32 %v3700_v33, %v2155_v7  ;;  %v1547_v57 = vadd.f32 %v5273_v32, %v5078_v58  ;;  %16 = vst [vmem:[#allocation2] sm:$0x1] %v15_v23 }
 0x2a0   :  { %v3704_v52 = vpop.eup %3703  ;;  %3723 = vrcp.f32 %v1967_v16  ;;  %v2188_v54 = vmul.f32 %v3702_v59, %v2156_v17  ;;  %v3432_v45 = vadd.f32 %v5087_v10, %v5560_v41  ;;  %v2793_v16 = vmul.f32 -1.442695, %v3430_v25  ;;  %v3825_v25 = vld [vmem:[%s6076_s1 + $0x90] sm:$0xff] }
 0x2a1   :  { %v3706_v47 = vpop.eup %3705  ;;  %3725 = vpow2.f32 %v2760_v6  ;;  %v5650_v14 = vadd.f32 %v2219_v37, %v2187_v42  ;;  %v3436_v5 = vadd.f32 %v5087_v10, %v5583_v39  ;;  %v3841_v7 = vmov 0   ;;  %v3826_v39 = vld [vmem:[%s6076_s1 + $0x98] sm:$0xff] }
 0x2a2   :  { %v3708_v20 = vpop.eup %3707  ;;  %3727 = vrcp.f32 %v1968_v55  ;;  %v1746_v3 = vadd.f32 1.0, %v3706_v47  ;;  %v5654_v11 = vadd.f32 %v2220_v12, %v2188_v54  ;;  %3495 = vset.pattern.permute.xlu0 %v3841_v7  ;;  %3496 = vset.pattern.permute.xlu1 %v3841_v7  ;;  %v90_v55 = vsel %vm39_vm1, %v3825_v25, 0.0  ;;  %v6145_v42 = vld [vmem:[#allocation13_spill] sm:$0xff] }
 0x2a3   :  { %v3710_v4 = vpop.eup %3709  ;;  %3729 = vpow2.f32 %v2761_v61  ;;  %v2290_v31 = vmul.f32 %v5266_v35, %v5650_v14  ;;  %v1969_v17 = vadd.f32 1.0, %v3708_v20  ;;  %v2762_v59 = vmul.f32 -1.442695, %v3432_v45  ;;  %v6146_v20 = vld [vmem:[#allocation16_spill] sm:$0xff] }
 0x2a4   :  { %v3712_v6 = vpop.eup %3711  ;;  %3731 = vrcp.f32 %v1746_v3  ;;  %v1747_v32 = vadd.f32 1.0, %v3710_v4  ;;  %v2291_v24 = vmul.f32 %v5266_v35, %v5654_v11  ;;  %v91_v35 = vsel %vm39_vm1, %v3826_v39, 0.0 }
 0x2a5   :  { %v3714_v41 = vpop.eup %3713  ;;  %3733 = vpow2.f32 %v2792_v49  ;;  %v2064_v33 = vmul.f32 %v3712_v6, %v1542_v0  ;;  %2338 = vadd.xlane.f32.xlu0 %v2290_v31  ;;  %v3434_v0 = vadd.f32 %v5096_v63, %v5566_v26  ;;  %v2157_v12 = vsub.f32 1.0, %v5634_v8 }
 0x2a6   :  { %v3716_v61 = vpop.eup %3715  ;;  %3735 = vrcp.f32 %v1747_v32  ;;  %2340 = vadd.xlane.f32.xlu1 %v2291_v24  ;;  %v1970_v47 = vadd.f32 1.0, %v3714_v41  ;;  %v2763_v49 = vmul.f32 -1.442695, %v3436_v5  ;;  %v2158_v3 = vsub.f32 1.0, %v3704_v52 }
 0x2a7   :  { %v3718_v28 = vpop.eup %3717  ;;  %3737 = vpow2.f32 %v2793_v16  ;;  %v2096_v37 = vadd.f32 %v2064_v33, %v6145_v42  ;;  %v2065_v54 = vmul.f32 %v3716_v61, %v1547_v57  ;;  %v2221_v26 = vmul.f32 %v5634_v8, %v90_v55  ;;  %v3829_v42 = vld [vmem:[%s6076_s1 + $0xa8] sm:$0xff] }
 0x2a8   :  { %v3720_v23 = vpop.eup %3719  ;;  %3739 = vtanh.f32 %v2095_v51  ;;  %v1552_v16 = vadd.f32 %v5270_v44, %v5078_v58  ;;  %v2222_v32 = vmul.f32 %v3704_v52, %v91_v35  ;;  %v1971_v7 = vadd.f32 1.0, %v3718_v28 }
 0x2a9   :  { %v3722_v4 = vpop.eup %3721  ;;  %3741 = vtanh.f32 %v2096_v37  ;;  %v2097_v45 = vadd.f32 %v2065_v54, %v6146_v20  ;;  %v2189_v31 = vmul.f32 %v3720_v23, %v2157_v12  ;;  %v3438_v51 = vadd.f32 %v5096_v63, %v5587_v29  ;;  %v5693_v29 = vld [vmem:[%s6079_s8] ss:$0 sm:$0xff] }
 0x2aa   :  { %v3724_v6 = vpop.eup %3723  ;;  %3743 = vrcp.f32 %v1969_v17  ;;  %v2190_v57 = vmul.f32 %v3722_v4, %v2158_v3  ;;  %v3440_v8 = vadd.f32 %v5087_v10, %v5598_v27  ;;  %v2794_v44 = vmul.f32 -1.442695, %v3434_v0  ;;  %v3828_v0 = vld [vmem:[%s6076_s1 + $0xa0] sm:$0xff] }
 0x2ab   :  { %v3726_v24 = vpop.eup %3725  ;;  %3745 = vpow2.f32 %v2762_v59  ;;  %v5682_v5 = vadd.f32 %v2221_v26, %v2189_v31  ;;  %v1557_v52 = vadd.f32 %v5298_v38, %v5078_v58  ;;  %v3444_v27 = vadd.f32 %v5087_v10, %v5620_v50 }
 0x2ac   :  { %v3728_v41 = vpop.eup %3727  ;;  %3747 = vrcp.f32 %v1970_v47  ;;  %v1748_v33 = vadd.f32 1.0, %v3726_v24  ;;  %v5686_v25 = vadd.f32 %v2222_v32, %v2190_v57  ;;  %v92_v28 = vsel %vm39_vm1, %v3828_v0, 0.0  ;;  %v6148_v24 = vld [vmem:[#allocation18_spill] sm:$0xff] }
 0x2ad   :  { %v3730_v55 = vpop.eup %3729  ;;  %3749 = vpow2.f32 %v2763_v49  ;;  %v2292_v39 = vmul.f32 %v5693_v29, %v5682_v5  ;;  %v93_v50 = vsel %vm39_vm1, %v3829_v42, 0.0  ;;  %v2795_v54 = vmul.f32 -1.442695, %v3438_v51  ;;  %v6147_v49 = vld [vmem:[#allocation15_spill] sm:$0xff] }
 0x2ae   :  { %v3732_v35 = vpop.eup %3731  ;;  %3751 = vrcp.f32 %v1748_v33  ;;  %v1749_v61 = vadd.f32 1.0, %v3730_v55  ;;  %v2293_v17 = vmul.f32 %v5693_v29, %v5686_v25  ;;  %v2764_v12 = vmul.f32 -1.442695, %v3440_v8 }
 0x2af   :  { %v3734_v59 = vpop.eup %3733  ;;  %3753 = vrcp.f32 %v1971_v7  ;;  %v2066_v38 = vmul.f32 %v3732_v35, %v1552_v16  ;;  %2342 = vadd.xlane.f32.xlu0 %v2292_v39  ;;  %v3442_v23 = vadd.f32 %v5096_v63, %v5601_v43  ;;  %v2159_v20 = vsub.f32 1.0, %v3724_v6 }
 0x2b0   :  { %v3736_v37 = vpop.eup %3735  ;;  %3755 = vrcp.f32 %v1749_v61  ;;  %2344 = vadd.xlane.f32.xlu1 %v2293_v17  ;;  %v1972_v26 = vadd.f32 1.0, %v3734_v59  ;;  %v2765_v16 = vmul.f32 -1.442695, %v3444_v27  ;;  %v2160_v57 = vsub.f32 1.0, %v3728_v41 }
 0x2b1   :  { %v3738_v47 = vpop.eup %3737  ;;  %3757 = vpow2.f32 %v2794_v44  ;;  %v2098_v3 = vadd.f32 %v2066_v38, %v6147_v49  ;;  %v2067_v4 = vmul.f32 %v3736_v37, %v1557_v52  ;;  %v2223_v33 = vmul.f32 %v3724_v6, %v92_v28  ;;  %v6149_v49 = vld [vmem:[#allocation17_spill] sm:$0xff] }
 0x2b2   :  { %v3740_v31 = vpop.eup %3739  ;;  %3759 = vtanh.f32 %v2097_v45  ;;  %v1562_v43 = vadd.f32 %v5294_v34, %v5078_v58  ;;  %v2224_v44 = vmul.f32 %v3728_v41, %v93_v50  ;;  %v1973_v39 = vadd.f32 1.0, %v3738_v47 }
 0x2b3   :  { %v3742_v32 = vpop.eup %3741  ;;  %3761 = vtanh.f32 %v2098_v3  ;;  %v2099_v7 = vadd.f32 %v2067_v4, %v6148_v24  ;;  %v2191_v51 = vmul.f32 %v3740_v31, %v2159_v20  ;;  %v3446_v45 = vadd.f32 %v5096_v63, %v5626_v22 }
 0x2b4   :  { %v3744_v8 = vpop.eup %3743  ;;  %3763 = vpow2.f32 %v2795_v54  ;;  %v2192_v55 = vmul.f32 %v3742_v32, %v2160_v57  ;;  %v3448_v6 = vadd.f32 %v5087_v10, %v5638_v2  ;;  %v2796_v34 = vmul.f32 -1.442695, %v3442_v23  ;;  %v3830_v2 = vld [vmem:[%s6076_s1 + $0xb0] sm:$0xff] }
 0x2b5   :  { %v3746_v52 = vpop.eup %3745  ;;  %3765 = vpow2.f32 %v2764_v12  ;;  %v5719_v35 = vadd.f32 %v2223_v33, %v2191_v51  ;;  %v1567_v41 = vadd.f32 %v5315_v53, %v5078_v58  ;;  %v94_v53 = vsel %vm39_vm1, %v3830_v2, 0.0  ;;  %v3831_v12 = vld [vmem:[%s6076_s1 + $0xb8] sm:$0xff]  ;;  %v6150_v57 = vld [vmem:[#allocation20_spill] sm:$0xff] }
 0x2b6   :  { %v3748_v61 = vpop.eup %3747  ;;  %3767 = vrcp.f32 %v1972_v26  ;;  %v1750_v27 = vadd.f32 1.0, %v3746_v52  ;;  %v5723_v17 = vadd.f32 %v2224_v44, %v2192_v55  ;;  %v2797_v37 = vmul.f32 -1.442695, %v3446_v45  ;;  %v3833_v2 = vld [vmem:[%s6076_s1 + $0xc8] sm:$0xff] }
 0x2b7   :  { %v3750_v59 = vpop.eup %3749  ;;  %3769 = vpow2.f32 %v2765_v16  ;;  %v2294_v38 = vmul.f32 %v5693_v29, %v5719_v35  ;;  %v2766_v54 = vmul.f32 -1.442695, %v3448_v6  ;;  %v95_v23 = vsel %vm39_vm1, %v3831_v12, 0.0 }
 0x2b8   :  { %v3752_v22 = vpop.eup %3751  ;;  %3771 = vrcp.f32 %v1750_v27  ;;  %v1751_v0 = vadd.f32 1.0, %v3750_v59  ;;  %v2295_v28 = vmul.f32 %v5693_v29, %v5723_v17  ;;  %v2161_v20 = vsub.f32 1.0, %v3744_v8 }
 0x2b9   :  { %v5731_v42 = vpop.eup %3753  ;;  %3773 = vrcp.f32 %v1973_v39  ;;  %v2068_v10 = vmul.f32 %v3752_v22, %v1562_v43  ;;  %2346 = vadd.xlane.f32.xlu0 %v2294_v38  ;;  %v2162_v26 = vsub.f32 1.0, %v3748_v61  ;;  %v2225_v51 = vmul.f32 %v3744_v8, %v94_v53 }
 0x2ba   :  { %v3756_v50 = vpop.eup %3755  ;;  %3775 = vrcp.f32 %v1751_v0  ;;  %2348 = vadd.xlane.f32.xlu1 %v2295_v28  ;;  %v3450_v43 = vadd.f32 %v5096_v63, %v5640_v1  ;;  %v2226_v44 = vmul.f32 %v3748_v61, %v95_v23  ;;  %v1577_v63 = vadd.f32 %v5334_v15, %v5078_v58  ;;  %v3832_v15 = vld [vmem:[%s6076_s1 + $0xc0] sm:$0xff] }
 0x2bb   :  { %v3758_v47 = vpop.eup %3757  ;;  %3777 = vpow2.f32 %v2796_v34  ;;  %v2100_v3 = vadd.f32 %v2068_v10, %v6149_v49  ;;  %v2069_v4 = vmul.f32 %v3756_v50, %v1567_v41  ;;  %v96_v10 = vsel %vm39_vm1, %v3832_v15, 0.0  ;;  %v6154_v15 = vld [vmem:[#allocation21_spill] sm:$0xff] }
 0x2bc   :  { %v3760_v31 = vpop.eup %3759  ;;  %3779 = vtanh.f32 %v2099_v7  ;;  %v1974_v39 = vadd.f32 1.0, %v3758_v47  ;;  %v1572_v7 = vadd.f32 %v5311_v48, %v5078_v58  ;;  %v2798_v38 = vmul.f32 -1.442695, %v3450_v43 }
 0x2bd   :  { %v3762_v16 = vpop.eup %3761  ;;  %3781 = vtanh.f32 %v2100_v3  ;;  %v2101_v32 = vadd.f32 %v2069_v4, %v6150_v57  ;;  %v2193_v24 = vmul.f32 %v3760_v31, %v2161_v20  ;;  %v97_v53 = vsel %vm39_vm1, %v3833_v2, 0.0  ;;  %v6152_v4 = vld [vmem:[#allocation22_spill] sm:$0xff] }
 0x2be   :  { %v3764_v33 = vpop.eup %3763  ;;  %3783 = vpow2.f32 %v2797_v37  ;;  %v2194_v55 = vmul.f32 %v3762_v16, %v2162_v26  ;;  %v6151_v37 = vld [vmem:[#allocation19_spill] sm:$0xff]  ;;  %v2163_v23 = vsub.f32 1.0, %v5731_v42  ;;  %v2227_v26 = vmul.f32 %v5731_v42, %v96_v10 }
 0x2bf   :  { %v3766_v52 = vpop.eup %3765  ;;  %3785 = vpow2.f32 %v2766_v54  ;;  %v5749_v45 = vadd.f32 %v2225_v51, %v2193_v24  ;;  %v1975_v34 = vadd.f32 1.0, %v3764_v33  ;;  %v3834_v24 = vld [vmem:[%s6076_s1 + $0xd0] sm:$0xff] }
 0x2c0   :  { %v3768_v27 = vpop.eup %3767  ;;  %v1752_v6 = vadd.f32 1.0, %v3766_v52  ;;  %v5751_v59 = vadd.f32 %v2226_v44, %v2194_v55  ;;  %3787 = vtanh.f32 %v2101_v32  ;;  %v98_v51 = vsel %vm39_vm1, %v3834_v24, 0.0 }
 0x2c1   :  { %v3770_v8 = vpop.eup %3769  ;;  %v2296_v1 = vmul.f32 %v5693_v29, %v5749_v45  ;;  %v2164_v49 = vsub.f32 1.0, %v3768_v27  ;;  %v2228_v32 = vmul.f32 %v3768_v27, %v97_v53  ;;  %v1582_v55 = vadd.f32 %v5324_v36, %v5078_v58  ;;  %v3835_v53 = vld [vmem:[%s6076_s1 + $0xd8] sm:$0xff] }
 0x2c2   :  { %v3772_v61 = vpop.eup %3771  ;;  %3789 = vrcp.f32 %v1752_v6  ;;  %v1753_v41 = vadd.f32 1.0, %v3770_v8  ;;  %v2297_v48 = vmul.f32 %v5693_v29, %v5751_v59  ;;  %v6153_v6 = vld [vmem:[#allocation27_spill] sm:$0xff] }
 0x2c3   :  { %v3774_v22 = vpop.eup %3773  ;;  %3791 = vrcp.f32 %v1974_v39  ;;  %v2070_v0 = vmul.f32 %v3772_v61, %v1572_v7  ;;  %2350 = vadd.xlane.f32.xlu0 %v2296_v1  ;;  %v1587_v8 = vadd.f32 %v6153_v6, %v5078_v58 }
 0x2c4   :  { %v3776_v28 = vpop.eup %3775  ;;  %3793 = vrcp.f32 %v1753_v41  ;;  %2352 = vadd.xlane.f32.xlu1 %v2297_v48  ;;  %v2165_v39 = vsub.f32 1.0, %v3774_v22  ;;  %v2229_v61 = vmul.f32 %v3774_v22, %v98_v51  ;;  %v99_v22 = vsel %vm39_vm1, %v3835_v53, 0.0 }
 0x2c5   :  { %v3778_v50 = vpop.eup %3777  ;;  %3795 = vrcp.f32 %v1975_v34  ;;  %v2102_v54 = vadd.f32 %v2070_v0, %v6151_v37  ;;  %v2071_v12 = vmul.f32 %v3776_v28, %v1577_v63 }
 0x2c6   :  { %v3780_v47 = vpop.eup %3779  ;;  %3797 = vpow2.f32 %v2798_v38  ;;  %v1976_v43 = vadd.f32 1.0, %v3778_v50 }
 0x2c7   :  { %v3782_v3 = vpop.eup %3781  ;;  %3799 = vtanh.f32 %v2102_v54  ;;  %v2103_v20 = vadd.f32 %v2071_v12, %v6152_v4  ;;  %v2195_v31 = vmul.f32 %v3780_v47, %v2163_v23  ;;  %v6155_v23 = vld [vmem:[#allocation24_spill] sm:$0xff] }
 0x2c8   :  { %v3784_v16 = vpop.eup %3783  ;;  %v2196_v57 = vmul.f32 %v3782_v3, %v2164_v49  ;;  %v3836_v49 = vld [vmem:[%s6076_s1 + $0xe0] sm:$0xff] }
 0x2c9   :  { %v3786_v33 = vpop.eup %3785  ;;  %3801 = vtanh.f32 %v2103_v20  ;;  %v5780_v44 = vadd.f32 %v2227_v26, %v2195_v31  ;;  %v1977_v27 = vadd.f32 1.0, %v3784_v16  ;;  %v100_v3 = vsel %vm39_vm1, %v3836_v49, 0.0 }
 0x2ca   :  { %v1754_v52 = vadd.f32 1.0, %v3786_v33  ;;  %v5782_v42 = vadd.f32 %v2228_v32, %v2196_v57  ;;  %v3788_v7 = vpop.eup %3787  ;;  %v6156_v57 = vld [vmem:[#allocation26_spill] sm:$0xff] }
 0x2cb   :  { %v2298_v34 = vmul.f32 %v5693_v29, %v5780_v44  ;;  %v2197_v1 = vmul.f32 %v3788_v7, %v2165_v39  ;;  %v1592_v32 = vadd.f32 %v6156_v57, %v5078_v58  ;;  %v6157_v58 = vld [vmem:[#allocation23_spill] sm:$0xff] }
 0x2cc   :  { %v3790_v63 = vpop.eup %3789  ;;  %3803 = vrcp.f32 %v1754_v52  ;;  %v2299_v36 = vmul.f32 %v5693_v29, %v5782_v42 }
 0x2cd   :  { %v3792_v41 = vpop.eup %3791  ;;  %3805 = vrcp.f32 %v1976_v43  ;;  %v2072_v38 = vmul.f32 %v3790_v63, %v1582_v55  ;;  %2354 = vadd.xlane.f32.xlu0 %v2298_v34  ;;  %v5790_v0 = vadd.f32 %v2229_v61, %v2197_v1  ;;  %v3837_v34 = vld [vmem:[%s6076_s1 + $0xe8] sm:$0xff]  ;;  %v3838_v61 = vld [vmem:[%s6076_s1 + $0xf0] sm:$0xff] }
 0x2ce   :  { %v3794_v48 = vpop.eup %3793  ;;  %2356 = vadd.xlane.f32.xlu1 %v2299_v36  ;;  %3807 = vrcp.f32 %v1977_v27  ;;  %v2166_v54 = vsub.f32 1.0, %v3792_v41  ;;  %v2230_v20 = vmul.f32 %v3792_v41, %v99_v22  ;;  %v101_v63 = vsel %vm39_vm1, %v3837_v34, 0.0 }
 0x2cf   :  { %v3796_v28 = vpop.eup %3795  ;;  %v2104_v10 = vadd.f32 %v2072_v38, %v6154_v15  ;;  %v2073_v2 = vmul.f32 %v3794_v48, %v1587_v8  ;;  %v2300_v37 = vmul.f32 %v5693_v29, %v5790_v0  ;;  %v102_v41 = vsel %vm39_vm1, %v3838_v61, 0.0 }
 0x2d0   :  { %v3798_v50 = vpop.eup %3797  ;;  %v2167_v31 = vsub.f32 1.0, %v3796_v28  ;;  %v2231_v33 = vmul.f32 %v3796_v28, %v100_v3 }
 0x2d1   :  { %v3800_v12 = vpop.eup %3799  ;;  %3809 = vtanh.f32 %v2104_v10  ;;  %v2105_v47 = vadd.f32 %v2073_v2, %v6155_v23  ;;  %2358 = vadd.xlane.f32.xlu0 %v2300_v37  ;;  %v1978_v16 = vadd.f32 1.0, %v3798_v50 }
 0x2d2   :  { %v2198_v4 = vmul.f32 %v3800_v12, %v2166_v54  ;;  %v3839_v12 = vld [vmem:[%s6076_s1 + $0xf8] sm:$0xff] }
 0x2d3   :  { %v3802_v26 = vpop.eup %3801  ;;  %3811 = vtanh.f32 %v2105_v47  ;;  %v103_v23 = vsel %vm39_vm1, %v3839_v12, 0.0 }
 0x2d4   :  { %v5808_v24 = vadd.f32 %v2230_v20, %v2198_v4  ;;  %v2199_v51 = vmul.f32 %v3802_v26, %v2167_v31  ;;  %3813 = vrcp.f32 %v1978_v16  ;;  %v5844_v16 = vld [vmem:[#allocation2] ss:$0 sm:$0xff] }
 0x2d6   :  { %v3804_v43 = vpop.eup %3803  ;;  %v2301_v55 = vmul.f32 %v5693_v29, %v5808_v24  ;;  %v5812_v52 = vadd.f32 %v2231_v33, %v2199_v51 }
 0x2d7   :  { %v3806_v39 = vpop.eup %3805  ;;  %v2074_v7 = vmul.f32 %v3804_v43, %v1592_v32 }
 0x2d8   :  { %2360 = vadd.xlane.f32.xlu1 %v2301_v55  ;;  %v2302_v27 = vmul.f32 %v5693_v29, %v5812_v52  ;;  %v3808_v6 = vpop.eup %3807  ;;  %v2168_v36 = vsub.f32 1.0, %v3806_v39  ;;  %v2232_v48 = vmul.f32 %v3806_v39, %v101_v63 }
 0x2d9   :  { %v2106_v8 = vadd.f32 %v2074_v7, %v6157_v58  ;;  %v2169_v28 = vsub.f32 1.0, %v3808_v6  ;;  %v2233_v53 = vmul.f32 %v3808_v6, %v102_v41 }
 0x2da   :  { %2362 = vadd.xlane.f32.xlu0 %v2302_v27 }
 0x2db   :  { %v3810_v1 = vpop.eup %3809  ;;  %3815 = vtanh.f32 %v2106_v8 }
 0x2dc   :  { %v2200_v38 = vmul.f32 %v3810_v1, %v2168_v36 }
 0x2dd   :  { %v3812_v15 = vpop.eup %3811 }
 0x2de   :  { %v5827_v10 = vadd.f32 %v2232_v48, %v2200_v38  ;;  %v2201_v2 = vmul.f32 %v3812_v15, %v2169_v28  ;;  %v3814_v37 = vpop.eup %3813 }
 0x2df   :  { %v2170_v47 = vsub.f32 1.0, %v3814_v37  ;;  %v2234_v4 = vmul.f32 %v3814_v37, %v103_v23 }
 0x2e0   :  { %v2303_v22 = vmul.f32 %v5693_v29, %v5827_v10  ;;  %v5831_v50 = vadd.f32 %v2233_v53, %v2201_v2 }
 0x2e2   :  { %2364 = vadd.xlane.f32.xlu1 %v2303_v22  ;;  %v2304_v54 = vmul.f32 %v5693_v29, %v5831_v50  ;;  %v2307_v26 = vpop.xlane.xlu0 %2306 }
 0x2e3   :  { %v2377_v57 = vadd.f32 %v5844_v16, %v2307_v26 }
 0x2e4   :  { %2366 = vadd.xlane.f32.xlu0 %v2304_v54 }
 0x2e5   :  { %v3816_v49 = vpop.eup %3815 }
 0x2e6   :  { %v2202_v3 = vmul.f32 %v3816_v49, %v2170_v47  ;;  %v2309_v32 = vpop.xlane.xlu0 %2308 }
 0x2e7   :  { %v2378_v33 = vadd.f32 %v5844_v16, %v2309_v32 }
 0x2e8   :  { %v5840_v20 = vadd.f32 %v2234_v4, %v2202_v3 }
 0x2ea   :  { %v2305_v31 = vmul.f32 %v5693_v29, %v5840_v20 }
 0x2ec   :  { %2368 = vadd.xlane.f32.xlu1 %v2305_v31 }
 0x2ee   :  { %v2311_v51 = vpop.xlane.xlu1 %2310 }
 0x2ef   :  { %v2379_v43 = vadd.f32 %v5844_v16, %v2311_v51 }
 0x2f2   :  { %v2313_v55 = vpop.xlane.xlu1 %2312 }
 0x2f3   :  { %v2380_v39 = vadd.f32 %v5844_v16, %v2313_v55 }
 0x2f6   :  { %v2315_v7 = vpop.xlane.xlu0 %2314  ;;  %v2317_v29 = vpop.xlane.xlu1 %2316 }
 0x2f7   :  { %v2381_v27 = vadd.f32 %v5844_v16, %v2315_v7  ;;  %v2382_v58 = vadd.f32 %v5844_v16, %v2317_v29 }
 0x2fa   :  { %2412 = vperm.xlu0 %3495, %v2377_v57  }
 0x2fd   :  { %2417 = vperm.xlu1 %3496, %v2378_v33  }
 0x301   :  { %2422 = vperm.xlu1 %3496, %v2379_v43   ;;  %v2321_v6 = vpop.xlane.xlu1 %2320 }
 0x302   :  { %v2319_v8 = vpop.xlane.xlu0 %2318  ;;  %v2384_v1 = vadd.f32 %v5844_v16, %v2321_v6 }
 0x303   :  { %v2383_v36 = vadd.f32 %v5844_v16, %v2319_v8 }
 0x305   :  { %2427 = vperm.xlu1 %3496, %v2380_v39  }
 0x309   :  { %2432 = vperm.xlu1 %3496, %v2381_v27  }
 0x30b   :  { %v2325_v34 = vpop.xlane.xlu1 %2324 }
 0x30c   :  { %v2386_v63 = vadd.f32 %v5844_v16, %v2325_v34  ;;  %v2323_v61 = vpop.xlane.xlu0 %2322 }
 0x30d   :  { %2437 = vperm.xlu1 %3496, %v2382_v58   ;;  %v2385_v38 = vadd.f32 %v5844_v16, %v2323_v61 }
 0x30e   :  { %2457 = vperm.xlu0 %3495, %v2386_v63  }
 0x311   :  { %2442 = vperm.xlu1 %3496, %v2383_v36  }
 0x314   :  { %v2329_v41 = vpop.xlane.xlu1 %2328 }
 0x315   :  { %2447 = vperm.xlu1 %3496, %v2384_v1   ;;  %v2388_v48 = vadd.f32 %v5844_v16, %v2329_v41  ;;  %v2327_v28 = vpop.xlane.xlu0 %2326 }
 0x316   :  { %v2387_v15 = vadd.f32 %v5844_v16, %v2327_v28 }
 0x317   :  { %2467 = vperm.xlu0 %3495, %v2388_v48  }
 0x319   :  { %2452 = vperm.xlu1 %3496, %v2385_v38  }
 0x31d   :  { %2462 = vperm.xlu1 %3496, %v2387_v15  }
 0x31e   :  { %v2331_v2 = vpop.xlane.xlu0 %2330 }
 0x31f   :  { %v2389_v53 = vadd.f32 %v5844_v16, %v2331_v2 }
 0x320   :  { %v2333_v22 = vpop.xlane.xlu1 %2332 }
 0x321   :  { %2472 = vperm.xlu1 %3496, %v2389_v53   ;;  %v2390_v37 = vadd.f32 %v5844_v16, %v2333_v22 }
 0x323   :  { %2477 = vperm.xlu0 %3495, %v2390_v37  }
 0x328   :  { %v2335_v54 = vpop.xlane.xlu0 %2334 }
 0x329   :  { %v2391_v12 = vadd.f32 %v5844_v16, %v2335_v54  ;;  %v2337_v23 = vpop.xlane.xlu1 %2336 }
 0x32a   :  { %v2392_v47 = vadd.f32 %v5844_v16, %v2337_v23 }
 0x32b   :  { %2482 = vperm.xlu1 %3496, %v2391_v12   ;;  %v6158_v12 = vld [vmem:[#allocation32_spill] sm:$0xff] }
 0x32c   :  { %2487 = vperm.xlu0 %3495, %v2392_v47  }
 0x332   :  { %v2339_v49 = vpop.xlane.xlu0 %2338 }
 0x333   :  { %v2393_v3 = vadd.f32 %v5844_v16, %v2339_v49  ;;  %v2341_v4 = vpop.xlane.xlu1 %2340  ;;  %v6159_v49 = vld [vmem:[#allocation3_spill] sm:$0xff] }
 0x334   :  { %v2394_v31 = vadd.f32 %v5844_v16, %v2341_v4 }
 0x335   :  { %2492 = vperm.xlu1 %3496, %v2393_v3  }
 0x336   :  { %2497 = vperm.xlu0 %3495, %v2394_v31  }
 0x33c   :  { %v2343_v26 = vpop.xlane.xlu0 %2342 }
 0x33d   :  { %v2395_v57 = vadd.f32 %v5844_v16, %v2343_v26  ;;  %v2345_v32 = vpop.xlane.xlu1 %2344 }
 0x33e   :  { %v2396_v51 = vadd.f32 %v5844_v16, %v2345_v32 }
 0x33f   :  { %2502 = vperm.xlu1 %3496, %v2395_v57   ;;  %v6161_v57 = vld [vmem:[#allocation25_spill] sm:$0xff] }
 0x340   :  { %2507 = vperm.xlu0 %3495, %v2396_v51  }
 0x346   :  { %v2347_v33 = vpop.xlane.xlu0 %2346 }
 0x347   :  { %v2397_v43 = vadd.f32 %v5844_v16, %v2347_v33  ;;  %v2349_v55 = vpop.xlane.xlu1 %2348  ;;  %v6162_v33 = vld [vmem:[#allocation33_spill] sm:$0xff] }
 0x348   :  { %v2398_v39 = vadd.f32 %v5844_v16, %v2349_v55 }
 0x349   :  { %2512 = vperm.xlu1 %3496, %v2397_v43  }
 0x34a   :  { %2517 = vperm.xlu0 %3495, %v2398_v39  }
 0x350   :  { %v2351_v7 = vpop.xlane.xlu0 %2350 }
 0x351   :  { %v2399_v29 = vadd.f32 %v5844_v16, %v2351_v7  ;;  %v2353_v27 = vpop.xlane.xlu1 %2352  ;;  %v6163_v7 = vld [vmem:[#allocation29_spill] sm:$0xff] }
 0x352   :  { %v2400_v6 = vadd.f32 %v5844_v16, %v2353_v27 }
 0x353   :  { %2522 = vperm.xlu1 %3496, %v2399_v29  }
 0x354   :  { %2527 = vperm.xlu0 %3495, %v2400_v6  }
 0x35a   :  { %v2355_v58 = vpop.xlane.xlu0 %2354 }
 0x35b   :  { %v2401_v8 = vadd.f32 %v5844_v16, %v2355_v58  ;;  %v2357_v34 = vpop.xlane.xlu1 %2356 }
 0x35c   :  { %v2402_v63 = vadd.f32 %v5844_v16, %v2357_v34 }
 0x35d   :  { %2532 = vperm.xlu1 %3496, %v2401_v8  }
 0x35e   :  { %2537 = vperm.xlu0 %3495, %v2402_v63   ;;  %v2359_v36 = vpop.xlane.xlu0 %2358 }
 0x35f   :  { %v2403_v1 = vadd.f32 %v5844_v16, %v2359_v36 }
 0x361   :  { %2542 = vperm.xlu1 %3496, %v2403_v1  }
 0x365   :  { %v2361_v61 = vpop.xlane.xlu1 %2360 }
 0x366   :  { %v2404_v41 = vadd.f32 %v5844_v16, %v2361_v61 }
 0x367   :  { %v2363_v38 = vpop.xlane.xlu0 %2362 }
 0x368   :  { %2547 = vperm.xlu0 %3495, %v2404_v41   ;;  %v2405_v48 = vadd.f32 %v5844_v16, %v2363_v38 }
 0x36a   :  { %2552 = vperm.xlu1 %3496, %v2405_v48  }
 0x36f   :  { %v2365_v28 = vpop.xlane.xlu1 %2364 }
 0x370   :  { %v2406_v15 = vadd.f32 %v5844_v16, %v2365_v28 }
 0x371   :  { %v2367_v2 = vpop.xlane.xlu0 %2366 }
 0x372   :  { %2557 = vperm.xlu0 %3495, %v2406_v15   ;;  %v2407_v53 = vadd.f32 %v5844_v16, %v2367_v2 }
 0x374   :  { %2562 = vperm.xlu1 %3496, %v2407_v53  }
 0x379   :  { %v2369_v22 = vpop.xlane.xlu1 %2368  ;;  %v2413_v37 = vpop.permute.xlu0 %2412 }
 0x37a   :  { %v2408_v54 = vadd.f32 %v5844_v16, %v2369_v22  ;;  %v2570_v23 = vsel %vm2409_vm2, %v2413_v37, %v6158_v12  ;;  %v6160_v16 = vld [vmem:[#allocation28_spill] sm:$0xff] }
 0x37b   :  { %2602 = vst [vmem:[%s6081_s10] sm:$0xff] %v2570_v23 }
 0x37c   :  { %2567 = vperm.xlu0 %3495, %v2408_v54  }
 0x37d   :  { %v2418_v47 = vpop.permute.xlu1 %2417 }
 0x37e   :  { %v2571_v3 = vsel %vm2409_vm2, %v2418_v47, %v6159_v49 }
 0x37f   :  { %2603 = vst [vmem:[%s6081_s10 + $0x8] sm:$0xff] %v2571_v3 }
 0x381   :  { %v2423_v4 = vpop.permute.xlu1 %2422 }
 0x382   :  { %v2572_v31 = vsel %vm2409_vm2, %v2423_v4, %v6160_v16 }
 0x383   :  { %2604 = vst [vmem:[%s6081_s10 + $0x10] sm:$0xff] %v2572_v31 }
 0x385   :  { %v2428_v26 = vpop.permute.xlu1 %2427 }
 0x386   :  { %v2573_v32 = vsel %vm2409_vm2, %v2428_v26, %v6161_v57 }
 0x387   :  { %2605 = vst [vmem:[%s6081_s10 + $0x18] sm:$0xff] %v2573_v32 }
 0x389   :  { %v2433_v51 = vpop.permute.xlu1 %2432 }
 0x38a   :  { %v2574_v43 = vsel %vm2409_vm2, %v2433_v51, %v6162_v33 }
 0x38b   :  { %2606 = vst [vmem:[%s6081_s10 + $0x20] sm:$0xff] %v2574_v43 }
 0x38d   :  { %v2438_v55 = vpop.permute.xlu1 %2437  ;;  %v2458_v39 = vpop.permute.xlu0 %2457 }
 0x38e   :  { %v2575_v29 = vsel %vm2409_vm2, %v2438_v55, %v6163_v7  ;;  %v2579_v27 = vsel %vm2409_vm2, %v2458_v39, %v5458_v40 }
 0x38f   :  { %2607 = vst [vmem:[%s6081_s10 + $0x28] sm:$0xff] %v2575_v29  ;;  %2611 = vst [vmem:[%s6081_s10 + $0x48] sm:$0xff] %v2579_v27 }
 0x391   :  { %v2443_v6 = vpop.permute.xlu1 %2442 }
 0x392   :  { %v2576_v58 = vsel %vm2409_vm2, %v2443_v6, %v5418_v60 }
 0x393   :  { %2608 = vst [vmem:[%s6081_s10 + $0x30] sm:$0xff] %v2576_v58 }
 0x395   :  { %v2448_v8 = vpop.permute.xlu1 %2447 }
 0x396   :  { %v2577_v40 = vsel %vm2409_vm2, %v2448_v8, %v5412_v56  ;;  %v2468_v34 = vpop.permute.xlu0 %2467 }
 0x397   :  { %2609 = vst [vmem:[%s6081_s10 + $0x38] sm:$0xff] %v2577_v40  ;;  %v2581_v63 = vsel %vm2409_vm2, %v2468_v34, %v5508_v18 }
 0x398   :  { %2613 = vst [vmem:[%s6081_s10 + $0x58] sm:$0xff] %v2581_v63 }
 0x399   :  { %v2453_v60 = vpop.permute.xlu1 %2452 }
 0x39a   :  { %v2578_v36 = vsel %vm2409_vm2, %v2453_v60, %v5464_v30 }
 0x39b   :  { %2610 = vst [vmem:[%s6081_s10 + $0x40] sm:$0xff] %v2578_v36 }
 0x39d   :  { %v2463_v56 = vpop.permute.xlu1 %2462 }
 0x39e   :  { %v2580_v1 = vsel %vm2409_vm2, %v2463_v56, %v5512_v62 }
 0x39f   :  { %2612 = vst [vmem:[%s6081_s10 + $0x50] sm:$0xff] %v2580_v1 }
 0x3a1   :  { %v2473_v18 = vpop.permute.xlu1 %2472 }
 0x3a2   :  { %v2582_v61 = vsel %vm2409_vm2, %v2473_v18, %v5557_v46  ;;  %v2478_v41 = vpop.permute.xlu0 %2477 }
 0x3a3   :  { %2614 = vst [vmem:[%s6081_s10 + $0x60] sm:$0xff] %v2582_v61  ;;  %v2583_v30 = vsel %vm2409_vm2, %v2478_v41, %v5570_v19 }
 0x3a4   :  { %2615 = vst [vmem:[%s6081_s10 + $0x68] sm:$0xff] %v2583_v30 }
 0x3aa   :  { %v2483_v62 = vpop.permute.xlu1 %2482 }
 0x3ab   :  { %v2584_v38 = vsel %vm2409_vm2, %v2483_v62, %v5610_v13  ;;  %v2488_v48 = vpop.permute.xlu0 %2487 }
 0x3ac   :  { %2616 = vst [vmem:[%s6081_s10 + $0x70] sm:$0xff] %v2584_v38  ;;  %v2585_v46 = vsel %vm2409_vm2, %v2488_v48, %v5614_v21 }
 0x3ad   :  { %2617 = vst [vmem:[%s6081_s10 + $0x78] sm:$0xff] %v2585_v46 }
 0x3b4   :  { %v2493_v19 = vpop.permute.xlu1 %2492 }
 0x3b5   :  { %v2586_v28 = vsel %vm2409_vm2, %v2493_v19, %v5650_v14  ;;  %v2498_v15 = vpop.permute.xlu0 %2497 }
 0x3b6   :  { %2618 = vst [vmem:[%s6081_s10 + $0x80] sm:$0xff] %v2586_v28  ;;  %v2587_v13 = vsel %vm2409_vm2, %v2498_v15, %v5654_v11 }
 0x3b7   :  { %2619 = vst [vmem:[%s6081_s10 + $0x88] sm:$0xff] %v2587_v13 }
 0x3be   :  { %v2503_v21 = vpop.permute.xlu1 %2502 }
 0x3bf   :  { %v2588_v2 = vsel %vm2409_vm2, %v2503_v21, %v5682_v5  ;;  %v2508_v53 = vpop.permute.xlu0 %2507 }
 0x3c0   :  { %2620 = vst [vmem:[%s6081_s10 + $0x90] sm:$0xff] %v2588_v2  ;;  %v2589_v14 = vsel %vm2409_vm2, %v2508_v53, %v5686_v25 }
 0x3c1   :  { %2621 = vst [vmem:[%s6081_s10 + $0x98] sm:$0xff] %v2589_v14 }
 0x3c8   :  { %v2513_v11 = vpop.permute.xlu1 %2512 }
 0x3c9   :  { %v2590_v22 = vsel %vm2409_vm2, %v2513_v11, %v5719_v35  ;;  %v2518_v37 = vpop.permute.xlu0 %2517 }
 0x3ca   :  { %2622 = vst [vmem:[%s6081_s10 + $0xa0] sm:$0xff] %v2590_v22  ;;  %v2591_v5 = vsel %vm2409_vm2, %v2518_v37, %v5723_v17 }
 0x3cb   :  { %2623 = vst [vmem:[%s6081_s10 + $0xa8] sm:$0xff] %v2591_v5 }
 0x3d2   :  { %v2523_v25 = vpop.permute.xlu1 %2522 }
 0x3d3   :  { %v2592_v54 = vsel %vm2409_vm2, %v2523_v25, %v5749_v45  ;;  %v2528_v12 = vpop.permute.xlu0 %2527 }
 0x3d4   :  { %2624 = vst [vmem:[%s6081_s10 + $0xb0] sm:$0xff] %v2592_v54  ;;  %v2593_v35 = vsel %vm2409_vm2, %v2528_v12, %v5751_v59 }
 0x3d5   :  { %2625 = vst [vmem:[%s6081_s10 + $0xb8] sm:$0xff] %v2593_v35 }
 0x3dc   :  { %v2533_v17 = vpop.permute.xlu1 %2532 }
 0x3dd   :  { %v2594_v23 = vsel %vm2409_vm2, %v2533_v17, %v5780_v44  ;;  %v2538_v47 = vpop.permute.xlu0 %2537 }
 0x3de   :  { %2626 = vst [vmem:[%s6081_s10 + $0xc0] sm:$0xff] %v2594_v23  ;;  %v2595_v45 = vsel %vm2409_vm2, %v2538_v47, %v5782_v42 }
 0x3df   :  { %2627 = vst [vmem:[%s6081_s10 + $0xc8] sm:$0xff] %v2595_v45 }
 0x3e0   :  { %v2543_v59 = vpop.permute.xlu1 %2542 }
 0x3e1   :  { %v2596_v49 = vsel %vm2409_vm2, %v2543_v59, %v5790_v0 }
 0x3e2   :  { %2628 = vst [vmem:[%s6081_s10 + $0xd0] sm:$0xff] %v2596_v49 }
 0x3e7   :  { %v2548_v44 = vpop.permute.xlu0 %2547 }
 0x3e8   :  { %v2597_v3 = vsel %vm2409_vm2, %v2548_v44, %v5808_v24 }
 0x3e9   :  { %2629 = vst [vmem:[%s6081_s10 + $0xd8] sm:$0xff] %v2597_v3  ;;  %v2553_v42 = vpop.permute.xlu1 %2552 }
 0x3ea   :  { %v2598_v4 = vsel %vm2409_vm2, %v2553_v42, %v5812_v52 }
 0x3eb   :  { %2630 = vst [vmem:[%s6081_s10 + $0xe0] sm:$0xff] %v2598_v4 }
 0x3f1   :  { %v2558_v0 = vpop.permute.xlu0 %2557 }
 0x3f2   :  { %v2599_v16 = vsel %vm2409_vm2, %v2558_v0, %v5827_v10 }
 0x3f3   :  { %2631 = vst [vmem:[%s6081_s10 + $0xe8] sm:$0xff] %v2599_v16  ;;  %v2563_v24 = vpop.permute.xlu1 %2562 }
 0x3f4   :  { %v2600_v31 = vsel %vm2409_vm2, %v2563_v24, %v5831_v50 }
 0x3f5   :  { %2632 = vst [vmem:[%s6081_s10 + $0xf0] sm:$0xff] %v2600_v31 }
 0x3fb   :  { %v2568_v52 = vpop.permute.xlu0 %2567 }
 0x3fc   :  { %v2601_v26 = vsel %vm2409_vm2, %v2568_v52, %v5840_v20 }
 0x3fd   :  { %2633 = vst [vmem:[%s6081_s10 + $0xf8] sm:$0xff] %v2601_v26 }

</bundles_post_ra>
